<compile_context>
chip_gen: v5e
topology: v5e:2x2
jax: 0.10.0
libtpu: 0.0.40
codegen_flags: <defaults>
</compile_context>

<pallas_src>
import numpy as np
import jax
import jax.numpy as jnp
from jax import lax
from jax.experimental import pallas as pl
from jax.experimental.pallas import tpu as pltpu

_VMEM_LIMIT = 32 * 1024 * 1024


def _sigmoid(x):
    # Explicit formula (exp + reciprocal) so kernel and reference match exactly.
    return 1.0 / (1.0 + jnp.exp(-x))


def _pick_block(n, max_blk):
    """Largest divisor of n <= max_blk, preferring multiples of 8 (never falls
    back to the full dimension unless it already qualifies)."""
    best = 1
    for c in range(min(n, max_blk), 0, -1):
        if n % c == 0:
            if c % 8 == 0 or c == n:
                return c
            if best == 1:
                best = c
    return best


# -----------------------------------------------------------------------------
# Tiled linear: x @ w + b   (bf16 MXU operands, f32 accumulate, weight resident)
# Only used for the first layer's residual projection.
# -----------------------------------------------------------------------------
def _linear_kernel(x_ref, w_ref, b_ref, o_ref):
    acc = jnp.dot(x_ref[...].astype(jnp.bfloat16), w_ref[...],
                  preferred_element_type=jnp.float32)
    o_ref[...] = (acc + b_ref[...]).astype(o_ref.dtype)


def linear_tiled(x, w_bf16, b, out_dtype=jnp.float32, row_block=512):
    M, K = x.shape
    _, N = w_bf16.shape
    tm = _pick_block(M, row_block)
    return pl.pallas_call(
        _linear_kernel,
        out_shape=jax.ShapeDtypeStruct((M, N), out_dtype),
        grid=(M // tm,),
        in_specs=[pl.BlockSpec((tm, K), lambda i: (i, 0)),
                  pl.BlockSpec((K, N), lambda i: (0, 0)),
                  pl.BlockSpec((1, N), lambda i: (0, 0))],
        out_specs=pl.BlockSpec((tm, N), lambda i: (i, 0)),
        compiler_params=pltpu.CompilerParams(
            dimension_semantics=("parallel",),
            vmem_limit_bytes=_VMEM_LIMIT),
    )(x, w_bf16, b.reshape(1, N))


# -----------------------------------------------------------------------------
# Bidirectional LSTM recurrence: fused input-gate matmul + both directions per
# time chunk.  grid = (time-chunk,), sequential ("arbitrary") carry via scratch.
# -----------------------------------------------------------------------------
def _bilstm_fused_kernel(xf_ref, xb_ref, wih_ref, whh_ref, bias_ref,
                         hf_out, hb_out,
                         gxf_sc, gxb_sc, hf_sc, hb_sc, cf_sc, cb_sc):
    tc = pl.program_id(0)

    @pl.when(tc == 0)
    def _():
        hf_sc[...] = jnp.zeros_like(hf_sc)
        hb_sc[...] = jnp.zeros_like(hb_sc)
        cf_sc[...] = jnp.zeros_like(cf_sc)
        cb_sc[...] = jnp.zeros_like(cb_sc)

    tblk, B, Din = xf_ref.shape
    H = hf_sc.shape[-1]

    # ---- prologue: chunk input-gate matmuls for both directions (MXU) -------
    xf = xf_ref[...].reshape(tblk * B, Din).astype(jnp.bfloat16)
    xb = xb_ref[...].reshape(tblk * B, Din).astype(jnp.bfloat16)
    gxf_sc[...] = (jnp.dot(xf, wih_ref[0], preferred_element_type=jnp.float32)
                   + bias_ref[0]).reshape(tblk, B, 4 * H)
    gxb_sc[...] = (jnp.dot(xb, wih_ref[1], preferred_element_type=jnp.float32)
                   + bias_ref[1]).reshape(tblk, B, 4 * H)

    whh_f = whh_ref[0]            # (H, 4H) bf16, resident for the whole chunk
    whh_b = whh_ref[1]

    # ---- step loop: two independent chains, static indices ------------------
    # (fwd walks j = 0..tblk-1 within chunk tc; bwd walks tblk-1..0 within
    #  chunk nc-1-tc, so both recurrences advance in their natural order.)
    for j in range(tblk):
        jb = tblk - 1 - j
        gf = gxf_sc[j] + jnp.dot(hf_sc[...].astype(jnp.bfloat16), whh_f,
                                 preferred_element_type=jnp.float32)
        gb = gxb_sc[jb] + jnp.dot(hb_sc[...].astype(jnp.bfloat16), whh_b,
                                  preferred_element_type=jnp.float32)
        # Full-width sigmoid covers i, f, o in one EUP pass; tanh only on g.
        sf = _sigmoid(gf)
        sb = _sigmoid(gb)
        ggf = jnp.tanh(gf[:, 2 * H:3 * H])
        ggb = jnp.tanh(gb[:, 2 * H:3 * H])
        # PyTorch gate order: i, f, g, o
        cf = sf[:, H:2 * H] * cf_sc[...] + sf[:, :H] * ggf
        cb = sb[:, H:2 * H] * cb_sc[...] + sb[:, :H] * ggb
        hf = sf[:, 3 * H:] * jnp.tanh(cf)
        hb = sb[:, 3 * H:] * jnp.tanh(cb)
        cf_sc[...] = cf
        cb_sc[...] = cb
        hf_sc[...] = hf
        hb_sc[...] = hb
        hf_out[j] = hf            # whole chunk written back as one block DMA
        hb_out[jb] = hb


def bilstm_recurrence(x, wih_stk, whh_stk, bias_stk, max_tblk=64):
    """x:(T,B,Din) f32 time-major; wih_stk:(2,Din,4H) bf16; whh_stk:(2,H,4H) bf16;
    bias_stk:(2,1,4H) f32.  Returns (hf, hb) each (T,B,H) f32 in original order."""
    T, B, Din = x.shape
    H = whh_stk.shape[1]
    tblk = _pick_block(T, max_tblk)
    nc = T // tblk

    return pl.pallas_call(
        _bilstm_fused_kernel,
        out_shape=(jax.ShapeDtypeStruct((T, B, H), jnp.float32),
                   jax.ShapeDtypeStruct((T, B, H), jnp.float32)),
        grid=(nc,),
        in_specs=[
            pl.BlockSpec((tblk, B, Din), lambda tc: (tc, 0, 0)),            # x, fwd chunk
            pl.BlockSpec((tblk, B, Din), lambda tc: (nc - 1 - tc, 0, 0)),   # x, bwd chunk
            pl.BlockSpec((2, Din, 4 * H), lambda tc: (0, 0, 0)),            # wih (resident)
            pl.BlockSpec((2, H, 4 * H), lambda tc: (0, 0, 0)),              # whh (resident)
            pl.BlockSpec((2, 1, 4 * H), lambda tc: (0, 0, 0)),              # bias
        ],
        out_specs=(pl.BlockSpec((tblk, B, H), lambda tc: (tc, 0, 0)),
                   pl.BlockSpec((tblk, B, H), lambda tc: (nc - 1 - tc, 0, 0))),
        scratch_shapes=[pltpu.VMEM((tblk, B, 4 * H), jnp.float32),   # fwd chunk gates
                        pltpu.VMEM((tblk, B, 4 * H), jnp.float32),   # bwd chunk gates
                        pltpu.VMEM((B, H), jnp.float32),             # h fwd
                        pltpu.VMEM((B, H), jnp.float32),             # h bwd
                        pltpu.VMEM((B, H), jnp.float32),             # c fwd
                        pltpu.VMEM((B, H), jnp.float32)],            # c bwd
        compiler_params=pltpu.CompilerParams(
            dimension_semantics=("arbitrary",),      # sequential recurrence carry
            vmem_limit_bytes=_VMEM_LIMIT),
    )(x, x, wih_stk, whh_stk, bias_stk)


# -----------------------------------------------------------------------------
# Fused concat(fwd,bwd) + residual add + LayerNorm, tiled over rows
# -----------------------------------------------------------------------------
def _concat_add_ln_kernel(hf_ref, hb_ref, r_ref, g_ref, b_ref, o_ref):
    y = jnp.concatenate([hf_ref[...], hb_ref[...]], axis=-1) + r_ref[...]
    mean = jnp.mean(y, axis=-1, keepdims=True)
    var = jnp.mean(jnp.square(y - mean), axis=-1, keepdims=True)
    yhat = (y - mean) * lax.rsqrt(var + 1e-5)
    o_ref[...] = (yhat * g_ref[...] + b_ref[...]).astype(o_ref.dtype)


def concat_add_layernorm(hf, hb, residual, gamma, beta, row_block=512):
    """hf,hb:(M,H) f32, residual:(M,2H) f32 -> LayerNorm(concat(hf,hb)+residual)."""
    M, H = hf.shape
    F = 2 * H
    rb = _pick_block(M, row_block)
    return pl.pallas_call(
        _concat_add_ln_kernel,
        out_shape=jax.ShapeDtypeStruct((M, F), jnp.float32),
        grid=(M // rb,),
        in_specs=[pl.BlockSpec((rb, H), lambda i: (i, 0)),
                  pl.BlockSpec((rb, H), lambda i: (i, 0)),
                  pl.BlockSpec((rb, F), lambda i: (i, 0)),
                  pl.BlockSpec((1, F), lambda i: (0, 0)),
                  pl.BlockSpec((1, F), lambda i: (0, 0))],
        out_specs=pl.BlockSpec((rb, F), lambda i: (i, 0)),
        compiler_params=pltpu.CompilerParams(
            dimension_semantics=("parallel",),
            vmem_limit_bytes=_VMEM_LIMIT),
    )(hf, hb, residual, gamma.reshape(1, F), beta.reshape(1, F))


# -----------------------------------------------------------------------------
# Module forward (glue in plain JAX, hot paths in Pallas)
# -----------------------------------------------------------------------------
def residual_bilstm_block(x_flat, T, B, p):
    """x_flat:(T*B, Din) time-major rows.  Returns (T*B, 2H) f32."""
    H = p['whh_stk'].shape[1]
    Din = x_flat.shape[-1]
    if p['proj'] is not None:
        wp, bp = p['proj']
        residual = linear_tiled(x_flat, wp, bp, out_dtype=jnp.float32)
    else:
        residual = x_flat
    hf, hb = bilstm_recurrence(x_flat.reshape(T, B, Din),
                               p['wih_stk'], p['whh_stk'], p['bias_stk'])
    return concat_add_layernorm(hf.reshape(T * B, H), hb.reshape(T * B, H),
                                residual, p['ln'][0], p['ln'][1])


def forward_pallas(x, layers):
    """x: (B, T, input_size), batch-first like the PyTorch module."""
    B, T, Din = x.shape
    # One transpose for the whole stack; every layer stays time-major internally.
    x_flat = jnp.transpose(x, (1, 0, 2)).reshape(T * B, Din)
    for p in layers:
        x_flat = residual_bilstm_block(x_flat, T, B, p)
    F = x_flat.shape[-1]
    return jnp.transpose(x_flat.reshape(T, B, F), (1, 0, 2))


# -----------------------------------------------------------------------------
# Parameters: raw PyTorch-layout init + one-time packing
# -----------------------------------------------------------------------------
def init_params(key, input_size, hidden, num_layers):
    def u(k_, shape, bound):
        return jax.random.uniform(k_, shape, jnp.float32, -bound, bound)

    layers = []
    for li in range(num_layers):
        din = input_size if li == 0 else 2 * hidden
        kb = 1.0 / np.sqrt(hidden)
        ks = jax.random.split(jax.random.fold_in(key, li), 10)
        fwd = (u(ks[0], (4 * hidden, din), kb), u(ks[1], (4 * hidden, hidden), kb),
               u(ks[2], (4 * hidden,), kb), u(ks[3], (4 * hidden,), kb))
        bwd = (u(ks[4], (4 * hidden, din), kb), u(ks[5], (4 * hidden, hidden), kb),
               u(ks[6], (4 * hidden,), kb), u(ks[7], (4 * hidden,), kb))
        if din != 2 * hidden:
            kp = 1.0 / np.sqrt(din)
            proj = (u(ks[8], (din, 2 * hidden), kp), u(ks[9], (2 * hidden,), kp))
        else:
            proj = None
        ln = (jnp.ones((2 * hidden,), jnp.float32),
              jnp.zeros((2 * hidden,), jnp.float32))
        layers.append(dict(hidden=hidden, fwd=fwd, bwd=bwd, proj=proj, ln=ln))
    return layers


def pack_params(raw_layers):
    """One-time packing: pre-transposed / stacked bf16 MXU operands, summed biases."""
    packed = []
    for p in raw_layers:
        wih_f, whh_f, bih_f, bhh_f = p['fwd']
        wih_b, whh_b, bih_b, bhh_b = p['bwd']
        H = p['hidden']
        wih_stk = jnp.stack([wih_f.T, wih_b.T], axis=0).astype(jnp.bfloat16)   # (2,Din,4H)
        whh_stk = jnp.stack([whh_f.T, whh_b.T], axis=0).astype(jnp.bfloat16)   # (2,H,4H)
        bias_stk = jnp.stack([(bih_f + bhh_f).reshape(1, 4 * H),
                              (bih_b + bhh_b).reshape(1, 4 * H)], axis=0)      # (2,1,4H)
        proj = None
        if p['proj'] is not None:
            wp, bp = p['proj']
            proj = (wp.astype(jnp.bfloat16), bp)
        packed.append(dict(wih_stk=wih_stk, whh_stk=whh_stk, bias_stk=bias_stk,
                           proj=proj, ln=p['ln']))
    return packed


# -----------------------------------------------------------------------------
# Pure-JAX reference (mirrors the kernel's bf16-MXU / f32-state precision)
# -----------------------------------------------------------------------------
def _ref_dir(x_flat, wih, whh, bih, bhh, T, B, reverse):
    H = whh.shape[1]
    gx = jnp.dot(x_flat.astype(jnp.bfloat16), wih.T.astype(jnp.bfloat16),
                 preferred_element_type=jnp.float32) + (bih + bhh)
    gx = gx.reshape(T, B, 4 * H)
    whh_t = whh.T.astype(jnp.bfloat16)
    if reverse:
        gx = gx[::-1]

    def step(carry, g):
        h, c = carry
        gates = g + jnp.dot(h.astype(jnp.bfloat16), whh_t,
                            preferred_element_type=jnp.float32)
        i = _sigmoid(gates[:, :H])
        f = _sigmoid(gates[:, H:2 * H])
        gg = jnp.tanh(gates[:, 2 * H:3 * H])
        o = _sigmoid(gates[:, 3 * H:])
        c = f * c + i * gg
        h = o * jnp.tanh(c)
        return (h, c), h

    _, hs = lax.scan(step, (jnp.zeros((B, H), jnp.float32),
                            jnp.zeros((B, H), jnp.float32)), gx)
    if reverse:
        hs = hs[::-1]
    return hs                                        # (T, B, H)


def forward_ref(x, raw_layers):
    B, T, _ = x.shape
    xt = jnp.transpose(x, (1, 0, 2))                 # (T, B, Din)
    for p in raw_layers:
        H = p['hidden']
        Din = xt.shape[-1]
        x_flat = xt.reshape(T * B, Din)
        if p['proj'] is not None:
            wp, bp = p['proj']
            residual = (jnp.dot(x_flat.astype(jnp.bfloat16), wp.astype(jnp.bfloat16),
                                preferred_element_type=jnp.float32) + bp
                        ).reshape(T, B, 2 * H)
        else:
            residual = xt
        hf = _ref_dir(x_flat, *p['fwd'], T, B, reverse=False)
        hb = _ref_dir(x_flat, *p['bwd'], T, B, reverse=True)
        y = jnp.concatenate([hf, hb], axis=-1) + residual
        mean = y.mean(-1, keepdims=True)
        var = ((y - mean) ** 2).mean(-1, keepdims=True)
        xt = (y - mean) * lax.rsqrt(var + 1e-5) * p['ln'][0] + p['ln'][1]
    return jnp.transpose(xt, (1, 0, 2))


# -----------------------------------------------------------------------------
if __name__ == "__main__":
    key = jax.random.PRNGKey(0)
    B, T, D, H, L = 2, 8, 16, 32, 2     # batch, seq, input_size, hidden, layers
    x = jax.random.normal(jax.random.fold_in(key, 100), (B, T, D), jnp.float32)

    raw = init_params(key, D, H, L)
    packed = pack_params(raw)

    y = jax.jit(forward_pallas)(x, packed)
    jax.block_until_ready(y)

    y_ref = forward_ref(x, raw)
    np.testing.assert_allclose(np.asarray(y), np.asarray(y_ref),
                               rtol=3e-3, atol=3e-3)
    print("KERNEL_OK")
</pallas_src>

<mosaic_0001>
module attributes {stable_mosaic.version = 11 : i64} {
  func.func @_concat_add_ln_kernel(%arg0: i32, %arg1: memref<16x32xf32, #tpu.memory_space<vmem>>, %arg2: memref<16x32xf32, #tpu.memory_space<vmem>>, %arg3: memref<16x64xf32, #tpu.memory_space<vmem>>, %arg4: memref<1x64xf32, #tpu.memory_space<vmem>>, %arg5: memref<1x64xf32, #tpu.memory_space<vmem>>, %arg6: memref<16x64xf32, #tpu.memory_space<vmem>>) attributes {dimension_semantics = [#tpu.dimension_semantics<parallel>], iteration_bounds = array<i64: 1>, scalar_prefetch = 0 : i64, scratch_operands = 0 : i64, tpu.core_type = #tpu.core_type<tc>, window_params = [{transform_indices = @transform_0, window_bounds = array<i64: 16, 32>}, {transform_indices = @transform_1, window_bounds = array<i64: 16, 32>}, {transform_indices = @transform_2, window_bounds = array<i64: 16, 64>}, {pipeline_mode = #tpu.pipeline_mode<synchronous>, transform_indices = @transform_3, window_bounds = array<i64: 1, 64>}, {pipeline_mode = #tpu.pipeline_mode<synchronous>, transform_indices = @transform_4, window_bounds = array<i64: 1, 64>}, {transform_indices = @transform_5, window_bounds = array<i64: 16, 64>}]} {
    %c0 = arith.constant 0 : index
    %c0_0 = arith.constant 0 : index
    %0 = vector.load %arg1[%c0, %c0_0] : memref<16x32xf32, #tpu.memory_space<vmem>>, vector<16x32xf32>
    %c0_1 = arith.constant 0 : index
    %c0_2 = arith.constant 0 : index
    %1 = vector.load %arg2[%c0_1, %c0_2] : memref<16x32xf32, #tpu.memory_space<vmem>>, vector<16x32xf32>
    %2 = tpu.concatenate %0, %1 in 1 : vector<16x32xf32>, vector<16x32xf32> -> vector<16x64xf32>
    %c0_3 = arith.constant 0 : index
    %c0_4 = arith.constant 0 : index
    %3 = vector.load %arg3[%c0_3, %c0_4] : memref<16x64xf32, #tpu.memory_space<vmem>>, vector<16x64xf32>
    %4 = arith.addf %2, %3 : vector<16x64xf32>
    %cst = arith.constant dense<0.000000e+00> : vector<16xf32>
    %5 = vector.multi_reduction <add>, %4, %cst [1] : vector<16x64xf32> to vector<16xf32>
    %6 = vector.shape_cast %5 : vector<16xf32> to vector<16x1xf32>
    %cst_5 = arith.constant 6.400000e+01 : f32
    %7 = vector.broadcast %cst_5 : f32 to vector<16x1xf32>
    %8 = arith.divf %6, %7 : vector<16x1xf32>
    %9 = vector.broadcast %8 : vector<16x1xf32> to vector<16x64xf32>
    %10 = arith.subf %4, %9 : vector<16x64xf32>
    %11 = arith.mulf %10, %10 : vector<16x64xf32>
    %cst_6 = arith.constant dense<0.000000e+00> : vector<16xf32>
    %12 = vector.multi_reduction <add>, %11, %cst_6 [1] : vector<16x64xf32> to vector<16xf32>
    %13 = vector.shape_cast %12 : vector<16xf32> to vector<16x1xf32>
    %cst_7 = arith.constant 6.400000e+01 : f32
    %14 = vector.broadcast %cst_7 : f32 to vector<16x1xf32>
    %15 = arith.divf %13, %14 : vector<16x1xf32>
    %16 = vector.broadcast %8 : vector<16x1xf32> to vector<16x64xf32>
    %17 = arith.subf %4, %16 : vector<16x64xf32>
    %cst_8 = arith.constant 9.99999974E-6 : f32
    %18 = vector.broadcast %cst_8 : f32 to vector<16x1xf32>
    %19 = arith.addf %15, %18 : vector<16x1xf32>
    %20 = math.rsqrt %19 : vector<16x1xf32>
    %21 = vector.broadcast %20 : vector<16x1xf32> to vector<16x64xf32>
    %22 = arith.mulf %17, %21 : vector<16x64xf32>
    %c0_9 = arith.constant 0 : index
    %c0_10 = arith.constant 0 : index
    %23 = vector.load %arg4[%c0_9, %c0_10] : memref<1x64xf32, #tpu.memory_space<vmem>>, vector<1x64xf32>
    %24 = vector.broadcast %23 : vector<1x64xf32> to vector<16x64xf32>
    %25 = arith.mulf %22, %24 : vector<16x64xf32>
    %c0_11 = arith.constant 0 : index
    %c0_12 = arith.constant 0 : index
    %26 = vector.load %arg5[%c0_11, %c0_12] : memref<1x64xf32, #tpu.memory_space<vmem>>, vector<1x64xf32>
    %27 = vector.broadcast %26 : vector<1x64xf32> to vector<16x64xf32>
    %28 = arith.addf %25, %27 : vector<16x64xf32>
    %c0_13 = arith.constant 0 : index
    %c0_14 = arith.constant 0 : index
    %29 = vector.load %arg6[%c0_13, %c0_14] : memref<16x64xf32, #tpu.memory_space<vmem>>, vector<16x64xf32>
    tpu.vector_store %arg6[%c0_13, %c0_14], %28 {strides = array<i32>} : memref<16x64xf32, #tpu.memory_space<vmem>>, vector<16x64xf32>,
    return
  }
  func.func @transform_0(%arg0: i32) -> (i32, i32) {
    %c0_i32 = arith.constant 0 : i32
    %c0_i32_0 = arith.constant 0 : i32
    return %arg0, %c0_i32 : i32, i32
  }
  func.func @transform_1(%arg0: i32) -> (i32, i32) {
    %c0_i32 = arith.constant 0 : i32
    %c0_i32_0 = arith.constant 0 : i32
    return %arg0, %c0_i32 : i32, i32
  }
  func.func @transform_2(%arg0: i32) -> (i32, i32) {
    %c0_i32 = arith.constant 0 : i32
    %c0_i32_0 = arith.constant 0 : i32
    return %arg0, %c0_i32 : i32, i32
  }
  func.func @transform_3(%arg0: i32) -> (i32, i32) {
    %c0_i32 = arith.constant 0 : i32
    %c0_i32_0 = arith.constant 0 : i32
    %c0_i32_1 = arith.constant 0 : i32
    return %c0_i32, %c0_i32_0 : i32, i32
  }
  func.func @transform_4(%arg0: i32) -> (i32, i32) {
    %c0_i32 = arith.constant 0 : i32
    %c0_i32_0 = arith.constant 0 : i32
    %c0_i32_1 = arith.constant 0 : i32
    return %c0_i32, %c0_i32_0 : i32, i32
  }
  func.func @transform_5(%arg0: i32) -> (i32, i32) {
    %c0_i32 = arith.constant 0 : i32
    %c0_i32_0 = arith.constant 0 : i32
    return %arg0, %c0_i32 : i32, i32
  }
}

module attributes {stable_mosaic.version = 11 : i64} {
  func.func @_linear_kernel(%arg0: i32, %arg1: memref<16x16xf32, #tpu.memory_space<vmem>>, %arg2: memref<16x64xbf16, #tpu.memory_space<vmem>>, %arg3: memref<1x64xf32, #tpu.memory_space<vmem>>, %arg4: memref<16x64xf32, #tpu.memory_space<vmem>>) attributes {dimension_semantics = [#tpu.dimension_semantics<parallel>], iteration_bounds = array<i64: 1>, scalar_prefetch = 0 : i64, scratch_operands = 0 : i64, tpu.core_type = #tpu.core_type<tc>, window_params = [{transform_indices = @transform_0, window_bounds = array<i64: 16, 16>}, {pipeline_mode = #tpu.pipeline_mode<synchronous>, transform_indices = @transform_1, window_bounds = array<i64: 16, 64>}, {pipeline_mode = #tpu.pipeline_mode<synchronous>, transform_indices = @transform_2, window_bounds = array<i64: 1, 64>}, {transform_indices = @transform_3, window_bounds = array<i64: 16, 64>}]} {
    %c0 = arith.constant 0 : index
    %c0_0 = arith.constant 0 : index
    %0 = vector.load %arg1[%c0, %c0_0] : memref<16x16xf32, #tpu.memory_space<vmem>>, vector<16x16xf32>
    %1 = arith.truncf %0 : vector<16x16xf32> to vector<16x16xbf16>
    %c0_1 = arith.constant 0 : index
    %c0_2 = arith.constant 0 : index
    %2 = vector.load %arg2[%c0_1, %c0_2] : memref<16x64xbf16, #tpu.memory_space<vmem>>, vector<16x64xbf16>
    %cst = arith.constant dense<0.000000e+00> : vector<16x64xf32>
    %3 = tpu.matmul %1, %2, %cst {dimension_numbers = #tpu.dot_dimension_numbers<[1], [0], [0], [1], [0, 0, 1, 1], [], []>} : vector<16x16xbf16>, vector<16x64xbf16>, vector<16x64xf32> -> vector<16x64xf32>
    %c0_3 = arith.constant 0 : index
    %c0_4 = arith.constant 0 : index
    %4 = vector.load %arg3[%c0_3, %c0_4] : memref<1x64xf32, #tpu.memory_space<vmem>>, vector<1x64xf32>
    %5 = vector.broadcast %4 : vector<1x64xf32> to vector<16x64xf32>
    %6 = arith.addf %3, %5 : vector<16x64xf32>
    %c0_5 = arith.constant 0 : index
    %c0_6 = arith.constant 0 : index
    %7 = vector.load %arg4[%c0_5, %c0_6] : memref<16x64xf32, #tpu.memory_space<vmem>>, vector<16x64xf32>
    tpu.vector_store %arg4[%c0_5, %c0_6], %6 {strides = array<i32>} : memref<16x64xf32, #tpu.memory_space<vmem>>, vector<16x64xf32>,
    return
  }
  func.func @transform_0(%arg0: i32) -> (i32, i32) {
    %c0_i32 = arith.constant 0 : i32
    %c0_i32_0 = arith.constant 0 : i32
    return %arg0, %c0_i32 : i32, i32
  }
  func.func @transform_1(%arg0: i32) -> (i32, i32) {
    %c0_i32 = arith.constant 0 : i32
    %c0_i32_0 = arith.constant 0 : i32
    %c0_i32_1 = arith.constant 0 : i32
    return %c0_i32, %c0_i32_0 : i32, i32
  }
  func.func @transform_2(%arg0: i32) -> (i32, i32) {
    %c0_i32 = arith.constant 0 : i32
    %c0_i32_0 = arith.constant 0 : i32
    %c0_i32_1 = arith.constant 0 : i32
    return %c0_i32, %c0_i32_0 : i32, i32
  }
  func.func @transform_3(%arg0: i32) -> (i32, i32) {
    %c0_i32 = arith.constant 0 : i32
    %c0_i32_0 = arith.constant 0 : i32
    return %arg0, %c0_i32 : i32, i32
  }
}

module attributes {stable_mosaic.version = 11 : i64} {
  func.func @_bilstm_fused_kernel(%arg0: i32, %arg1: memref<8x2x16xf32, #tpu.memory_space<vmem>>, %arg2: memref<8x2x16xf32, #tpu.memory_space<vmem>>, %arg3: memref<2x16x128xbf16, #tpu.memory_space<vmem>>, %arg4: memref<2x32x128xbf16, #tpu.memory_space<vmem>>, %arg5: memref<2x1x128xf32, #tpu.memory_space<vmem>>, %arg6: memref<8x2x32xf32, #tpu.memory_space<vmem>>, %arg7: memref<8x2x32xf32, #tpu.memory_space<vmem>>, %arg8: memref<8x2x128xf32, #tpu.memory_space<vmem>>, %arg9: memref<8x2x128xf32, #tpu.memory_space<vmem>>, %arg10: memref<2x32xf32, #tpu.memory_space<vmem>>, %arg11: memref<2x32xf32, #tpu.memory_space<vmem>>, %arg12: memref<2x32xf32, #tpu.memory_space<vmem>>, %arg13: memref<2x32xf32, #tpu.memory_space<vmem>>) attributes {dimension_semantics = [#tpu.dimension_semantics<arbitrary>], iteration_bounds = array<i64: 1>, scalar_prefetch = 0 : i64, scratch_operands = 6 : i64, tpu.core_type = #tpu.core_type<tc>, window_params = [{transform_indices = @transform_0, window_bounds = array<i64: 8, 2, 16>}, {transform_indices = @transform_1, window_bounds = array<i64: 8, 2, 16>}, {pipeline_mode = #tpu.pipeline_mode<synchronous>, transform_indices = @transform_2, window_bounds = array<i64: 2, 16, 128>}, {pipeline_mode = #tpu.pipeline_mode<synchronous>, transform_indices = @transform_3, window_bounds = array<i64: 2, 32, 128>}, {pipeline_mode = #tpu.pipeline_mode<synchronous>, transform_indices = @transform_4, window_bounds = array<i64: 2, 1, 128>}, {transform_indices = @transform_5, window_bounds = array<i64: 8, 2, 32>}, {transform_indices = @transform_6, window_bounds = array<i64: 8, 2, 32>}]} {
    %c0_i32 = arith.constant 0 : i32
    %0 = arith.cmpi eq, %arg0, %c0_i32 : i32
    %1 = arith.extui %0 : i1 to i32
    %c0_i32_0 = arith.constant 0 : i32
    %2 = arith.cmpi ne, %1, %c0_i32_0 : i32
    scf.if %2 {
      %cst_312 = arith.constant 0.000000e+00 : f32
      %495 = vector.broadcast %cst_312 : f32 to vector<2x32xf32>
      %c0_313 = arith.constant 0 : index
      %c0_314 = arith.constant 0 : index
      %496 = vector.load %arg10[%c0_313, %c0_314] : memref<2x32xf32, #tpu.memory_space<vmem>>, vector<2x32xf32>
      tpu.vector_store %arg10[%c0_313, %c0_314], %495 {strides = array<i32>} : memref<2x32xf32, #tpu.memory_space<vmem>>, vector<2x32xf32>,
      %cst_315 = arith.constant 0.000000e+00 : f32
      %497 = vector.broadcast %cst_315 : f32 to vector<2x32xf32>
      %c0_316 = arith.constant 0 : index
      %c0_317 = arith.constant 0 : index
      %498 = vector.load %arg11[%c0_316, %c0_317] : memref<2x32xf32, #tpu.memory_space<vmem>>, vector<2x32xf32>
      tpu.vector_store %arg11[%c0_316, %c0_317], %497 {strides = array<i32>} : memref<2x32xf32, #tpu.memory_space<vmem>>, vector<2x32xf32>,
      %cst_318 = arith.constant 0.000000e+00 : f32
      %499 = vector.broadcast %cst_318 : f32 to vector<2x32xf32>
      %c0_319 = arith.constant 0 : index
      %c0_320 = arith.constant 0 : index
      %500 = vector.load %arg12[%c0_319, %c0_320] : memref<2x32xf32, #tpu.memory_space<vmem>>, vector<2x32xf32>
      tpu.vector_store %arg12[%c0_319, %c0_320], %499 {strides = array<i32>} : memref<2x32xf32, #tpu.memory_space<vmem>>, vector<2x32xf32>,
      %cst_321 = arith.constant 0.000000e+00 : f32
      %501 = vector.broadcast %cst_321 : f32 to vector<2x32xf32>
      %c0_322 = arith.constant 0 : index
      %c0_323 = arith.constant 0 : index
      %502 = vector.load %arg13[%c0_322, %c0_323] : memref<2x32xf32, #tpu.memory_space<vmem>>, vector<2x32xf32>
      tpu.vector_store %arg13[%c0_322, %c0_323], %501 {strides = array<i32>} : memref<2x32xf32, #tpu.memory_space<vmem>>, vector<2x32xf32>,
    } else {
    }
    %c0 = arith.constant 0 : index
    %c0_1 = arith.constant 0 : index
    %c0_2 = arith.constant 0 : index
    %3 = vector.load %arg1[%c0, %c0_1, %c0_2] : memref<8x2x16xf32, #tpu.memory_space<vmem>>, vector<8x2x16xf32>
    %4 = vector.shape_cast %3 : vector<8x2x16xf32> to vector<16x16xf32>
    %5 = arith.truncf %4 : vector<16x16xf32> to vector<16x16xbf16>
    %c0_3 = arith.constant 0 : index
    %c0_4 = arith.constant 0 : index
    %c0_5 = arith.constant 0 : index
    %6 = vector.load %arg2[%c0_3, %c0_4, %c0_5] : memref<8x2x16xf32, #tpu.memory_space<vmem>>, vector<8x2x16xf32>
    %7 = vector.shape_cast %6 : vector<8x2x16xf32> to vector<16x16xf32>
    %8 = arith.truncf %7 : vector<16x16xf32> to vector<16x16xbf16>
    %c0_6 = arith.constant 0 : index
    %c0_7 = arith.constant 0 : index
    %c0_8 = arith.constant 0 : index
    %9 = vector.load %arg3[%c0_6, %c0_7, %c0_8] : memref<2x16x128xbf16, #tpu.memory_space<vmem>>, vector<1x16x128xbf16>
    %10 = vector.shape_cast %9 : vector<1x16x128xbf16> to vector<16x128xbf16>
    %cst = arith.constant dense<0.000000e+00> : vector<16x128xf32>
    %11 = tpu.matmul %5, %10, %cst {dimension_numbers = #tpu.dot_dimension_numbers<[1], [0], [0], [1], [0, 0, 1, 1], [], []>} : vector<16x16xbf16>, vector<16x128xbf16>, vector<16x128xf32> -> vector<16x128xf32>
    %c0_9 = arith.constant 0 : index
    %c0_10 = arith.constant 0 : index
    %c0_11 = arith.constant 0 : index
    %12 = vector.load %arg5[%c0_9, %c0_10, %c0_11] : memref<2x1x128xf32, #tpu.memory_space<vmem>>, vector<1x1x128xf32>
    %13 = vector.shape_cast %12 : vector<1x1x128xf32> to vector<1x128xf32>
    %14 = vector.broadcast %13 : vector<1x128xf32> to vector<16x128xf32>
    %15 = arith.addf %11, %14 : vector<16x128xf32>
    %16 = vector.shape_cast %15 : vector<16x128xf32> to vector<8x2x128xf32>
    %c0_12 = arith.constant 0 : index
    %c0_13 = arith.constant 0 : index
    %c0_14 = arith.constant 0 : index
    %17 = vector.load %arg8[%c0_12, %c0_13, %c0_14] : memref<8x2x128xf32, #tpu.memory_space<vmem>>, vector<8x2x128xf32>
    tpu.vector_store %arg8[%c0_12, %c0_13, %c0_14], %16 {strides = array<i32>} : memref<8x2x128xf32, #tpu.memory_space<vmem>>, vector<8x2x128xf32>,
    %c1 = arith.constant 1 : index
    %c0_15 = arith.constant 0 : index
    %c0_16 = arith.constant 0 : index
    %18 = vector.load %arg3[%c1, %c0_15, %c0_16] : memref<2x16x128xbf16, #tpu.memory_space<vmem>>, vector<1x16x128xbf16>
    %19 = vector.shape_cast %18 : vector<1x16x128xbf16> to vector<16x128xbf16>
    %cst_17 = arith.constant dense<0.000000e+00> : vector<16x128xf32>
    %20 = tpu.matmul %8, %19, %cst_17 {dimension_numbers = #tpu.dot_dimension_numbers<[1], [0], [0], [1], [0, 0, 1, 1], [], []>} : vector<16x16xbf16>, vector<16x128xbf16>, vector<16x128xf32> -> vector<16x128xf32>
    %c1_18 = arith.constant 1 : index
    %c0_19 = arith.constant 0 : index
    %c0_20 = arith.constant 0 : index
    %21 = vector.load %arg5[%c1_18, %c0_19, %c0_20] : memref<2x1x128xf32, #tpu.memory_space<vmem>>, vector<1x1x128xf32>
    %22 = vector.shape_cast %21 : vector<1x1x128xf32> to vector<1x128xf32>
    %23 = vector.broadcast %22 : vector<1x128xf32> to vector<16x128xf32>
    %24 = arith.addf %20, %23 : vector<16x128xf32>
    %25 = vector.shape_cast %24 : vector<16x128xf32> to vector<8x2x128xf32>
    %c0_21 = arith.constant 0 : index
    %c0_22 = arith.constant 0 : index
    %c0_23 = arith.constant 0 : index
    %26 = vector.load %arg9[%c0_21, %c0_22, %c0_23] : memref<8x2x128xf32, #tpu.memory_space<vmem>>, vector<8x2x128xf32>
    tpu.vector_store %arg9[%c0_21, %c0_22, %c0_23], %25 {strides = array<i32>} : memref<8x2x128xf32, #tpu.memory_space<vmem>>, vector<8x2x128xf32>,
    %c0_24 = arith.constant 0 : index
    %c0_25 = arith.constant 0 : index
    %c0_26 = arith.constant 0 : index
    %27 = vector.load %arg4[%c0_24, %c0_25, %c0_26] : memref<2x32x128xbf16, #tpu.memory_space<vmem>>, vector<1x32x128xbf16>
    %28 = vector.shape_cast %27 : vector<1x32x128xbf16> to vector<32x128xbf16>
    %c1_27 = arith.constant 1 : index
    %c0_28 = arith.constant 0 : index
    %c0_29 = arith.constant 0 : index
    %29 = vector.load %arg4[%c1_27, %c0_28, %c0_29] : memref<2x32x128xbf16, #tpu.memory_space<vmem>>, vector<1x32x128xbf16>
    %30 = vector.shape_cast %29 : vector<1x32x128xbf16> to vector<32x128xbf16>
    %c0_30 = arith.constant 0 : index
    %c0_31 = arith.constant 0 : index
    %c0_32 = arith.constant 0 : index
    %31 = vector.load %arg8[%c0_30, %c0_31, %c0_32] : memref<8x2x128xf32, #tpu.memory_space<vmem>>, vector<1x2x128xf32>
    %32 = vector.shape_cast %31 : vector<1x2x128xf32> to vector<2x128xf32>
    %c0_33 = arith.constant 0 : index
    %c0_34 = arith.constant 0 : index
    %33 = vector.load %arg10[%c0_33, %c0_34] : memref<2x32xf32, #tpu.memory_space<vmem>>, vector<2x32xf32>
    %34 = arith.truncf %33 : vector<2x32xf32> to vector<2x32xbf16>
    %cst_35 = arith.constant dense<0.000000e+00> : vector<2x128xf32>
    %35 = tpu.matmul %34, %28, %cst_35 {dimension_numbers = #tpu.dot_dimension_numbers<[1], [0], [0], [1], [0, 0, 1, 1], [], []>} : vector<2x32xbf16>, vector<32x128xbf16>, vector<2x128xf32> -> vector<2x128xf32>
    %36 = arith.addf %32, %35 : vector<2x128xf32>
    %c7 = arith.constant 7 : index
    %c0_36 = arith.constant 0 : index
    %c0_37 = arith.constant 0 : index
    %37 = vector.load %arg9[%c7, %c0_36, %c0_37] : memref<8x2x128xf32, #tpu.memory_space<vmem>>, vector<1x2x128xf32>
    %38 = vector.shape_cast %37 : vector<1x2x128xf32> to vector<2x128xf32>
    %c0_38 = arith.constant 0 : index
    %c0_39 = arith.constant 0 : index
    %39 = vector.load %arg11[%c0_38, %c0_39] : memref<2x32xf32, #tpu.memory_space<vmem>>, vector<2x32xf32>
    %40 = arith.truncf %39 : vector<2x32xf32> to vector<2x32xbf16>
    %cst_40 = arith.constant dense<0.000000e+00> : vector<2x128xf32>
    %41 = tpu.matmul %40, %30, %cst_40 {dimension_numbers = #tpu.dot_dimension_numbers<[1], [0], [0], [1], [0, 0, 1, 1], [], []>} : vector<2x32xbf16>, vector<32x128xbf16>, vector<2x128xf32> -> vector<2x128xf32>
    %42 = arith.addf %38, %41 : vector<2x128xf32>
    %cst_41 = arith.constant 0.000000e+00 : f32
    %43 = vector.broadcast %cst_41 : f32 to vector<2x128xf32>
    %44 = arith.subf %43, %36 : vector<2x128xf32>
    %45 = math.exp %44 : vector<2x128xf32>
    %cst_42 = arith.constant 1.000000e+00 : f32
    %46 = vector.broadcast %cst_42 : f32 to vector<2x128xf32>
    %47 = arith.addf %46, %45 : vector<2x128xf32>
    %cst_43 = arith.constant 1.000000e+00 : f32
    %48 = vector.broadcast %cst_43 : f32 to vector<2x128xf32>
    %49 = arith.divf %48, %47 : vector<2x128xf32>
    %cst_44 = arith.constant 0.000000e+00 : f32
    %50 = vector.broadcast %cst_44 : f32 to vector<2x128xf32>
    %51 = arith.subf %50, %42 : vector<2x128xf32>
    %52 = math.exp %51 : vector<2x128xf32>
    %cst_45 = arith.constant 1.000000e+00 : f32
    %53 = vector.broadcast %cst_45 : f32 to vector<2x128xf32>
    %54 = arith.addf %53, %52 : vector<2x128xf32>
    %cst_46 = arith.constant 1.000000e+00 : f32
    %55 = vector.broadcast %cst_46 : f32 to vector<2x128xf32>
    %56 = arith.divf %55, %54 : vector<2x128xf32>
    %57 = vector.extract_strided_slice %36 {offsets = [0, 64], sizes = [2, 32], strides = [1, 1]} : vector<2x128xf32> to vector<2x32xf32>
    %58 = math.tanh %57 : vector<2x32xf32>
    %59 = vector.extract_strided_slice %42 {offsets = [0, 64], sizes = [2, 32], strides = [1, 1]} : vector<2x128xf32> to vector<2x32xf32>
    %60 = math.tanh %59 : vector<2x32xf32>
    %61 = vector.extract_strided_slice %49 {offsets = [0, 32], sizes = [2, 32], strides = [1, 1]} : vector<2x128xf32> to vector<2x32xf32>
    %c0_47 = arith.constant 0 : index
    %c0_48 = arith.constant 0 : index
    %62 = vector.load %arg12[%c0_47, %c0_48] : memref<2x32xf32, #tpu.memory_space<vmem>>, vector<2x32xf32>
    %63 = arith.mulf %61, %62 : vector<2x32xf32>
    %64 = vector.extract_strided_slice %49 {offsets = [0, 0], sizes = [2, 32], strides = [1, 1]} : vector<2x128xf32> to vector<2x32xf32>
    %65 = arith.mulf %64, %58 : vector<2x32xf32>
    %66 = arith.addf %63, %65 : vector<2x32xf32>
    %67 = vector.extract_strided_slice %56 {offsets = [0, 32], sizes = [2, 32], strides = [1, 1]} : vector<2x128xf32> to vector<2x32xf32>
    %c0_49 = arith.constant 0 : index
    %c0_50 = arith.constant 0 : index
    %68 = vector.load %arg13[%c0_49, %c0_50] : memref<2x32xf32, #tpu.memory_space<vmem>>, vector<2x32xf32>
    %69 = arith.mulf %67, %68 : vector<2x32xf32>
    %70 = vector.extract_strided_slice %56 {offsets = [0, 0], sizes = [2, 32], strides = [1, 1]} : vector<2x128xf32> to vector<2x32xf32>
    %71 = arith.mulf %70, %60 : vector<2x32xf32>
    %72 = arith.addf %69, %71 : vector<2x32xf32>
    %73 = vector.extract_strided_slice %49 {offsets = [0, 96], sizes = [2, 32], strides = [1, 1]} : vector<2x128xf32> to vector<2x32xf32>
    %74 = math.tanh %66 : vector<2x32xf32>
    %75 = arith.mulf %73, %74 : vector<2x32xf32>
    %76 = vector.extract_strided_slice %56 {offsets = [0, 96], sizes = [2, 32], strides = [1, 1]} : vector<2x128xf32> to vector<2x32xf32>
    %77 = math.tanh %72 : vector<2x32xf32>
    %78 = arith.mulf %76, %77 : vector<2x32xf32>
    %c0_51 = arith.constant 0 : index
    %c0_52 = arith.constant 0 : index
    %79 = vector.load %arg12[%c0_51, %c0_52] : memref<2x32xf32, #tpu.memory_space<vmem>>, vector<2x32xf32>
    tpu.vector_store %arg12[%c0_51, %c0_52], %66 {strides = array<i32>} : memref<2x32xf32, #tpu.memory_space<vmem>>, vector<2x32xf32>,
    %c0_53 = arith.constant 0 : index
    %c0_54 = arith.constant 0 : index
    %80 = vector.load %arg13[%c0_53, %c0_54] : memref<2x32xf32, #tpu.memory_space<vmem>>, vector<2x32xf32>
    tpu.vector_store %arg13[%c0_53, %c0_54], %72 {strides = array<i32>} : memref<2x32xf32, #tpu.memory_space<vmem>>, vector<2x32xf32>,
    %c0_55 = arith.constant 0 : index
    %c0_56 = arith.constant 0 : index
    %81 = vector.load %arg10[%c0_55, %c0_56] : memref<2x32xf32, #tpu.memory_space<vmem>>, vector<2x32xf32>
    tpu.vector_store %arg10[%c0_55, %c0_56], %75 {strides = array<i32>} : memref<2x32xf32, #tpu.memory_space<vmem>>, vector<2x32xf32>,
    %c0_57 = arith.constant 0 : index
    %c0_58 = arith.constant 0 : index
    %82 = vector.load %arg11[%c0_57, %c0_58] : memref<2x32xf32, #tpu.memory_space<vmem>>, vector<2x32xf32>
    tpu.vector_store %arg11[%c0_57, %c0_58], %78 {strides = array<i32>} : memref<2x32xf32, #tpu.memory_space<vmem>>, vector<2x32xf32>,
    %c0_59 = arith.constant 0 : index
    %c0_60 = arith.constant 0 : index
    %c0_61 = arith.constant 0 : index
    %83 = vector.load %arg6[%c0_59, %c0_60, %c0_61] : memref<8x2x32xf32, #tpu.memory_space<vmem>>, vector<1x2x32xf32>
    %84 = vector.shape_cast %83 : vector<1x2x32xf32> to vector<2x32xf32>
    %85 = vector.shape_cast %75 : vector<2x32xf32> to vector<1x2x32xf32>
    tpu.vector_store %arg6[%c0_59, %c0_60, %c0_61], %85 {strides = array<i32>} : memref<8x2x32xf32, #tpu.memory_space<vmem>>, vector<1x2x32xf32>,
    %c7_62 = arith.constant 7 : index
    %c0_63 = arith.constant 0 : index
    %c0_64 = arith.constant 0 : index
    %86 = vector.load %arg7[%c7_62, %c0_63, %c0_64] : memref<8x2x32xf32, #tpu.memory_space<vmem>>, vector<1x2x32xf32>
    %87 = vector.shape_cast %86 : vector<1x2x32xf32> to vector<2x32xf32>
    %88 = vector.shape_cast %78 : vector<2x32xf32> to vector<1x2x32xf32>
    tpu.vector_store %arg7[%c7_62, %c0_63, %c0_64], %88 {strides = array<i32>} : memref<8x2x32xf32, #tpu.memory_space<vmem>>, vector<1x2x32xf32>,
    %c1_65 = arith.constant 1 : index
    %c0_66 = arith.constant 0 : index
    %c0_67 = arith.constant 0 : index
    %89 = vector.load %arg8[%c1_65, %c0_66, %c0_67] : memref<8x2x128xf32, #tpu.memory_space<vmem>>, vector<1x2x128xf32>
    %90 = vector.shape_cast %89 : vector<1x2x128xf32> to vector<2x128xf32>
    %c0_68 = arith.constant 0 : index
    %c0_69 = arith.constant 0 : index
    %91 = vector.load %arg10[%c0_68, %c0_69] : memref<2x32xf32, #tpu.memory_space<vmem>>, vector<2x32xf32>
    %92 = arith.truncf %91 : vector<2x32xf32> to vector<2x32xbf16>
    %cst_70 = arith.constant dense<0.000000e+00> : vector<2x128xf32>
    %93 = tpu.matmul %92, %28, %cst_70 {dimension_numbers = #tpu.dot_dimension_numbers<[1], [0], [0], [1], [0, 0, 1, 1], [], []>} : vector<2x32xbf16>, vector<32x128xbf16>, vector<2x128xf32> -> vector<2x128xf32>
    %94 = arith.addf %90, %93 : vector<2x128xf32>
    %c6 = arith.constant 6 : index
    %c0_71 = arith.constant 0 : index
    %c0_72 = arith.constant 0 : index
    %95 = vector.load %arg9[%c6, %c0_71, %c0_72] : memref<8x2x128xf32, #tpu.memory_space<vmem>>, vector<1x2x128xf32>
    %96 = vector.shape_cast %95 : vector<1x2x128xf32> to vector<2x128xf32>
    %c0_73 = arith.constant 0 : index
    %c0_74 = arith.constant 0 : index
    %97 = vector.load %arg11[%c0_73, %c0_74] : memref<2x32xf32, #tpu.memory_space<vmem>>, vector<2x32xf32>
    %98 = arith.truncf %97 : vector<2x32xf32> to vector<2x32xbf16>
    %cst_75 = arith.constant dense<0.000000e+00> : vector<2x128xf32>
    %99 = tpu.matmul %98, %30, %cst_75 {dimension_numbers = #tpu.dot_dimension_numbers<[1], [0], [0], [1], [0, 0, 1, 1], [], []>} : vector<2x32xbf16>, vector<32x128xbf16>, vector<2x128xf32> -> vector<2x128xf32>
    %100 = arith.addf %96, %99 : vector<2x128xf32>
    %cst_76 = arith.constant 0.000000e+00 : f32
    %101 = vector.broadcast %cst_76 : f32 to vector<2x128xf32>
    %102 = arith.subf %101, %94 : vector<2x128xf32>
    %103 = math.exp %102 : vector<2x128xf32>
    %cst_77 = arith.constant 1.000000e+00 : f32
    %104 = vector.broadcast %cst_77 : f32 to vector<2x128xf32>
    %105 = arith.addf %104, %103 : vector<2x128xf32>
    %cst_78 = arith.constant 1.000000e+00 : f32
    %106 = vector.broadcast %cst_78 : f32 to vector<2x128xf32>
    %107 = arith.divf %106, %105 : vector<2x128xf32>
    %cst_79 = arith.constant 0.000000e+00 : f32
    %108 = vector.broadcast %cst_79 : f32 to vector<2x128xf32>
    %109 = arith.subf %108, %100 : vector<2x128xf32>
    %110 = math.exp %109 : vector<2x128xf32>
    %cst_80 = arith.constant 1.000000e+00 : f32
    %111 = vector.broadcast %cst_80 : f32 to vector<2x128xf32>
    %112 = arith.addf %111, %110 : vector<2x128xf32>
    %cst_81 = arith.constant 1.000000e+00 : f32
    %113 = vector.broadcast %cst_81 : f32 to vector<2x128xf32>
    %114 = arith.divf %113, %112 : vector<2x128xf32>
    %115 = vector.extract_strided_slice %94 {offsets = [0, 64], sizes = [2, 32], strides = [1, 1]} : vector<2x128xf32> to vector<2x32xf32>
    %116 = math.tanh %115 : vector<2x32xf32>
    %117 = vector.extract_strided_slice %100 {offsets = [0, 64], sizes = [2, 32], strides = [1, 1]} : vector<2x128xf32> to vector<2x32xf32>
    %118 = math.tanh %117 : vector<2x32xf32>
    %119 = vector.extract_strided_slice %107 {offsets = [0, 32], sizes = [2, 32], strides = [1, 1]} : vector<2x128xf32> to vector<2x32xf32>
    %c0_82 = arith.constant 0 : index
    %c0_83 = arith.constant 0 : index
    %120 = vector.load %arg12[%c0_82, %c0_83] : memref<2x32xf32, #tpu.memory_space<vmem>>, vector<2x32xf32>
    %121 = arith.mulf %119, %120 : vector<2x32xf32>
    %122 = vector.extract_strided_slice %107 {offsets = [0, 0], sizes = [2, 32], strides = [1, 1]} : vector<2x128xf32> to vector<2x32xf32>
    %123 = arith.mulf %122, %116 : vector<2x32xf32>
    %124 = arith.addf %121, %123 : vector<2x32xf32>
    %125 = vector.extract_strided_slice %114 {offsets = [0, 32], sizes = [2, 32], strides = [1, 1]} : vector<2x128xf32> to vector<2x32xf32>
    %c0_84 = arith.constant 0 : index
    %c0_85 = arith.constant 0 : index
    %126 = vector.load %arg13[%c0_84, %c0_85] : memref<2x32xf32, #tpu.memory_space<vmem>>, vector<2x32xf32>
    %127 = arith.mulf %125, %126 : vector<2x32xf32>
    %128 = vector.extract_strided_slice %114 {offsets = [0, 0], sizes = [2, 32], strides = [1, 1]} : vector<2x128xf32> to vector<2x32xf32>
    %129 = arith.mulf %128, %118 : vector<2x32xf32>
    %130 = arith.addf %127, %129 : vector<2x32xf32>
    %131 = vector.extract_strided_slice %107 {offsets = [0, 96], sizes = [2, 32], strides = [1, 1]} : vector<2x128xf32> to vector<2x32xf32>
    %132 = math.tanh %124 : vector<2x32xf32>
    %133 = arith.mulf %131, %132 : vector<2x32xf32>
    %134 = vector.extract_strided_slice %114 {offsets = [0, 96], sizes = [2, 32], strides = [1, 1]} : vector<2x128xf32> to vector<2x32xf32>
    %135 = math.tanh %130 : vector<2x32xf32>
    %136 = arith.mulf %134, %135 : vector<2x32xf32>
    %c0_86 = arith.constant 0 : index
    %c0_87 = arith.constant 0 : index
    %137 = vector.load %arg12[%c0_86, %c0_87] : memref<2x32xf32, #tpu.memory_space<vmem>>, vector<2x32xf32>
    tpu.vector_store %arg12[%c0_86, %c0_87], %124 {strides = array<i32>} : memref<2x32xf32, #tpu.memory_space<vmem>>, vector<2x32xf32>,
    %c0_88 = arith.constant 0 : index
    %c0_89 = arith.constant 0 : index
    %138 = vector.load %arg13[%c0_88, %c0_89] : memref<2x32xf32, #tpu.memory_space<vmem>>, vector<2x32xf32>
    tpu.vector_store %arg13[%c0_88, %c0_89], %130 {strides = array<i32>} : memref<2x32xf32, #tpu.memory_space<vmem>>, vector<2x32xf32>,
    %c0_90 = arith.constant 0 : index
    %c0_91 = arith.constant 0 : index
    %139 = vector.load %arg10[%c0_90, %c0_91] : memref<2x32xf32, #tpu.memory_space<vmem>>, vector<2x32xf32>
    tpu.vector_store %arg10[%c0_90, %c0_91], %133 {strides = array<i32>} : memref<2x32xf32, #tpu.memory_space<vmem>>, vector<2x32xf32>,
    %c0_92 = arith.constant 0 : index
    %c0_93 = arith.constant 0 : index
    %140 = vector.load %arg11[%c0_92, %c0_93] : memref<2x32xf32, #tpu.memory_space<vmem>>, vector<2x32xf32>
    tpu.vector_store %arg11[%c0_92, %c0_93], %136 {strides = array<i32>} : memref<2x32xf32, #tpu.memory_space<vmem>>, vector<2x32xf32>,
    %c1_94 = arith.constant 1 : index
    %c0_95 = arith.constant 0 : index
    %c0_96 = arith.constant 0 : index
    %141 = vector.load %arg6[%c1_94, %c0_95, %c0_96] : memref<8x2x32xf32, #tpu.memory_space<vmem>>, vector<1x2x32xf32>
    %142 = vector.shape_cast %141 : vector<1x2x32xf32> to vector<2x32xf32>
    %143 = vector.shape_cast %133 : vector<2x32xf32> to vector<1x2x32xf32>
    tpu.vector_store %arg6[%c1_94, %c0_95, %c0_96], %143 {strides = array<i32>} : memref<8x2x32xf32, #tpu.memory_space<vmem>>, vector<1x2x32xf32>,
    %c6_97 = arith.constant 6 : index
    %c0_98 = arith.constant 0 : index
    %c0_99 = arith.constant 0 : index
    %144 = vector.load %arg7[%c6_97, %c0_98, %c0_99] : memref<8x2x32xf32, #tpu.memory_space<vmem>>, vector<1x2x32xf32>
    %145 = vector.shape_cast %144 : vector<1x2x32xf32> to vector<2x32xf32>
    %146 = vector.shape_cast %136 : vector<2x32xf32> to vector<1x2x32xf32>
    tpu.vector_store %arg7[%c6_97, %c0_98, %c0_99], %146 {strides = array<i32>} : memref<8x2x32xf32, #tpu.memory_space<vmem>>, vector<1x2x32xf32>,
    %c2 = arith.constant 2 : index
    %c0_100 = arith.constant 0 : index
    %c0_101 = arith.constant 0 : index
    %147 = vector.load %arg8[%c2, %c0_100, %c0_101] : memref<8x2x128xf32, #tpu.memory_space<vmem>>, vector<1x2x128xf32>
    %148 = vector.shape_cast %147 : vector<1x2x128xf32> to vector<2x128xf32>
    %c0_102 = arith.constant 0 : index
    %c0_103 = arith.constant 0 : index
    %149 = vector.load %arg10[%c0_102, %c0_103] : memref<2x32xf32, #tpu.memory_space<vmem>>, vector<2x32xf32>
    %150 = arith.truncf %149 : vector<2x32xf32> to vector<2x32xbf16>
    %cst_104 = arith.constant dense<0.000000e+00> : vector<2x128xf32>
    %151 = tpu.matmul %150, %28, %cst_104 {dimension_numbers = #tpu.dot_dimension_numbers<[1], [0], [0], [1], [0, 0, 1, 1], [], []>} : vector<2x32xbf16>, vector<32x128xbf16>, vector<2x128xf32> -> vector<2x128xf32>
    %152 = arith.addf %148, %151 : vector<2x128xf32>
    %c5 = arith.constant 5 : index
    %c0_105 = arith.constant 0 : index
    %c0_106 = arith.constant 0 : index
    %153 = vector.load %arg9[%c5, %c0_105, %c0_106] : memref<8x2x128xf32, #tpu.memory_space<vmem>>, vector<1x2x128xf32>
    %154 = vector.shape_cast %153 : vector<1x2x128xf32> to vector<2x128xf32>
    %c0_107 = arith.constant 0 : index
    %c0_108 = arith.constant 0 : index
    %155 = vector.load %arg11[%c0_107, %c0_108] : memref<2x32xf32, #tpu.memory_space<vmem>>, vector<2x32xf32>
    %156 = arith.truncf %155 : vector<2x32xf32> to vector<2x32xbf16>
    %cst_109 = arith.constant dense<0.000000e+00> : vector<2x128xf32>
    %157 = tpu.matmul %156, %30, %cst_109 {dimension_numbers = #tpu.dot_dimension_numbers<[1], [0], [0], [1], [0, 0, 1, 1], [], []>} : vector<2x32xbf16>, vector<32x128xbf16>, vector<2x128xf32> -> vector<2x128xf32>
    %158 = arith.addf %154, %157 : vector<2x128xf32>
    %cst_110 = arith.constant 0.000000e+00 : f32
    %159 = vector.broadcast %cst_110 : f32 to vector<2x128xf32>
    %160 = arith.subf %159, %152 : vector<2x128xf32>
    %161 = math.exp %160 : vector<2x128xf32>
    %cst_111 = arith.constant 1.000000e+00 : f32
    %162 = vector.broadcast %cst_111 : f32 to vector<2x128xf32>
    %163 = arith.addf %162, %161 : vector<2x128xf32>
    %cst_112 = arith.constant 1.000000e+00 : f32
    %164 = vector.broadcast %cst_112 : f32 to vector<2x128xf32>
    %165 = arith.divf %164, %163 : vector<2x128xf32>
    %cst_113 = arith.constant 0.000000e+00 : f32
    %166 = vector.broadcast %cst_113 : f32 to vector<2x128xf32>
    %167 = arith.subf %166, %158 : vector<2x128xf32>
    %168 = math.exp %167 : vector<2x128xf32>
    %cst_114 = arith.constant 1.000000e+00 : f32
    %169 = vector.broadcast %cst_114 : f32 to vector<2x128xf32>
    %170 = arith.addf %169, %168 : vector<2x128xf32>
    %cst_115 = arith.constant 1.000000e+00 : f32
    %171 = vector.broadcast %cst_115 : f32 to vector<2x128xf32>
    %172 = arith.divf %171, %170 : vector<2x128xf32>
    %173 = vector.extract_strided_slice %152 {offsets = [0, 64], sizes = [2, 32], strides = [1, 1]} : vector<2x128xf32> to vector<2x32xf32>
    %174 = math.tanh %173 : vector<2x32xf32>
    %175 = vector.extract_strided_slice %158 {offsets = [0, 64], sizes = [2, 32], strides = [1, 1]} : vector<2x128xf32> to vector<2x32xf32>
    %176 = math.tanh %175 : vector<2x32xf32>
    %177 = vector.extract_strided_slice %165 {offsets = [0, 32], sizes = [2, 32], strides = [1, 1]} : vector<2x128xf32> to vector<2x32xf32>
    %c0_116 = arith.constant 0 : index
    %c0_117 = arith.constant 0 : index
    %178 = vector.load %arg12[%c0_116, %c0_117] : memref<2x32xf32, #tpu.memory_space<vmem>>, vector<2x32xf32>
    %179 = arith.mulf %177, %178 : vector<2x32xf32>
    %180 = vector.extract_strided_slice %165 {offsets = [0, 0], sizes = [2, 32], strides = [1, 1]} : vector<2x128xf32> to vector<2x32xf32>
    %181 = arith.mulf %180, %174 : vector<2x32xf32>
    %182 = arith.addf %179, %181 : vector<2x32xf32>
    %183 = vector.extract_strided_slice %172 {offsets = [0, 32], sizes = [2, 32], strides = [1, 1]} : vector<2x128xf32> to vector<2x32xf32>
    %c0_118 = arith.constant 0 : index
    %c0_119 = arith.constant 0 : index
    %184 = vector.load %arg13[%c0_118, %c0_119] : memref<2x32xf32, #tpu.memory_space<vmem>>, vector<2x32xf32>
    %185 = arith.mulf %183, %184 : vector<2x32xf32>
    %186 = vector.extract_strided_slice %172 {offsets = [0, 0], sizes = [2, 32], strides = [1, 1]} : vector<2x128xf32> to vector<2x32xf32>
    %187 = arith.mulf %186, %176 : vector<2x32xf32>
    %188 = arith.addf %185, %187 : vector<2x32xf32>
    %189 = vector.extract_strided_slice %165 {offsets = [0, 96], sizes = [2, 32], strides = [1, 1]} : vector<2x128xf32> to vector<2x32xf32>
    %190 = math.tanh %182 : vector<2x32xf32>
    %191 = arith.mulf %189, %190 : vector<2x32xf32>
    %192 = vector.extract_strided_slice %172 {offsets = [0, 96], sizes = [2, 32], strides = [1, 1]} : vector<2x128xf32> to vector<2x32xf32>
    %193 = math.tanh %188 : vector<2x32xf32>
    %194 = arith.mulf %192, %193 : vector<2x32xf32>
    %c0_120 = arith.constant 0 : index
    %c0_121 = arith.constant 0 : index
    %195 = vector.load %arg12[%c0_120, %c0_121] : memref<2x32xf32, #tpu.memory_space<vmem>>, vector<2x32xf32>
    tpu.vector_store %arg12[%c0_120, %c0_121], %182 {strides = array<i32>} : memref<2x32xf32, #tpu.memory_space<vmem>>, vector<2x32xf32>,
    %c0_122 = arith.constant 0 : index
    %c0_123 = arith.constant 0 : index
    %196 = vector.load %arg13[%c0_122, %c0_123] : memref<2x32xf32, #tpu.memory_space<vmem>>, vector<2x32xf32>
    tpu.vector_store %arg13[%c0_122, %c0_123], %188 {strides = array<i32>} : memref<2x32xf32, #tpu.memory_space<vmem>>, vector<2x32xf32>,
    %c0_124 = arith.constant 0 : index
    %c0_125 = arith.constant 0 : index
    %197 = vector.load %arg10[%c0_124, %c0_125] : memref<2x32xf32, #tpu.memory_space<vmem>>, vector<2x32xf32>
    tpu.vector_store %arg10[%c0_124, %c0_125], %191 {strides = array<i32>} : memref<2x32xf32, #tpu.memory_space<vmem>>, vector<2x32xf32>,
    %c0_126 = arith.constant 0 : index
    %c0_127 = arith.constant 0 : index
    %198 = vector.load %arg11[%c0_126, %c0_127] : memref<2x32xf32, #tpu.memory_space<vmem>>, vector<2x32xf32>
    tpu.vector_store %arg11[%c0_126, %c0_127], %194 {strides = array<i32>} : memref<2x32xf32, #tpu.memory_space<vmem>>, vector<2x32xf32>,
    %c2_128 = arith.constant 2 : index
    %c0_129 = arith.constant 0 : index
    %c0_130 = arith.constant 0 : index
    %199 = vector.load %arg6[%c2_128, %c0_129, %c0_130] : memref<8x2x32xf32, #tpu.memory_space<vmem>>, vector<1x2x32xf32>
    %200 = vector.shape_cast %199 : vector<1x2x32xf32> to vector<2x32xf32>
    %201 = vector.shape_cast %191 : vector<2x32xf32> to vector<1x2x32xf32>
    tpu.vector_store %arg6[%c2_128, %c0_129, %c0_130], %201 {strides = array<i32>} : memref<8x2x32xf32, #tpu.memory_space<vmem>>, vector<1x2x32xf32>,
    %c5_131 = arith.constant 5 : index
    %c0_132 = arith.constant 0 : index
    %c0_133 = arith.constant 0 : index
    %202 = vector.load %arg7[%c5_131, %c0_132, %c0_133] : memref<8x2x32xf32, #tpu.memory_space<vmem>>, vector<1x2x32xf32>
    %203 = vector.shape_cast %202 : vector<1x2x32xf32> to vector<2x32xf32>
    %204 = vector.shape_cast %194 : vector<2x32xf32> to vector<1x2x32xf32>
    tpu.vector_store %arg7[%c5_131, %c0_132, %c0_133], %204 {strides = array<i32>} : memref<8x2x32xf32, #tpu.memory_space<vmem>>, vector<1x2x32xf32>,
    %c3 = arith.constant 3 : index
    %c0_134 = arith.constant 0 : index
    %c0_135 = arith.constant 0 : index
    %205 = vector.load %arg8[%c3, %c0_134, %c0_135] : memref<8x2x128xf32, #tpu.memory_space<vmem>>, vector<1x2x128xf32>
    %206 = vector.shape_cast %205 : vector<1x2x128xf32> to vector<2x128xf32>
    %c0_136 = arith.constant 0 : index
    %c0_137 = arith.constant 0 : index
    %207 = vector.load %arg10[%c0_136, %c0_137] : memref<2x32xf32, #tpu.memory_space<vmem>>, vector<2x32xf32>
    %208 = arith.truncf %207 : vector<2x32xf32> to vector<2x32xbf16>
    %cst_138 = arith.constant dense<0.000000e+00> : vector<2x128xf32>
    %209 = tpu.matmul %208, %28, %cst_138 {dimension_numbers = #tpu.dot_dimension_numbers<[1], [0], [0], [1], [0, 0, 1, 1], [], []>} : vector<2x32xbf16>, vector<32x128xbf16>, vector<2x128xf32> -> vector<2x128xf32>
    %210 = arith.addf %206, %209 : vector<2x128xf32>
    %c4 = arith.constant 4 : index
    %c0_139 = arith.constant 0 : index
    %c0_140 = arith.constant 0 : index
    %211 = vector.load %arg9[%c4, %c0_139, %c0_140] : memref<8x2x128xf32, #tpu.memory_space<vmem>>, vector<1x2x128xf32>
    %212 = vector.shape_cast %211 : vector<1x2x128xf32> to vector<2x128xf32>
    %c0_141 = arith.constant 0 : index
    %c0_142 = arith.constant 0 : index
    %213 = vector.load %arg11[%c0_141, %c0_142] : memref<2x32xf32, #tpu.memory_space<vmem>>, vector<2x32xf32>
    %214 = arith.truncf %213 : vector<2x32xf32> to vector<2x32xbf16>
    %cst_143 = arith.constant dense<0.000000e+00> : vector<2x128xf32>
    %215 = tpu.matmul %214, %30, %cst_143 {dimension_numbers = #tpu.dot_dimension_numbers<[1], [0], [0], [1], [0, 0, 1, 1], [], []>} : vector<2x32xbf16>, vector<32x128xbf16>, vector<2x128xf32> -> vector<2x128xf32>
    %216 = arith.addf %212, %215 : vector<2x128xf32>
    %cst_144 = arith.constant 0.000000e+00 : f32
    %217 = vector.broadcast %cst_144 : f32 to vector<2x128xf32>
    %218 = arith.subf %217, %210 : vector<2x128xf32>
    %219 = math.exp %218 : vector<2x128xf32>
    %cst_145 = arith.constant 1.000000e+00 : f32
    %220 = vector.broadcast %cst_145 : f32 to vector<2x128xf32>
    %221 = arith.addf %220, %219 : vector<2x128xf32>
    %cst_146 = arith.constant 1.000000e+00 : f32
    %222 = vector.broadcast %cst_146 : f32 to vector<2x128xf32>
    %223 = arith.divf %222, %221 : vector<2x128xf32>
    %cst_147 = arith.constant 0.000000e+00 : f32
    %224 = vector.broadcast %cst_147 : f32 to vector<2x128xf32>
    %225 = arith.subf %224, %216 : vector<2x128xf32>
    %226 = math.exp %225 : vector<2x128xf32>
    %cst_148 = arith.constant 1.000000e+00 : f32
    %227 = vector.broadcast %cst_148 : f32 to vector<2x128xf32>
    %228 = arith.addf %227, %226 : vector<2x128xf32>
    %cst_149 = arith.constant 1.000000e+00 : f32
    %229 = vector.broadcast %cst_149 : f32 to vector<2x128xf32>
    %230 = arith.divf %229, %228 : vector<2x128xf32>
    %231 = vector.extract_strided_slice %210 {offsets = [0, 64], sizes = [2, 32], strides = [1, 1]} : vector<2x128xf32> to vector<2x32xf32>
    %232 = math.tanh %231 : vector<2x32xf32>
    %233 = vector.extract_strided_slice %216 {offsets = [0, 64], sizes = [2, 32], strides = [1, 1]} : vector<2x128xf32> to vector<2x32xf32>
    %234 = math.tanh %233 : vector<2x32xf32>
    %235 = vector.extract_strided_slice %223 {offsets = [0, 32], sizes = [2, 32], strides = [1, 1]} : vector<2x128xf32> to vector<2x32xf32>
    %c0_150 = arith.constant 0 : index
    %c0_151 = arith.constant 0 : index
    %236 = vector.load %arg12[%c0_150, %c0_151] : memref<2x32xf32, #tpu.memory_space<vmem>>, vector<2x32xf32>
    %237 = arith.mulf %235, %236 : vector<2x32xf32>
    %238 = vector.extract_strided_slice %223 {offsets = [0, 0], sizes = [2, 32], strides = [1, 1]} : vector<2x128xf32> to vector<2x32xf32>
    %239 = arith.mulf %238, %232 : vector<2x32xf32>
    %240 = arith.addf %237, %239 : vector<2x32xf32>
    %241 = vector.extract_strided_slice %230 {offsets = [0, 32], sizes = [2, 32], strides = [1, 1]} : vector<2x128xf32> to vector<2x32xf32>
    %c0_152 = arith.constant 0 : index
    %c0_153 = arith.constant 0 : index
    %242 = vector.load %arg13[%c0_152, %c0_153] : memref<2x32xf32, #tpu.memory_space<vmem>>, vector<2x32xf32>
    %243 = arith.mulf %241, %242 : vector<2x32xf32>
    %244 = vector.extract_strided_slice %230 {offsets = [0, 0], sizes = [2, 32], strides = [1, 1]} : vector<2x128xf32> to vector<2x32xf32>
    %245 = arith.mulf %244, %234 : vector<2x32xf32>
    %246 = arith.addf %243, %245 : vector<2x32xf32>
    %247 = vector.extract_strided_slice %223 {offsets = [0, 96], sizes = [2, 32], strides = [1, 1]} : vector<2x128xf32> to vector<2x32xf32>
    %248 = math.tanh %240 : vector<2x32xf32>
    %249 = arith.mulf %247, %248 : vector<2x32xf32>
    %250 = vector.extract_strided_slice %230 {offsets = [0, 96], sizes = [2, 32], strides = [1, 1]} : vector<2x128xf32> to vector<2x32xf32>
    %251 = math.tanh %246 : vector<2x32xf32>
    %252 = arith.mulf %250, %251 : vector<2x32xf32>
    %c0_154 = arith.constant 0 : index
    %c0_155 = arith.constant 0 : index
    %253 = vector.load %arg12[%c0_154, %c0_155] : memref<2x32xf32, #tpu.memory_space<vmem>>, vector<2x32xf32>
    tpu.vector_store %arg12[%c0_154, %c0_155], %240 {strides = array<i32>} : memref<2x32xf32, #tpu.memory_space<vmem>>, vector<2x32xf32>,
    %c0_156 = arith.constant 0 : index
    %c0_157 = arith.constant 0 : index
    %254 = vector.load %arg13[%c0_156, %c0_157] : memref<2x32xf32, #tpu.memory_space<vmem>>, vector<2x32xf32>
    tpu.vector_store %arg13[%c0_156, %c0_157], %246 {strides = array<i32>} : memref<2x32xf32, #tpu.memory_space<vmem>>, vector<2x32xf32>,
    %c0_158 = arith.constant 0 : index
    %c0_159 = arith.constant 0 : index
    %255 = vector.load %arg10[%c0_158, %c0_159] : memref<2x32xf32, #tpu.memory_space<vmem>>, vector<2x32xf32>
    tpu.vector_store %arg10[%c0_158, %c0_159], %249 {strides = array<i32>} : memref<2x32xf32, #tpu.memory_space<vmem>>, vector<2x32xf32>,
    %c0_160 = arith.constant 0 : index
    %c0_161 = arith.constant 0 : index
    %256 = vector.load %arg11[%c0_160, %c0_161] : memref<2x32xf32, #tpu.memory_space<vmem>>, vector<2x32xf32>
    tpu.vector_store %arg11[%c0_160, %c0_161], %252 {strides = array<i32>} : memref<2x32xf32, #tpu.memory_space<vmem>>, vector<2x32xf32>,
    %c3_162 = arith.constant 3 : index
    %c0_163 = arith.constant 0 : index
    %c0_164 = arith.constant 0 : index
    %257 = vector.load %arg6[%c3_162, %c0_163, %c0_164] : memref<8x2x32xf32, #tpu.memory_space<vmem>>, vector<1x2x32xf32>
    %258 = vector.shape_cast %257 : vector<1x2x32xf32> to vector<2x32xf32>
    %259 = vector.shape_cast %249 : vector<2x32xf32> to vector<1x2x32xf32>
    tpu.vector_store %arg6[%c3_162, %c0_163, %c0_164], %259 {strides = array<i32>} : memref<8x2x32xf32, #tpu.memory_space<vmem>>, vector<1x2x32xf32>,
    %c4_165 = arith.constant 4 : index
    %c0_166 = arith.constant 0 : index
    %c0_167 = arith.constant 0 : index
    %260 = vector.load %arg7[%c4_165, %c0_166, %c0_167] : memref<8x2x32xf32, #tpu.memory_space<vmem>>, vector<1x2x32xf32>
    %261 = vector.shape_cast %260 : vector<1x2x32xf32> to vector<2x32xf32>
    %262 = vector.shape_cast %252 : vector<2x32xf32> to vector<1x2x32xf32>
    tpu.vector_store %arg7[%c4_165, %c0_166, %c0_167], %262 {strides = array<i32>} : memref<8x2x32xf32, #tpu.memory_space<vmem>>, vector<1x2x32xf32>,
    %c4_168 = arith.constant 4 : index
    %c0_169 = arith.constant 0 : index
    %c0_170 = arith.constant 0 : index
    %263 = vector.load %arg8[%c4_168, %c0_169, %c0_170] : memref<8x2x128xf32, #tpu.memory_space<vmem>>, vector<1x2x128xf32>
    %264 = vector.shape_cast %263 : vector<1x2x128xf32> to vector<2x128xf32>
    %c0_171 = arith.constant 0 : index
    %c0_172 = arith.constant 0 : index
    %265 = vector.load %arg10[%c0_171, %c0_172] : memref<2x32xf32, #tpu.memory_space<vmem>>, vector<2x32xf32>
    %266 = arith.truncf %265 : vector<2x32xf32> to vector<2x32xbf16>
    %cst_173 = arith.constant dense<0.000000e+00> : vector<2x128xf32>
    %267 = tpu.matmul %266, %28, %cst_173 {dimension_numbers = #tpu.dot_dimension_numbers<[1], [0], [0], [1], [0, 0, 1, 1], [], []>} : vector<2x32xbf16>, vector<32x128xbf16>, vector<2x128xf32> -> vector<2x128xf32>
    %268 = arith.addf %264, %267 : vector<2x128xf32>
    %c3_174 = arith.constant 3 : index
    %c0_175 = arith.constant 0 : index
    %c0_176 = arith.constant 0 : index
    %269 = vector.load %arg9[%c3_174, %c0_175, %c0_176] : memref<8x2x128xf32, #tpu.memory_space<vmem>>, vector<1x2x128xf32>
    %270 = vector.shape_cast %269 : vector<1x2x128xf32> to vector<2x128xf32>
    %c0_177 = arith.constant 0 : index
    %c0_178 = arith.constant 0 : index
    %271 = vector.load %arg11[%c0_177, %c0_178] : memref<2x32xf32, #tpu.memory_space<vmem>>, vector<2x32xf32>
    %272 = arith.truncf %271 : vector<2x32xf32> to vector<2x32xbf16>
    %cst_179 = arith.constant dense<0.000000e+00> : vector<2x128xf32>
    %273 = tpu.matmul %272, %30, %cst_179 {dimension_numbers = #tpu.dot_dimension_numbers<[1], [0], [0], [1], [0, 0, 1, 1], [], []>} : vector<2x32xbf16>, vector<32x128xbf16>, vector<2x128xf32> -> vector<2x128xf32>
    %274 = arith.addf %270, %273 : vector<2x128xf32>
    %cst_180 = arith.constant 0.000000e+00 : f32
    %275 = vector.broadcast %cst_180 : f32 to vector<2x128xf32>
    %276 = arith.subf %275, %268 : vector<2x128xf32>
    %277 = math.exp %276 : vector<2x128xf32>
    %cst_181 = arith.constant 1.000000e+00 : f32
    %278 = vector.broadcast %cst_181 : f32 to vector<2x128xf32>
    %279 = arith.addf %278, %277 : vector<2x128xf32>
    %cst_182 = arith.constant 1.000000e+00 : f32
    %280 = vector.broadcast %cst_182 : f32 to vector<2x128xf32>
    %281 = arith.divf %280, %279 : vector<2x128xf32>
    %cst_183 = arith.constant 0.000000e+00 : f32
    %282 = vector.broadcast %cst_183 : f32 to vector<2x128xf32>
    %283 = arith.subf %282, %274 : vector<2x128xf32>
    %284 = math.exp %283 : vector<2x128xf32>
    %cst_184 = arith.constant 1.000000e+00 : f32
    %285 = vector.broadcast %cst_184 : f32 to vector<2x128xf32>
    %286 = arith.addf %285, %284 : vector<2x128xf32>
    %cst_185 = arith.constant 1.000000e+00 : f32
    %287 = vector.broadcast %cst_185 : f32 to vector<2x128xf32>
    %288 = arith.divf %287, %286 : vector<2x128xf32>
    %289 = vector.extract_strided_slice %268 {offsets = [0, 64], sizes = [2, 32], strides = [1, 1]} : vector<2x128xf32> to vector<2x32xf32>
    %290 = math.tanh %289 : vector<2x32xf32>
    %291 = vector.extract_strided_slice %274 {offsets = [0, 64], sizes = [2, 32], strides = [1, 1]} : vector<2x128xf32> to vector<2x32xf32>
    %292 = math.tanh %291 : vector<2x32xf32>
    %293 = vector.extract_strided_slice %281 {offsets = [0, 32], sizes = [2, 32], strides = [1, 1]} : vector<2x128xf32> to vector<2x32xf32>
    %c0_186 = arith.constant 0 : index
    %c0_187 = arith.constant 0 : index
    %294 = vector.load %arg12[%c0_186, %c0_187] : memref<2x32xf32, #tpu.memory_space<vmem>>, vector<2x32xf32>
    %295 = arith.mulf %293, %294 : vector<2x32xf32>
    %296 = vector.extract_strided_slice %281 {offsets = [0, 0], sizes = [2, 32], strides = [1, 1]} : vector<2x128xf32> to vector<2x32xf32>
    %297 = arith.mulf %296, %290 : vector<2x32xf32>
    %298 = arith.addf %295, %297 : vector<2x32xf32>
    %299 = vector.extract_strided_slice %288 {offsets = [0, 32], sizes = [2, 32], strides = [1, 1]} : vector<2x128xf32> to vector<2x32xf32>
    %c0_188 = arith.constant 0 : index
    %c0_189 = arith.constant 0 : index
    %300 = vector.load %arg13[%c0_188, %c0_189] : memref<2x32xf32, #tpu.memory_space<vmem>>, vector<2x32xf32>
    %301 = arith.mulf %299, %300 : vector<2x32xf32>
    %302 = vector.extract_strided_slice %288 {offsets = [0, 0], sizes = [2, 32], strides = [1, 1]} : vector<2x128xf32> to vector<2x32xf32>
    %303 = arith.mulf %302, %292 : vector<2x32xf32>
    %304 = arith.addf %301, %303 : vector<2x32xf32>
    %305 = vector.extract_strided_slice %281 {offsets = [0, 96], sizes = [2, 32], strides = [1, 1]} : vector<2x128xf32> to vector<2x32xf32>
    %306 = math.tanh %298 : vector<2x32xf32>
    %307 = arith.mulf %305, %306 : vector<2x32xf32>
    %308 = vector.extract_strided_slice %288 {offsets = [0, 96], sizes = [2, 32], strides = [1, 1]} : vector<2x128xf32> to vector<2x32xf32>
    %309 = math.tanh %304 : vector<2x32xf32>
    %310 = arith.mulf %308, %309 : vector<2x32xf32>
    %c0_190 = arith.constant 0 : index
    %c0_191 = arith.constant 0 : index
    %311 = vector.load %arg12[%c0_190, %c0_191] : memref<2x32xf32, #tpu.memory_space<vmem>>, vector<2x32xf32>
    tpu.vector_store %arg12[%c0_190, %c0_191], %298 {strides = array<i32>} : memref<2x32xf32, #tpu.memory_space<vmem>>, vector<2x32xf32>,
    %c0_192 = arith.constant 0 : index
    %c0_193 = arith.constant 0 : index
    %312 = vector.load %arg13[%c0_192, %c0_193] : memref<2x32xf32, #tpu.memory_space<vmem>>, vector<2x32xf32>
    tpu.vector_store %arg13[%c0_192, %c0_193], %304 {strides = array<i32>} : memref<2x32xf32, #tpu.memory_space<vmem>>, vector<2x32xf32>,
    %c0_194 = arith.constant 0 : index
    %c0_195 = arith.constant 0 : index
    %313 = vector.load %arg10[%c0_194, %c0_195] : memref<2x32xf32, #tpu.memory_space<vmem>>, vector<2x32xf32>
    tpu.vector_store %arg10[%c0_194, %c0_195], %307 {strides = array<i32>} : memref<2x32xf32, #tpu.memory_space<vmem>>, vector<2x32xf32>,
    %c0_196 = arith.constant 0 : index
    %c0_197 = arith.constant 0 : index
    %314 = vector.load %arg11[%c0_196, %c0_197] : memref<2x32xf32, #tpu.memory_space<vmem>>, vector<2x32xf32>
    tpu.vector_store %arg11[%c0_196, %c0_197], %310 {strides = array<i32>} : memref<2x32xf32, #tpu.memory_space<vmem>>, vector<2x32xf32>,
    %c4_198 = arith.constant 4 : index
    %c0_199 = arith.constant 0 : index
    %c0_200 = arith.constant 0 : index
    %315 = vector.load %arg6[%c4_198, %c0_199, %c0_200] : memref<8x2x32xf32, #tpu.memory_space<vmem>>, vector<1x2x32xf32>
    %316 = vector.shape_cast %315 : vector<1x2x32xf32> to vector<2x32xf32>
    %317 = vector.shape_cast %307 : vector<2x32xf32> to vector<1x2x32xf32>
    tpu.vector_store %arg6[%c4_198, %c0_199, %c0_200], %317 {strides = array<i32>} : memref<8x2x32xf32, #tpu.memory_space<vmem>>, vector<1x2x32xf32>,
    %c3_201 = arith.constant 3 : index
    %c0_202 = arith.constant 0 : index
    %c0_203 = arith.constant 0 : index
    %318 = vector.load %arg7[%c3_201, %c0_202, %c0_203] : memref<8x2x32xf32, #tpu.memory_space<vmem>>, vector<1x2x32xf32>
    %319 = vector.shape_cast %318 : vector<1x2x32xf32> to vector<2x32xf32>
    %320 = vector.shape_cast %310 : vector<2x32xf32> to vector<1x2x32xf32>
    tpu.vector_store %arg7[%c3_201, %c0_202, %c0_203], %320 {strides = array<i32>} : memref<8x2x32xf32, #tpu.memory_space<vmem>>, vector<1x2x32xf32>,
    %c5_204 = arith.constant 5 : index
    %c0_205 = arith.constant 0 : index
    %c0_206 = arith.constant 0 : index
    %321 = vector.load %arg8[%c5_204, %c0_205, %c0_206] : memref<8x2x128xf32, #tpu.memory_space<vmem>>, vector<1x2x128xf32>
    %322 = vector.shape_cast %321 : vector<1x2x128xf32> to vector<2x128xf32>
    %c0_207 = arith.constant 0 : index
    %c0_208 = arith.constant 0 : index
    %323 = vector.load %arg10[%c0_207, %c0_208] : memref<2x32xf32, #tpu.memory_space<vmem>>, vector<2x32xf32>
    %324 = arith.truncf %323 : vector<2x32xf32> to vector<2x32xbf16>
    %cst_209 = arith.constant dense<0.000000e+00> : vector<2x128xf32>
    %325 = tpu.matmul %324, %28, %cst_209 {dimension_numbers = #tpu.dot_dimension_numbers<[1], [0], [0], [1], [0, 0, 1, 1], [], []>} : vector<2x32xbf16>, vector<32x128xbf16>, vector<2x128xf32> -> vector<2x128xf32>
    %326 = arith.addf %322, %325 : vector<2x128xf32>
    %c2_210 = arith.constant 2 : index
    %c0_211 = arith.constant 0 : index
    %c0_212 = arith.constant 0 : index
    %327 = vector.load %arg9[%c2_210, %c0_211, %c0_212] : memref<8x2x128xf32, #tpu.memory_space<vmem>>, vector<1x2x128xf32>
    %328 = vector.shape_cast %327 : vector<1x2x128xf32> to vector<2x128xf32>
    %c0_213 = arith.constant 0 : index
    %c0_214 = arith.constant 0 : index
    %329 = vector.load %arg11[%c0_213, %c0_214] : memref<2x32xf32, #tpu.memory_space<vmem>>, vector<2x32xf32>
    %330 = arith.truncf %329 : vector<2x32xf32> to vector<2x32xbf16>
    %cst_215 = arith.constant dense<0.000000e+00> : vector<2x128xf32>
    %331 = tpu.matmul %330, %30, %cst_215 {dimension_numbers = #tpu.dot_dimension_numbers<[1], [0], [0], [1], [0, 0, 1, 1], [], []>} : vector<2x32xbf16>, vector<32x128xbf16>, vector<2x128xf32> -> vector<2x128xf32>
    %332 = arith.addf %328, %331 : vector<2x128xf32>
    %cst_216 = arith.constant 0.000000e+00 : f32
    %333 = vector.broadcast %cst_216 : f32 to vector<2x128xf32>
    %334 = arith.subf %333, %326 : vector<2x128xf32>
    %335 = math.exp %334 : vector<2x128xf32>
    %cst_217 = arith.constant 1.000000e+00 : f32
    %336 = vector.broadcast %cst_217 : f32 to vector<2x128xf32>
    %337 = arith.addf %336, %335 : vector<2x128xf32>
    %cst_218 = arith.constant 1.000000e+00 : f32
    %338 = vector.broadcast %cst_218 : f32 to vector<2x128xf32>
    %339 = arith.divf %338, %337 : vector<2x128xf32>
    %cst_219 = arith.constant 0.000000e+00 : f32
    %340 = vector.broadcast %cst_219 : f32 to vector<2x128xf32>
    %341 = arith.subf %340, %332 : vector<2x128xf32>
    %342 = math.exp %341 : vector<2x128xf32>
    %cst_220 = arith.constant 1.000000e+00 : f32
    %343 = vector.broadcast %cst_220 : f32 to vector<2x128xf32>
    %344 = arith.addf %343, %342 : vector<2x128xf32>
    %cst_221 = arith.constant 1.000000e+00 : f32
    %345 = vector.broadcast %cst_221 : f32 to vector<2x128xf32>
    %346 = arith.divf %345, %344 : vector<2x128xf32>
    %347 = vector.extract_strided_slice %326 {offsets = [0, 64], sizes = [2, 32], strides = [1, 1]} : vector<2x128xf32> to vector<2x32xf32>
    %348 = math.tanh %347 : vector<2x32xf32>
    %349 = vector.extract_strided_slice %332 {offsets = [0, 64], sizes = [2, 32], strides = [1, 1]} : vector<2x128xf32> to vector<2x32xf32>
    %350 = math.tanh %349 : vector<2x32xf32>
    %351 = vector.extract_strided_slice %339 {offsets = [0, 32], sizes = [2, 32], strides = [1, 1]} : vector<2x128xf32> to vector<2x32xf32>
    %c0_222 = arith.constant 0 : index
    %c0_223 = arith.constant 0 : index
    %352 = vector.load %arg12[%c0_222, %c0_223] : memref<2x32xf32, #tpu.memory_space<vmem>>, vector<2x32xf32>
    %353 = arith.mulf %351, %352 : vector<2x32xf32>
    %354 = vector.extract_strided_slice %339 {offsets = [0, 0], sizes = [2, 32], strides = [1, 1]} : vector<2x128xf32> to vector<2x32xf32>
    %355 = arith.mulf %354, %348 : vector<2x32xf32>
    %356 = arith.addf %353, %355 : vector<2x32xf32>
    %357 = vector.extract_strided_slice %346 {offsets = [0, 32], sizes = [2, 32], strides = [1, 1]} : vector<2x128xf32> to vector<2x32xf32>
    %c0_224 = arith.constant 0 : index
    %c0_225 = arith.constant 0 : index
    %358 = vector.load %arg13[%c0_224, %c0_225] : memref<2x32xf32, #tpu.memory_space<vmem>>, vector<2x32xf32>
    %359 = arith.mulf %357, %358 : vector<2x32xf32>
    %360 = vector.extract_strided_slice %346 {offsets = [0, 0], sizes = [2, 32], strides = [1, 1]} : vector<2x128xf32> to vector<2x32xf32>
    %361 = arith.mulf %360, %350 : vector<2x32xf32>
    %362 = arith.addf %359, %361 : vector<2x32xf32>
    %363 = vector.extract_strided_slice %339 {offsets = [0, 96], sizes = [2, 32], strides = [1, 1]} : vector<2x128xf32> to vector<2x32xf32>
    %364 = math.tanh %356 : vector<2x32xf32>
    %365 = arith.mulf %363, %364 : vector<2x32xf32>
    %366 = vector.extract_strided_slice %346 {offsets = [0, 96], sizes = [2, 32], strides = [1, 1]} : vector<2x128xf32> to vector<2x32xf32>
    %367 = math.tanh %362 : vector<2x32xf32>
    %368 = arith.mulf %366, %367 : vector<2x32xf32>
    %c0_226 = arith.constant 0 : index
    %c0_227 = arith.constant 0 : index
    %369 = vector.load %arg12[%c0_226, %c0_227] : memref<2x32xf32, #tpu.memory_space<vmem>>, vector<2x32xf32>
    tpu.vector_store %arg12[%c0_226, %c0_227], %356 {strides = array<i32>} : memref<2x32xf32, #tpu.memory_space<vmem>>, vector<2x32xf32>,
    %c0_228 = arith.constant 0 : index
    %c0_229 = arith.constant 0 : index
    %370 = vector.load %arg13[%c0_228, %c0_229] : memref<2x32xf32, #tpu.memory_space<vmem>>, vector<2x32xf32>
    tpu.vector_store %arg13[%c0_228, %c0_229], %362 {strides = array<i32>} : memref<2x32xf32, #tpu.memory_space<vmem>>, vector<2x32xf32>,
    %c0_230 = arith.constant 0 : index
    %c0_231 = arith.constant 0 : index
    %371 = vector.load %arg10[%c0_230, %c0_231] : memref<2x32xf32, #tpu.memory_space<vmem>>, vector<2x32xf32>
    tpu.vector_store %arg10[%c0_230, %c0_231], %365 {strides = array<i32>} : memref<2x32xf32, #tpu.memory_space<vmem>>, vector<2x32xf32>,
    %c0_232 = arith.constant 0 : index
    %c0_233 = arith.constant 0 : index
    %372 = vector.load %arg11[%c0_232, %c0_233] : memref<2x32xf32, #tpu.memory_space<vmem>>, vector<2x32xf32>
    tpu.vector_store %arg11[%c0_232, %c0_233], %368 {strides = array<i32>} : memref<2x32xf32, #tpu.memory_space<vmem>>, vector<2x32xf32>,
    %c5_234 = arith.constant 5 : index
    %c0_235 = arith.constant 0 : index
    %c0_236 = arith.constant 0 : index
    %373 = vector.load %arg6[%c5_234, %c0_235, %c0_236] : memref<8x2x32xf32, #tpu.memory_space<vmem>>, vector<1x2x32xf32>
    %374 = vector.shape_cast %373 : vector<1x2x32xf32> to vector<2x32xf32>
    %375 = vector.shape_cast %365 : vector<2x32xf32> to vector<1x2x32xf32>
    tpu.vector_store %arg6[%c5_234, %c0_235, %c0_236], %375 {strides = array<i32>} : memref<8x2x32xf32, #tpu.memory_space<vmem>>, vector<1x2x32xf32>,
    %c2_237 = arith.constant 2 : index
    %c0_238 = arith.constant 0 : index
    %c0_239 = arith.constant 0 : index
    %376 = vector.load %arg7[%c2_237, %c0_238, %c0_239] : memref<8x2x32xf32, #tpu.memory_space<vmem>>, vector<1x2x32xf32>
    %377 = vector.shape_cast %376 : vector<1x2x32xf32> to vector<2x32xf32>
    %378 = vector.shape_cast %368 : vector<2x32xf32> to vector<1x2x32xf32>
    tpu.vector_store %arg7[%c2_237, %c0_238, %c0_239], %378 {strides = array<i32>} : memref<8x2x32xf32, #tpu.memory_space<vmem>>, vector<1x2x32xf32>,
    %c6_240 = arith.constant 6 : index
    %c0_241 = arith.constant 0 : index
    %c0_242 = arith.constant 0 : index
    %379 = vector.load %arg8[%c6_240, %c0_241, %c0_242] : memref<8x2x128xf32, #tpu.memory_space<vmem>>, vector<1x2x128xf32>
    %380 = vector.shape_cast %379 : vector<1x2x128xf32> to vector<2x128xf32>
    %c0_243 = arith.constant 0 : index
    %c0_244 = arith.constant 0 : index
    %381 = vector.load %arg10[%c0_243, %c0_244] : memref<2x32xf32, #tpu.memory_space<vmem>>, vector<2x32xf32>
    %382 = arith.truncf %381 : vector<2x32xf32> to vector<2x32xbf16>
    %cst_245 = arith.constant dense<0.000000e+00> : vector<2x128xf32>
    %383 = tpu.matmul %382, %28, %cst_245 {dimension_numbers = #tpu.dot_dimension_numbers<[1], [0], [0], [1], [0, 0, 1, 1], [], []>} : vector<2x32xbf16>, vector<32x128xbf16>, vector<2x128xf32> -> vector<2x128xf32>
    %384 = arith.addf %380, %383 : vector<2x128xf32>
    %c1_246 = arith.constant 1 : index
    %c0_247 = arith.constant 0 : index
    %c0_248 = arith.constant 0 : index
    %385 = vector.load %arg9[%c1_246, %c0_247, %c0_248] : memref<8x2x128xf32, #tpu.memory_space<vmem>>, vector<1x2x128xf32>
    %386 = vector.shape_cast %385 : vector<1x2x128xf32> to vector<2x128xf32>
    %c0_249 = arith.constant 0 : index
    %c0_250 = arith.constant 0 : index
    %387 = vector.load %arg11[%c0_249, %c0_250] : memref<2x32xf32, #tpu.memory_space<vmem>>, vector<2x32xf32>
    %388 = arith.truncf %387 : vector<2x32xf32> to vector<2x32xbf16>
    %cst_251 = arith.constant dense<0.000000e+00> : vector<2x128xf32>
    %389 = tpu.matmul %388, %30, %cst_251 {dimension_numbers = #tpu.dot_dimension_numbers<[1], [0], [0], [1], [0, 0, 1, 1], [], []>} : vector<2x32xbf16>, vector<32x128xbf16>, vector<2x128xf32> -> vector<2x128xf32>
    %390 = arith.addf %386, %389 : vector<2x128xf32>
    %cst_252 = arith.constant 0.000000e+00 : f32
    %391 = vector.broadcast %cst_252 : f32 to vector<2x128xf32>
    %392 = arith.subf %391, %384 : vector<2x128xf32>
    %393 = math.exp %392 : vector<2x128xf32>
    %cst_253 = arith.constant 1.000000e+00 : f32
    %394 = vector.broadcast %cst_253 : f32 to vector<2x128xf32>
    %395 = arith.addf %394, %393 : vector<2x128xf32>
    %cst_254 = arith.constant 1.000000e+00 : f32
    %396 = vector.broadcast %cst_254 : f32 to vector<2x128xf32>
    %397 = arith.divf %396, %395 : vector<2x128xf32>
    %cst_255 = arith.constant 0.000000e+00 : f32
    %398 = vector.broadcast %cst_255 : f32 to vector<2x128xf32>
    %399 = arith.subf %398, %390 : vector<2x128xf32>
    %400 = math.exp %399 : vector<2x128xf32>
    %cst_256 = arith.constant 1.000000e+00 : f32
    %401 = vector.broadcast %cst_256 : f32 to vector<2x128xf32>
    %402 = arith.addf %401, %400 : vector<2x128xf32>
    %cst_257 = arith.constant 1.000000e+00 : f32
    %403 = vector.broadcast %cst_257 : f32 to vector<2x128xf32>
    %404 = arith.divf %403, %402 : vector<2x128xf32>
    %405 = vector.extract_strided_slice %384 {offsets = [0, 64], sizes = [2, 32], strides = [1, 1]} : vector<2x128xf32> to vector<2x32xf32>
    %406 = math.tanh %405 : vector<2x32xf32>
    %407 = vector.extract_strided_slice %390 {offsets = [0, 64], sizes = [2, 32], strides = [1, 1]} : vector<2x128xf32> to vector<2x32xf32>
    %408 = math.tanh %407 : vector<2x32xf32>
    %409 = vector.extract_strided_slice %397 {offsets = [0, 32], sizes = [2, 32], strides = [1, 1]} : vector<2x128xf32> to vector<2x32xf32>
    %c0_258 = arith.constant 0 : index
    %c0_259 = arith.constant 0 : index
    %410 = vector.load %arg12[%c0_258, %c0_259] : memref<2x32xf32, #tpu.memory_space<vmem>>, vector<2x32xf32>
    %411 = arith.mulf %409, %410 : vector<2x32xf32>
    %412 = vector.extract_strided_slice %397 {offsets = [0, 0], sizes = [2, 32], strides = [1, 1]} : vector<2x128xf32> to vector<2x32xf32>
    %413 = arith.mulf %412, %406 : vector<2x32xf32>
    %414 = arith.addf %411, %413 : vector<2x32xf32>
    %415 = vector.extract_strided_slice %404 {offsets = [0, 32], sizes = [2, 32], strides = [1, 1]} : vector<2x128xf32> to vector<2x32xf32>
    %c0_260 = arith.constant 0 : index
    %c0_261 = arith.constant 0 : index
    %416 = vector.load %arg13[%c0_260, %c0_261] : memref<2x32xf32, #tpu.memory_space<vmem>>, vector<2x32xf32>
    %417 = arith.mulf %415, %416 : vector<2x32xf32>
    %418 = vector.extract_strided_slice %404 {offsets = [0, 0], sizes = [2, 32], strides = [1, 1]} : vector<2x128xf32> to vector<2x32xf32>
    %419 = arith.mulf %418, %408 : vector<2x32xf32>
    %420 = arith.addf %417, %419 : vector<2x32xf32>
    %421 = vector.extract_strided_slice %397 {offsets = [0, 96], sizes = [2, 32], strides = [1, 1]} : vector<2x128xf32> to vector<2x32xf32>
    %422 = math.tanh %414 : vector<2x32xf32>
    %423 = arith.mulf %421, %422 : vector<2x32xf32>
    %424 = vector.extract_strided_slice %404 {offsets = [0, 96], sizes = [2, 32], strides = [1, 1]} : vector<2x128xf32> to vector<2x32xf32>
    %425 = math.tanh %420 : vector<2x32xf32>
    %426 = arith.mulf %424, %425 : vector<2x32xf32>
    %c0_262 = arith.constant 0 : index
    %c0_263 = arith.constant 0 : index
    %427 = vector.load %arg12[%c0_262, %c0_263] : memref<2x32xf32, #tpu.memory_space<vmem>>, vector<2x32xf32>
    tpu.vector_store %arg12[%c0_262, %c0_263], %414 {strides = array<i32>} : memref<2x32xf32, #tpu.memory_space<vmem>>, vector<2x32xf32>,
    %c0_264 = arith.constant 0 : index
    %c0_265 = arith.constant 0 : index
    %428 = vector.load %arg13[%c0_264, %c0_265] : memref<2x32xf32, #tpu.memory_space<vmem>>, vector<2x32xf32>
    tpu.vector_store %arg13[%c0_264, %c0_265], %420 {strides = array<i32>} : memref<2x32xf32, #tpu.memory_space<vmem>>, vector<2x32xf32>,
    %c0_266 = arith.constant 0 : index
    %c0_267 = arith.constant 0 : index
    %429 = vector.load %arg10[%c0_266, %c0_267] : memref<2x32xf32, #tpu.memory_space<vmem>>, vector<2x32xf32>
    tpu.vector_store %arg10[%c0_266, %c0_267], %423 {strides = array<i32>} : memref<2x32xf32, #tpu.memory_space<vmem>>, vector<2x32xf32>,
    %c0_268 = arith.constant 0 : index
    %c0_269 = arith.constant 0 : index
    %430 = vector.load %arg11[%c0_268, %c0_269] : memref<2x32xf32, #tpu.memory_space<vmem>>, vector<2x32xf32>
    tpu.vector_store %arg11[%c0_268, %c0_269], %426 {strides = array<i32>} : memref<2x32xf32, #tpu.memory_space<vmem>>, vector<2x32xf32>,
    %c6_270 = arith.constant 6 : index
    %c0_271 = arith.constant 0 : index
    %c0_272 = arith.constant 0 : index
    %431 = vector.load %arg6[%c6_270, %c0_271, %c0_272] : memref<8x2x32xf32, #tpu.memory_space<vmem>>, vector<1x2x32xf32>
    %432 = vector.shape_cast %431 : vector<1x2x32xf32> to vector<2x32xf32>
    %433 = vector.shape_cast %423 : vector<2x32xf32> to vector<1x2x32xf32>
    tpu.vector_store %arg6[%c6_270, %c0_271, %c0_272], %433 {strides = array<i32>} : memref<8x2x32xf32, #tpu.memory_space<vmem>>, vector<1x2x32xf32>,
    %c1_273 = arith.constant 1 : index
    %c0_274 = arith.constant 0 : index
    %c0_275 = arith.constant 0 : index
    %434 = vector.load %arg7[%c1_273, %c0_274, %c0_275] : memref<8x2x32xf32, #tpu.memory_space<vmem>>, vector<1x2x32xf32>
    %435 = vector.shape_cast %434 : vector<1x2x32xf32> to vector<2x32xf32>
    %436 = vector.shape_cast %426 : vector<2x32xf32> to vector<1x2x32xf32>
    tpu.vector_store %arg7[%c1_273, %c0_274, %c0_275], %436 {strides = array<i32>} : memref<8x2x32xf32, #tpu.memory_space<vmem>>, vector<1x2x32xf32>,
    %c7_276 = arith.constant 7 : index
    %c0_277 = arith.constant 0 : index
    %c0_278 = arith.constant 0 : index
    %437 = vector.load %arg8[%c7_276, %c0_277, %c0_278] : memref<8x2x128xf32, #tpu.memory_space<vmem>>, vector<1x2x128xf32>
    %438 = vector.shape_cast %437 : vector<1x2x128xf32> to vector<2x128xf32>
    %c0_279 = arith.constant 0 : index
    %c0_280 = arith.constant 0 : index
    %439 = vector.load %arg10[%c0_279, %c0_280] : memref<2x32xf32, #tpu.memory_space<vmem>>, vector<2x32xf32>
    %440 = arith.truncf %439 : vector<2x32xf32> to vector<2x32xbf16>
    %cst_281 = arith.constant dense<0.000000e+00> : vector<2x128xf32>
    %441 = tpu.matmul %440, %28, %cst_281 {dimension_numbers = #tpu.dot_dimension_numbers<[1], [0], [0], [1], [0, 0, 1, 1], [], []>} : vector<2x32xbf16>, vector<32x128xbf16>, vector<2x128xf32> -> vector<2x128xf32>
    %442 = arith.addf %438, %441 : vector<2x128xf32>
    %c0_282 = arith.constant 0 : index
    %c0_283 = arith.constant 0 : index
    %c0_284 = arith.constant 0 : index
    %443 = vector.load %arg9[%c0_282, %c0_283, %c0_284] : memref<8x2x128xf32, #tpu.memory_space<vmem>>, vector<1x2x128xf32>
    %444 = vector.shape_cast %443 : vector<1x2x128xf32> to vector<2x128xf32>
    %c0_285 = arith.constant 0 : index
    %c0_286 = arith.constant 0 : index
    %445 = vector.load %arg11[%c0_285, %c0_286] : memref<2x32xf32, #tpu.memory_space<vmem>>, vector<2x32xf32>
    %446 = arith.truncf %445 : vector<2x32xf32> to vector<2x32xbf16>
    %cst_287 = arith.constant dense<0.000000e+00> : vector<2x128xf32>
    %447 = tpu.matmul %446, %30, %cst_287 {dimension_numbers = #tpu.dot_dimension_numbers<[1], [0], [0], [1], [0, 0, 1, 1], [], []>} : vector<2x32xbf16>, vector<32x128xbf16>, vector<2x128xf32> -> vector<2x128xf32>
    %448 = arith.addf %444, %447 : vector<2x128xf32>
    %cst_288 = arith.constant 0.000000e+00 : f32
    %449 = vector.broadcast %cst_288 : f32 to vector<2x128xf32>
    %450 = arith.subf %449, %442 : vector<2x128xf32>
    %451 = math.exp %450 : vector<2x128xf32>
    %cst_289 = arith.constant 1.000000e+00 : f32
    %452 = vector.broadcast %cst_289 : f32 to vector<2x128xf32>
    %453 = arith.addf %452, %451 : vector<2x128xf32>
    %cst_290 = arith.constant 1.000000e+00 : f32
    %454 = vector.broadcast %cst_290 : f32 to vector<2x128xf32>
    %455 = arith.divf %454, %453 : vector<2x128xf32>
    %cst_291 = arith.constant 0.000000e+00 : f32
    %456 = vector.broadcast %cst_291 : f32 to vector<2x128xf32>
    %457 = arith.subf %456, %448 : vector<2x128xf32>
    %458 = math.exp %457 : vector<2x128xf32>
    %cst_292 = arith.constant 1.000000e+00 : f32
    %459 = vector.broadcast %cst_292 : f32 to vector<2x128xf32>
    %460 = arith.addf %459, %458 : vector<2x128xf32>
    %cst_293 = arith.constant 1.000000e+00 : f32
    %461 = vector.broadcast %cst_293 : f32 to vector<2x128xf32>
    %462 = arith.divf %461, %460 : vector<2x128xf32>
    %463 = vector.extract_strided_slice %442 {offsets = [0, 64], sizes = [2, 32], strides = [1, 1]} : vector<2x128xf32> to vector<2x32xf32>
    %464 = math.tanh %463 : vector<2x32xf32>
    %465 = vector.extract_strided_slice %448 {offsets = [0, 64], sizes = [2, 32], strides = [1, 1]} : vector<2x128xf32> to vector<2x32xf32>
    %466 = math.tanh %465 : vector<2x32xf32>
    %467 = vector.extract_strided_slice %455 {offsets = [0, 32], sizes = [2, 32], strides = [1, 1]} : vector<2x128xf32> to vector<2x32xf32>
    %c0_294 = arith.constant 0 : index
    %c0_295 = arith.constant 0 : index
    %468 = vector.load %arg12[%c0_294, %c0_295] : memref<2x32xf32, #tpu.memory_space<vmem>>, vector<2x32xf32>
    %469 = arith.mulf %467, %468 : vector<2x32xf32>
    %470 = vector.extract_strided_slice %455 {offsets = [0, 0], sizes = [2, 32], strides = [1, 1]} : vector<2x128xf32> to vector<2x32xf32>
    %471 = arith.mulf %470, %464 : vector<2x32xf32>
    %472 = arith.addf %469, %471 : vector<2x32xf32>
    %473 = vector.extract_strided_slice %462 {offsets = [0, 32], sizes = [2, 32], strides = [1, 1]} : vector<2x128xf32> to vector<2x32xf32>
    %c0_296 = arith.constant 0 : index
    %c0_297 = arith.constant 0 : index
    %474 = vector.load %arg13[%c0_296, %c0_297] : memref<2x32xf32, #tpu.memory_space<vmem>>, vector<2x32xf32>
    %475 = arith.mulf %473, %474 : vector<2x32xf32>
    %476 = vector.extract_strided_slice %462 {offsets = [0, 0], sizes = [2, 32], strides = [1, 1]} : vector<2x128xf32> to vector<2x32xf32>
    %477 = arith.mulf %476, %466 : vector<2x32xf32>
    %478 = arith.addf %475, %477 : vector<2x32xf32>
    %479 = vector.extract_strided_slice %455 {offsets = [0, 96], sizes = [2, 32], strides = [1, 1]} : vector<2x128xf32> to vector<2x32xf32>
    %480 = math.tanh %472 : vector<2x32xf32>
    %481 = arith.mulf %479, %480 : vector<2x32xf32>
    %482 = vector.extract_strided_slice %462 {offsets = [0, 96], sizes = [2, 32], strides = [1, 1]} : vector<2x128xf32> to vector<2x32xf32>
    %483 = math.tanh %478 : vector<2x32xf32>
    %484 = arith.mulf %482, %483 : vector<2x32xf32>
    %c0_298 = arith.constant 0 : index
    %c0_299 = arith.constant 0 : index
    %485 = vector.load %arg12[%c0_298, %c0_299] : memref<2x32xf32, #tpu.memory_space<vmem>>, vector<2x32xf32>
    tpu.vector_store %arg12[%c0_298, %c0_299], %472 {strides = array<i32>} : memref<2x32xf32, #tpu.memory_space<vmem>>, vector<2x32xf32>,
    %c0_300 = arith.constant 0 : index
    %c0_301 = arith.constant 0 : index
    %486 = vector.load %arg13[%c0_300, %c0_301] : memref<2x32xf32, #tpu.memory_space<vmem>>, vector<2x32xf32>
    tpu.vector_store %arg13[%c0_300, %c0_301], %478 {strides = array<i32>} : memref<2x32xf32, #tpu.memory_space<vmem>>, vector<2x32xf32>,
    %c0_302 = arith.constant 0 : index
    %c0_303 = arith.constant 0 : index
    %487 = vector.load %arg10[%c0_302, %c0_303] : memref<2x32xf32, #tpu.memory_space<vmem>>, vector<2x32xf32>
    tpu.vector_store %arg10[%c0_302, %c0_303], %481 {strides = array<i32>} : memref<2x32xf32, #tpu.memory_space<vmem>>, vector<2x32xf32>,
    %c0_304 = arith.constant 0 : index
    %c0_305 = arith.constant 0 : index
    %488 = vector.load %arg11[%c0_304, %c0_305] : memref<2x32xf32, #tpu.memory_space<vmem>>, vector<2x32xf32>
    tpu.vector_store %arg11[%c0_304, %c0_305], %484 {strides = array<i32>} : memref<2x32xf32, #tpu.memory_space<vmem>>, vector<2x32xf32>,
    %c7_306 = arith.constant 7 : index
    %c0_307 = arith.constant 0 : index
    %c0_308 = arith.constant 0 : index
    %489 = vector.load %arg6[%c7_306, %c0_307, %c0_308] : memref<8x2x32xf32, #tpu.memory_space<vmem>>, vector<1x2x32xf32>
    %490 = vector.shape_cast %489 : vector<1x2x32xf32> to vector<2x32xf32>
    %491 = vector.shape_cast %481 : vector<2x32xf32> to vector<1x2x32xf32>
    tpu.vector_store %arg6[%c7_306, %c0_307, %c0_308], %491 {strides = array<i32>} : memref<8x2x32xf32, #tpu.memory_space<vmem>>, vector<1x2x32xf32>,
    %c0_309 = arith.constant 0 : index
    %c0_310 = arith.constant 0 : index
    %c0_311 = arith.constant 0 : index
    %492 = vector.load %arg7[%c0_309, %c0_310, %c0_311] : memref<8x2x32xf32, #tpu.memory_space<vmem>>, vector<1x2x32xf32>
    %493 = vector.shape_cast %492 : vector<1x2x32xf32> to vector<2x32xf32>
    %494 = vector.shape_cast %484 : vector<2x32xf32> to vector<1x2x32xf32>
    tpu.vector_store %arg7[%c0_309, %c0_310, %c0_311], %494 {strides = array<i32>} : memref<8x2x32xf32, #tpu.memory_space<vmem>>, vector<1x2x32xf32>,
    return
  }
  func.func @transform_0(%arg0: i32) -> (i32, i32, i32) {
    %c0_i32 = arith.constant 0 : i32
    %c0_i32_0 = arith.constant 0 : i32
    %c0_i32_1 = arith.constant 0 : i32
    return %arg0, %c0_i32, %c0_i32_0 : i32, i32, i32
  }
  func.func @transform_1(%arg0: i32) -> (i32, i32, i32) {
    %c0_i32 = arith.constant 0 : i32
    %0 = arith.subi %c0_i32, %arg0 : i32
    %c0_i32_0 = arith.constant 0 : i32
    %c0_i32_1 = arith.constant 0 : i32
    %c0_i32_2 = arith.constant 0 : i32
    return %0, %c0_i32_0, %c0_i32_1 : i32, i32, i32
  }
  func.func @transform_2(%arg0: i32) -> (i32, i32, i32) {
    %c0_i32 = arith.constant 0 : i32
    %c0_i32_0 = arith.constant 0 : i32
    %c0_i32_1 = arith.constant 0 : i32
    %c0_i32_2 = arith.constant 0 : i32
    return %c0_i32, %c0_i32_0, %c0_i32_1 : i32, i32, i32
  }
  func.func @transform_3(%arg0: i32) -> (i32, i32, i32) {
    %c0_i32 = arith.constant 0 : i32
    %c0_i32_0 = arith.constant 0 : i32
    %c0_i32_1 = arith.constant 0 : i32
    %c0_i32_2 = arith.constant 0 : i32
    return %c0_i32, %c0_i32_0, %c0_i32_1 : i32, i32, i32
  }
  func.func @transform_4(%arg0: i32) -> (i32, i32, i32) {
    %c0_i32 = arith.constant 0 : i32
    %c0_i32_0 = arith.constant 0 : i32
    %c0_i32_1 = arith.constant 0 : i32
    %c0_i32_2 = arith.constant 0 : i32
    return %c0_i32, %c0_i32_0, %c0_i32_1 : i32, i32, i32
  }
  func.func @transform_5(%arg0: i32) -> (i32, i32, i32) {
    %c0_i32 = arith.constant 0 : i32
    %c0_i32_0 = arith.constant 0 : i32
    %c0_i32_1 = arith.constant 0 : i32
    return %arg0, %c0_i32, %c0_i32_0 : i32, i32, i32
  }
  func.func @transform_6(%arg0: i32) -> (i32, i32, i32) {
    %c0_i32 = arith.constant 0 : i32
    %0 = arith.subi %c0_i32, %arg0 : i32
    %c0_i32_0 = arith.constant 0 : i32
    %c0_i32_1 = arith.constant 0 : i32
    %c0_i32_2 = arith.constant 0 : i32
    return %0, %c0_i32_0, %c0_i32_1 : i32, i32, i32
  }
}

module attributes {stable_mosaic.version = 11 : i64} {
  func.func @_bilstm_fused_kernel(%arg0: i32, %arg1: memref<8x2x64xf32, #tpu.memory_space<vmem>>, %arg2: memref<8x2x64xf32, #tpu.memory_space<vmem>>, %arg3: memref<2x64x128xbf16, #tpu.memory_space<vmem>>, %arg4: memref<2x32x128xbf16, #tpu.memory_space<vmem>>, %arg5: memref<2x1x128xf32, #tpu.memory_space<vmem>>, %arg6: memref<8x2x32xf32, #tpu.memory_space<vmem>>, %arg7: memref<8x2x32xf32, #tpu.memory_space<vmem>>, %arg8: memref<8x2x128xf32, #tpu.memory_space<vmem>>, %arg9: memref<8x2x128xf32, #tpu.memory_space<vmem>>, %arg10: memref<2x32xf32, #tpu.memory_space<vmem>>, %arg11: memref<2x32xf32, #tpu.memory_space<vmem>>, %arg12: memref<2x32xf32, #tpu.memory_space<vmem>>, %arg13: memref<2x32xf32, #tpu.memory_space<vmem>>) attributes {dimension_semantics = [#tpu.dimension_semantics<arbitrary>], iteration_bounds = array<i64: 1>, scalar_prefetch = 0 : i64, scratch_operands = 6 : i64, tpu.core_type = #tpu.core_type<tc>, window_params = [{transform_indices = @transform_0, window_bounds = array<i64: 8, 2, 64>}, {transform_indices = @transform_1, window_bounds = array<i64: 8, 2, 64>}, {pipeline_mode = #tpu.pipeline_mode<synchronous>, transform_indices = @transform_2, window_bounds = array<i64: 2, 64, 128>}, {pipeline_mode = #tpu.pipeline_mode<synchronous>, transform_indices = @transform_3, window_bounds = array<i64: 2, 32, 128>}, {pipeline_mode = #tpu.pipeline_mode<synchronous>, transform_indices = @transform_4, window_bounds = array<i64: 2, 1, 128>}, {transform_indices = @transform_5, window_bounds = array<i64: 8, 2, 32>}, {transform_indices = @transform_6, window_bounds = array<i64: 8, 2, 32>}]} {
    %c0_i32 = arith.constant 0 : i32
    %0 = arith.cmpi eq, %arg0, %c0_i32 : i32
    %1 = arith.extui %0 : i1 to i32
    %c0_i32_0 = arith.constant 0 : i32
    %2 = arith.cmpi ne, %1, %c0_i32_0 : i32
    scf.if %2 {
      %cst_312 = arith.constant 0.000000e+00 : f32
      %495 = vector.broadcast %cst_312 : f32 to vector<2x32xf32>
      %c0_313 = arith.constant 0 : index
      %c0_314 = arith.constant 0 : index
      %496 = vector.load %arg10[%c0_313, %c0_314] : memref<2x32xf32, #tpu.memory_space<vmem>>, vector<2x32xf32>
      tpu.vector_store %arg10[%c0_313, %c0_314], %495 {strides = array<i32>} : memref<2x32xf32, #tpu.memory_space<vmem>>, vector<2x32xf32>,
      %cst_315 = arith.constant 0.000000e+00 : f32
      %497 = vector.broadcast %cst_315 : f32 to vector<2x32xf32>
      %c0_316 = arith.constant 0 : index
      %c0_317 = arith.constant 0 : index
      %498 = vector.load %arg11[%c0_316, %c0_317] : memref<2x32xf32, #tpu.memory_space<vmem>>, vector<2x32xf32>
      tpu.vector_store %arg11[%c0_316, %c0_317], %497 {strides = array<i32>} : memref<2x32xf32, #tpu.memory_space<vmem>>, vector<2x32xf32>,
      %cst_318 = arith.constant 0.000000e+00 : f32
      %499 = vector.broadcast %cst_318 : f32 to vector<2x32xf32>
      %c0_319 = arith.constant 0 : index
      %c0_320 = arith.constant 0 : index
      %500 = vector.load %arg12[%c0_319, %c0_320] : memref<2x32xf32, #tpu.memory_space<vmem>>, vector<2x32xf32>
      tpu.vector_store %arg12[%c0_319, %c0_320], %499 {strides = array<i32>} : memref<2x32xf32, #tpu.memory_space<vmem>>, vector<2x32xf32>,
      %cst_321 = arith.constant 0.000000e+00 : f32
      %501 = vector.broadcast %cst_321 : f32 to vector<2x32xf32>
      %c0_322 = arith.constant 0 : index
      %c0_323 = arith.constant 0 : index
      %502 = vector.load %arg13[%c0_322, %c0_323] : memref<2x32xf32, #tpu.memory_space<vmem>>, vector<2x32xf32>
      tpu.vector_store %arg13[%c0_322, %c0_323], %501 {strides = array<i32>} : memref<2x32xf32, #tpu.memory_space<vmem>>, vector<2x32xf32>,
    } else {
    }
    %c0 = arith.constant 0 : index
    %c0_1 = arith.constant 0 : index
    %c0_2 = arith.constant 0 : index
    %3 = vector.load %arg1[%c0, %c0_1, %c0_2] : memref<8x2x64xf32, #tpu.memory_space<vmem>>, vector<8x2x64xf32>
    %4 = vector.shape_cast %3 : vector<8x2x64xf32> to vector<16x64xf32>
    %5 = arith.truncf %4 : vector<16x64xf32> to vector<16x64xbf16>
    %c0_3 = arith.constant 0 : index
    %c0_4 = arith.constant 0 : index
    %c0_5 = arith.constant 0 : index
    %6 = vector.load %arg2[%c0_3, %c0_4, %c0_5] : memref<8x2x64xf32, #tpu.memory_space<vmem>>, vector<8x2x64xf32>
    %7 = vector.shape_cast %6 : vector<8x2x64xf32> to vector<16x64xf32>
    %8 = arith.truncf %7 : vector<16x64xf32> to vector<16x64xbf16>
    %c0_6 = arith.constant 0 : index
    %c0_7 = arith.constant 0 : index
    %c0_8 = arith.constant 0 : index
    %9 = vector.load %arg3[%c0_6, %c0_7, %c0_8] : memref<2x64x128xbf16, #tpu.memory_space<vmem>>, vector<1x64x128xbf16>
    %10 = vector.shape_cast %9 : vector<1x64x128xbf16> to vector<64x128xbf16>
    %cst = arith.constant dense<0.000000e+00> : vector<16x128xf32>
    %11 = tpu.matmul %5, %10, %cst {dimension_numbers = #tpu.dot_dimension_numbers<[1], [0], [0], [1], [0, 0, 1, 1], [], []>} : vector<16x64xbf16>, vector<64x128xbf16>, vector<16x128xf32> -> vector<16x128xf32>
    %c0_9 = arith.constant 0 : index
    %c0_10 = arith.constant 0 : index
    %c0_11 = arith.constant 0 : index
    %12 = vector.load %arg5[%c0_9, %c0_10, %c0_11] : memref<2x1x128xf32, #tpu.memory_space<vmem>>, vector<1x1x128xf32>
    %13 = vector.shape_cast %12 : vector<1x1x128xf32> to vector<1x128xf32>
    %14 = vector.broadcast %13 : vector<1x128xf32> to vector<16x128xf32>
    %15 = arith.addf %11, %14 : vector<16x128xf32>
    %16 = vector.shape_cast %15 : vector<16x128xf32> to vector<8x2x128xf32>
    %c0_12 = arith.constant 0 : index
    %c0_13 = arith.constant 0 : index
    %c0_14 = arith.constant 0 : index
    %17 = vector.load %arg8[%c0_12, %c0_13, %c0_14] : memref<8x2x128xf32, #tpu.memory_space<vmem>>, vector<8x2x128xf32>
    tpu.vector_store %arg8[%c0_12, %c0_13, %c0_14], %16 {strides = array<i32>} : memref<8x2x128xf32, #tpu.memory_space<vmem>>, vector<8x2x128xf32>,
    %c1 = arith.constant 1 : index
    %c0_15 = arith.constant 0 : index
    %c0_16 = arith.constant 0 : index
    %18 = vector.load %arg3[%c1, %c0_15, %c0_16] : memref<2x64x128xbf16, #tpu.memory_space<vmem>>, vector<1x64x128xbf16>
    %19 = vector.shape_cast %18 : vector<1x64x128xbf16> to vector<64x128xbf16>
    %cst_17 = arith.constant dense<0.000000e+00> : vector<16x128xf32>
    %20 = tpu.matmul %8, %19, %cst_17 {dimension_numbers = #tpu.dot_dimension_numbers<[1], [0], [0], [1], [0, 0, 1, 1], [], []>} : vector<16x64xbf16>, vector<64x128xbf16>, vector<16x128xf32> -> vector<16x128xf32>
    %c1_18 = arith.constant 1 : index
    %c0_19 = arith.constant 0 : index
    %c0_20 = arith.constant 0 : index
    %21 = vector.load %arg5[%c1_18, %c0_19, %c0_20] : memref<2x1x128xf32, #tpu.memory_space<vmem>>, vector<1x1x128xf32>
    %22 = vector.shape_cast %21 : vector<1x1x128xf32> to vector<1x128xf32>
    %23 = vector.broadcast %22 : vector<1x128xf32> to vector<16x128xf32>
    %24 = arith.addf %20, %23 : vector<16x128xf32>
    %25 = vector.shape_cast %24 : vector<16x128xf32> to vector<8x2x128xf32>
    %c0_21 = arith.constant 0 : index
    %c0_22 = arith.constant 0 : index
    %c0_23 = arith.constant 0 : index
    %26 = vector.load %arg9[%c0_21, %c0_22, %c0_23] : memref<8x2x128xf32, #tpu.memory_space<vmem>>, vector<8x2x128xf32>
    tpu.vector_store %arg9[%c0_21, %c0_22, %c0_23], %25 {strides = array<i32>} : memref<8x2x128xf32, #tpu.memory_space<vmem>>, vector<8x2x128xf32>,
    %c0_24 = arith.constant 0 : index
    %c0_25 = arith.constant 0 : index
    %c0_26 = arith.constant 0 : index
    %27 = vector.load %arg4[%c0_24, %c0_25, %c0_26] : memref<2x32x128xbf16, #tpu.memory_space<vmem>>, vector<1x32x128xbf16>
    %28 = vector.shape_cast %27 : vector<1x32x128xbf16> to vector<32x128xbf16>
    %c1_27 = arith.constant 1 : index
    %c0_28 = arith.constant 0 : index
    %c0_29 = arith.constant 0 : index
    %29 = vector.load %arg4[%c1_27, %c0_28, %c0_29] : memref<2x32x128xbf16, #tpu.memory_space<vmem>>, vector<1x32x128xbf16>
    %30 = vector.shape_cast %29 : vector<1x32x128xbf16> to vector<32x128xbf16>
    %c0_30 = arith.constant 0 : index
    %c0_31 = arith.constant 0 : index
    %c0_32 = arith.constant 0 : index
    %31 = vector.load %arg8[%c0_30, %c0_31, %c0_32] : memref<8x2x128xf32, #tpu.memory_space<vmem>>, vector<1x2x128xf32>
    %32 = vector.shape_cast %31 : vector<1x2x128xf32> to vector<2x128xf32>
    %c0_33 = arith.constant 0 : index
    %c0_34 = arith.constant 0 : index
    %33 = vector.load %arg10[%c0_33, %c0_34] : memref<2x32xf32, #tpu.memory_space<vmem>>, vector<2x32xf32>
    %34 = arith.truncf %33 : vector<2x32xf32> to vector<2x32xbf16>
    %cst_35 = arith.constant dense<0.000000e+00> : vector<2x128xf32>
    %35 = tpu.matmul %34, %28, %cst_35 {dimension_numbers = #tpu.dot_dimension_numbers<[1], [0], [0], [1], [0, 0, 1, 1], [], []>} : vector<2x32xbf16>, vector<32x128xbf16>, vector<2x128xf32> -> vector<2x128xf32>
    %36 = arith.addf %32, %35 : vector<2x128xf32>
    %c7 = arith.constant 7 : index
    %c0_36 = arith.constant 0 : index
    %c0_37 = arith.constant 0 : index
    %37 = vector.load %arg9[%c7, %c0_36, %c0_37] : memref<8x2x128xf32, #tpu.memory_space<vmem>>, vector<1x2x128xf32>
    %38 = vector.shape_cast %37 : vector<1x2x128xf32> to vector<2x128xf32>
    %c0_38 = arith.constant 0 : index
    %c0_39 = arith.constant 0 : index
    %39 = vector.load %arg11[%c0_38, %c0_39] : memref<2x32xf32, #tpu.memory_space<vmem>>, vector<2x32xf32>
    %40 = arith.truncf %39 : vector<2x32xf32> to vector<2x32xbf16>
    %cst_40 = arith.constant dense<0.000000e+00> : vector<2x128xf32>
    %41 = tpu.matmul %40, %30, %cst_40 {dimension_numbers = #tpu.dot_dimension_numbers<[1], [0], [0], [1], [0, 0, 1, 1], [], []>} : vector<2x32xbf16>, vector<32x128xbf16>, vector<2x128xf32> -> vector<2x128xf32>
    %42 = arith.addf %38, %41 : vector<2x128xf32>
    %cst_41 = arith.constant 0.000000e+00 : f32
    %43 = vector.broadcast %cst_41 : f32 to vector<2x128xf32>
    %44 = arith.subf %43, %36 : vector<2x128xf32>
    %45 = math.exp %44 : vector<2x128xf32>
    %cst_42 = arith.constant 1.000000e+00 : f32
    %46 = vector.broadcast %cst_42 : f32 to vector<2x128xf32>
    %47 = arith.addf %46, %45 : vector<2x128xf32>
    %cst_43 = arith.constant 1.000000e+00 : f32
    %48 = vector.broadcast %cst_43 : f32 to vector<2x128xf32>
    %49 = arith.divf %48, %47 : vector<2x128xf32>
    %cst_44 = arith.constant 0.000000e+00 : f32
    %50 = vector.broadcast %cst_44 : f32 to vector<2x128xf32>
    %51 = arith.subf %50, %42 : vector<2x128xf32>
    %52 = math.exp %51 : vector<2x128xf32>
    %cst_45 = arith.constant 1.000000e+00 : f32
    %53 = vector.broadcast %cst_45 : f32 to vector<2x128xf32>
    %54 = arith.addf %53, %52 : vector<2x128xf32>
    %cst_46 = arith.constant 1.000000e+00 : f32
    %55 = vector.broadcast %cst_46 : f32 to vector<2x128xf32>
    %56 = arith.divf %55, %54 : vector<2x128xf32>
    %57 = vector.extract_strided_slice %36 {offsets = [0, 64], sizes = [2, 32], strides = [1, 1]} : vector<2x128xf32> to vector<2x32xf32>
    %58 = math.tanh %57 : vector<2x32xf32>
    %59 = vector.extract_strided_slice %42 {offsets = [0, 64], sizes = [2, 32], strides = [1, 1]} : vector<2x128xf32> to vector<2x32xf32>
    %60 = math.tanh %59 : vector<2x32xf32>
    %61 = vector.extract_strided_slice %49 {offsets = [0, 32], sizes = [2, 32], strides = [1, 1]} : vector<2x128xf32> to vector<2x32xf32>
    %c0_47 = arith.constant 0 : index
    %c0_48 = arith.constant 0 : index
    %62 = vector.load %arg12[%c0_47, %c0_48] : memref<2x32xf32, #tpu.memory_space<vmem>>, vector<2x32xf32>
    %63 = arith.mulf %61, %62 : vector<2x32xf32>
    %64 = vector.extract_strided_slice %49 {offsets = [0, 0], sizes = [2, 32], strides = [1, 1]} : vector<2x128xf32> to vector<2x32xf32>
    %65 = arith.mulf %64, %58 : vector<2x32xf32>
    %66 = arith.addf %63, %65 : vector<2x32xf32>
    %67 = vector.extract_strided_slice %56 {offsets = [0, 32], sizes = [2, 32], strides = [1, 1]} : vector<2x128xf32> to vector<2x32xf32>
    %c0_49 = arith.constant 0 : index
    %c0_50 = arith.constant 0 : index
    %68 = vector.load %arg13[%c0_49, %c0_50] : memref<2x32xf32, #tpu.memory_space<vmem>>, vector<2x32xf32>
    %69 = arith.mulf %67, %68 : vector<2x32xf32>
    %70 = vector.extract_strided_slice %56 {offsets = [0, 0], sizes = [2, 32], strides = [1, 1]} : vector<2x128xf32> to vector<2x32xf32>
    %71 = arith.mulf %70, %60 : vector<2x32xf32>
    %72 = arith.addf %69, %71 : vector<2x32xf32>
    %73 = vector.extract_strided_slice %49 {offsets = [0, 96], sizes = [2, 32], strides = [1, 1]} : vector<2x128xf32> to vector<2x32xf32>
    %74 = math.tanh %66 : vector<2x32xf32>
    %75 = arith.mulf %73, %74 : vector<2x32xf32>
    %76 = vector.extract_strided_slice %56 {offsets = [0, 96], sizes = [2, 32], strides = [1, 1]} : vector<2x128xf32> to vector<2x32xf32>
    %77 = math.tanh %72 : vector<2x32xf32>
    %78 = arith.mulf %76, %77 : vector<2x32xf32>
    %c0_51 = arith.constant 0 : index
    %c0_52 = arith.constant 0 : index
    %79 = vector.load %arg12[%c0_51, %c0_52] : memref<2x32xf32, #tpu.memory_space<vmem>>, vector<2x32xf32>
    tpu.vector_store %arg12[%c0_51, %c0_52], %66 {strides = array<i32>} : memref<2x32xf32, #tpu.memory_space<vmem>>, vector<2x32xf32>,
    %c0_53 = arith.constant 0 : index
    %c0_54 = arith.constant 0 : index
    %80 = vector.load %arg13[%c0_53, %c0_54] : memref<2x32xf32, #tpu.memory_space<vmem>>, vector<2x32xf32>
    tpu.vector_store %arg13[%c0_53, %c0_54], %72 {strides = array<i32>} : memref<2x32xf32, #tpu.memory_space<vmem>>, vector<2x32xf32>,
    %c0_55 = arith.constant 0 : index
    %c0_56 = arith.constant 0 : index
    %81 = vector.load %arg10[%c0_55, %c0_56] : memref<2x32xf32, #tpu.memory_space<vmem>>, vector<2x32xf32>
    tpu.vector_store %arg10[%c0_55, %c0_56], %75 {strides = array<i32>} : memref<2x32xf32, #tpu.memory_space<vmem>>, vector<2x32xf32>,
    %c0_57 = arith.constant 0 : index
    %c0_58 = arith.constant 0 : index
    %82 = vector.load %arg11[%c0_57, %c0_58] : memref<2x32xf32, #tpu.memory_space<vmem>>, vector<2x32xf32>
    tpu.vector_store %arg11[%c0_57, %c0_58], %78 {strides = array<i32>} : memref<2x32xf32, #tpu.memory_space<vmem>>, vector<2x32xf32>,
    %c0_59 = arith.constant 0 : index
    %c0_60 = arith.constant 0 : index
    %c0_61 = arith.constant 0 : index
    %83 = vector.load %arg6[%c0_59, %c0_60, %c0_61] : memref<8x2x32xf32, #tpu.memory_space<vmem>>, vector<1x2x32xf32>
    %84 = vector.shape_cast %83 : vector<1x2x32xf32> to vector<2x32xf32>
    %85 = vector.shape_cast %75 : vector<2x32xf32> to vector<1x2x32xf32>
    tpu.vector_store %arg6[%c0_59, %c0_60, %c0_61], %85 {strides = array<i32>} : memref<8x2x32xf32, #tpu.memory_space<vmem>>, vector<1x2x32xf32>,
    %c7_62 = arith.constant 7 : index
    %c0_63 = arith.constant 0 : index
    %c0_64 = arith.constant 0 : index
    %86 = vector.load %arg7[%c7_62, %c0_63, %c0_64] : memref<8x2x32xf32, #tpu.memory_space<vmem>>, vector<1x2x32xf32>
    %87 = vector.shape_cast %86 : vector<1x2x32xf32> to vector<2x32xf32>
    %88 = vector.shape_cast %78 : vector<2x32xf32> to vector<1x2x32xf32>
    tpu.vector_store %arg7[%c7_62, %c0_63, %c0_64], %88 {strides = array<i32>} : memref<8x2x32xf32, #tpu.memory_space<vmem>>, vector<1x2x32xf32>,
    %c1_65 = arith.constant 1 : index
    %c0_66 = arith.constant 0 : index
    %c0_67 = arith.constant 0 : index
    %89 = vector.load %arg8[%c1_65, %c0_66, %c0_67] : memref<8x2x128xf32, #tpu.memory_space<vmem>>, vector<1x2x128xf32>
    %90 = vector.shape_cast %89 : vector<1x2x128xf32> to vector<2x128xf32>
    %c0_68 = arith.constant 0 : index
    %c0_69 = arith.constant 0 : index
    %91 = vector.load %arg10[%c0_68, %c0_69] : memref<2x32xf32, #tpu.memory_space<vmem>>, vector<2x32xf32>
    %92 = arith.truncf %91 : vector<2x32xf32> to vector<2x32xbf16>
    %cst_70 = arith.constant dense<0.000000e+00> : vector<2x128xf32>
    %93 = tpu.matmul %92, %28, %cst_70 {dimension_numbers = #tpu.dot_dimension_numbers<[1], [0], [0], [1], [0, 0, 1, 1], [], []>} : vector<2x32xbf16>, vector<32x128xbf16>, vector<2x128xf32> -> vector<2x128xf32>
    %94 = arith.addf %90, %93 : vector<2x128xf32>
    %c6 = arith.constant 6 : index
    %c0_71 = arith.constant 0 : index
    %c0_72 = arith.constant 0 : index
    %95 = vector.load %arg9[%c6, %c0_71, %c0_72] : memref<8x2x128xf32, #tpu.memory_space<vmem>>, vector<1x2x128xf32>
    %96 = vector.shape_cast %95 : vector<1x2x128xf32> to vector<2x128xf32>
    %c0_73 = arith.constant 0 : index
    %c0_74 = arith.constant 0 : index
    %97 = vector.load %arg11[%c0_73, %c0_74] : memref<2x32xf32, #tpu.memory_space<vmem>>, vector<2x32xf32>
    %98 = arith.truncf %97 : vector<2x32xf32> to vector<2x32xbf16>
    %cst_75 = arith.constant dense<0.000000e+00> : vector<2x128xf32>
    %99 = tpu.matmul %98, %30, %cst_75 {dimension_numbers = #tpu.dot_dimension_numbers<[1], [0], [0], [1], [0, 0, 1, 1], [], []>} : vector<2x32xbf16>, vector<32x128xbf16>, vector<2x128xf32> -> vector<2x128xf32>
    %100 = arith.addf %96, %99 : vector<2x128xf32>
    %cst_76 = arith.constant 0.000000e+00 : f32
    %101 = vector.broadcast %cst_76 : f32 to vector<2x128xf32>
    %102 = arith.subf %101, %94 : vector<2x128xf32>
    %103 = math.exp %102 : vector<2x128xf32>
    %cst_77 = arith.constant 1.000000e+00 : f32
    %104 = vector.broadcast %cst_77 : f32 to vector<2x128xf32>
    %105 = arith.addf %104, %103 : vector<2x128xf32>
    %cst_78 = arith.constant 1.000000e+00 : f32
    %106 = vector.broadcast %cst_78 : f32 to vector<2x128xf32>
    %107 = arith.divf %106, %105 : vector<2x128xf32>
    %cst_79 = arith.constant 0.000000e+00 : f32
    %108 = vector.broadcast %cst_79 : f32 to vector<2x128xf32>
    %109 = arith.subf %108, %100 : vector<2x128xf32>
    %110 = math.exp %109 : vector<2x128xf32>
    %cst_80 = arith.constant 1.000000e+00 : f32
    %111 = vector.broadcast %cst_80 : f32 to vector<2x128xf32>
    %112 = arith.addf %111, %110 : vector<2x128xf32>
    %cst_81 = arith.constant 1.000000e+00 : f32
    %113 = vector.broadcast %cst_81 : f32 to vector<2x128xf32>
    %114 = arith.divf %113, %112 : vector<2x128xf32>
    %115 = vector.extract_strided_slice %94 {offsets = [0, 64], sizes = [2, 32], strides = [1, 1]} : vector<2x128xf32> to vector<2x32xf32>
    %116 = math.tanh %115 : vector<2x32xf32>
    %117 = vector.extract_strided_slice %100 {offsets = [0, 64], sizes = [2, 32], strides = [1, 1]} : vector<2x128xf32> to vector<2x32xf32>
    %118 = math.tanh %117 : vector<2x32xf32>
    %119 = vector.extract_strided_slice %107 {offsets = [0, 32], sizes = [2, 32], strides = [1, 1]} : vector<2x128xf32> to vector<2x32xf32>
    %c0_82 = arith.constant 0 : index
    %c0_83 = arith.constant 0 : index
    %120 = vector.load %arg12[%c0_82, %c0_83] : memref<2x32xf32, #tpu.memory_space<vmem>>, vector<2x32xf32>
    %121 = arith.mulf %119, %120 : vector<2x32xf32>
    %122 = vector.extract_strided_slice %107 {offsets = [0, 0], sizes = [2, 32], strides = [1, 1]} : vector<2x128xf32> to vector<2x32xf32>
    %123 = arith.mulf %122, %116 : vector<2x32xf32>
    %124 = arith.addf %121, %123 : vector<2x32xf32>
    %125 = vector.extract_strided_slice %114 {offsets = [0, 32], sizes = [2, 32], strides = [1, 1]} : vector<2x128xf32> to vector<2x32xf32>
    %c0_84 = arith.constant 0 : index
    %c0_85 = arith.constant 0 : index
    %126 = vector.load %arg13[%c0_84, %c0_85] : memref<2x32xf32, #tpu.memory_space<vmem>>, vector<2x32xf32>
    %127 = arith.mulf %125, %126 : vector<2x32xf32>
    %128 = vector.extract_strided_slice %114 {offsets = [0, 0], sizes = [2, 32], strides = [1, 1]} : vector<2x128xf32> to vector<2x32xf32>
    %129 = arith.mulf %128, %118 : vector<2x32xf32>
    %130 = arith.addf %127, %129 : vector<2x32xf32>
    %131 = vector.extract_strided_slice %107 {offsets = [0, 96], sizes = [2, 32], strides = [1, 1]} : vector<2x128xf32> to vector<2x32xf32>
    %132 = math.tanh %124 : vector<2x32xf32>
    %133 = arith.mulf %131, %132 : vector<2x32xf32>
    %134 = vector.extract_strided_slice %114 {offsets = [0, 96], sizes = [2, 32], strides = [1, 1]} : vector<2x128xf32> to vector<2x32xf32>
    %135 = math.tanh %130 : vector<2x32xf32>
    %136 = arith.mulf %134, %135 : vector<2x32xf32>
    %c0_86 = arith.constant 0 : index
    %c0_87 = arith.constant 0 : index
    %137 = vector.load %arg12[%c0_86, %c0_87] : memref<2x32xf32, #tpu.memory_space<vmem>>, vector<2x32xf32>
    tpu.vector_store %arg12[%c0_86, %c0_87], %124 {strides = array<i32>} : memref<2x32xf32, #tpu.memory_space<vmem>>, vector<2x32xf32>,
    %c0_88 = arith.constant 0 : index
    %c0_89 = arith.constant 0 : index
    %138 = vector.load %arg13[%c0_88, %c0_89] : memref<2x32xf32, #tpu.memory_space<vmem>>, vector<2x32xf32>
    tpu.vector_store %arg13[%c0_88, %c0_89], %130 {strides = array<i32>} : memref<2x32xf32, #tpu.memory_space<vmem>>, vector<2x32xf32>,
    %c0_90 = arith.constant 0 : index
    %c0_91 = arith.constant 0 : index
    %139 = vector.load %arg10[%c0_90, %c0_91] : memref<2x32xf32, #tpu.memory_space<vmem>>, vector<2x32xf32>
    tpu.vector_store %arg10[%c0_90, %c0_91], %133 {strides = array<i32>} : memref<2x32xf32, #tpu.memory_space<vmem>>, vector<2x32xf32>,
    %c0_92 = arith.constant 0 : index
    %c0_93 = arith.constant 0 : index
    %140 = vector.load %arg11[%c0_92, %c0_93] : memref<2x32xf32, #tpu.memory_space<vmem>>, vector<2x32xf32>
    tpu.vector_store %arg11[%c0_92, %c0_93], %136 {strides = array<i32>} : memref<2x32xf32, #tpu.memory_space<vmem>>, vector<2x32xf32>,
    %c1_94 = arith.constant 1 : index
    %c0_95 = arith.constant 0 : index
    %c0_96 = arith.constant 0 : index
    %141 = vector.load %arg6[%c1_94, %c0_95, %c0_96] : memref<8x2x32xf32, #tpu.memory_space<vmem>>, vector<1x2x32xf32>
    %142 = vector.shape_cast %141 : vector<1x2x32xf32> to vector<2x32xf32>
    %143 = vector.shape_cast %133 : vector<2x32xf32> to vector<1x2x32xf32>
    tpu.vector_store %arg6[%c1_94, %c0_95, %c0_96], %143 {strides = array<i32>} : memref<8x2x32xf32, #tpu.memory_space<vmem>>, vector<1x2x32xf32>,
    %c6_97 = arith.constant 6 : index
    %c0_98 = arith.constant 0 : index
    %c0_99 = arith.constant 0 : index
    %144 = vector.load %arg7[%c6_97, %c0_98, %c0_99] : memref<8x2x32xf32, #tpu.memory_space<vmem>>, vector<1x2x32xf32>
    %145 = vector.shape_cast %144 : vector<1x2x32xf32> to vector<2x32xf32>
    %146 = vector.shape_cast %136 : vector<2x32xf32> to vector<1x2x32xf32>
    tpu.vector_store %arg7[%c6_97, %c0_98, %c0_99], %146 {strides = array<i32>} : memref<8x2x32xf32, #tpu.memory_space<vmem>>, vector<1x2x32xf32>,
    %c2 = arith.constant 2 : index
    %c0_100 = arith.constant 0 : index
    %c0_101 = arith.constant 0 : index
    %147 = vector.load %arg8[%c2, %c0_100, %c0_101] : memref<8x2x128xf32, #tpu.memory_space<vmem>>, vector<1x2x128xf32>
    %148 = vector.shape_cast %147 : vector<1x2x128xf32> to vector<2x128xf32>
    %c0_102 = arith.constant 0 : index
    %c0_103 = arith.constant 0 : index
    %149 = vector.load %arg10[%c0_102, %c0_103] : memref<2x32xf32, #tpu.memory_space<vmem>>, vector<2x32xf32>
    %150 = arith.truncf %149 : vector<2x32xf32> to vector<2x32xbf16>
    %cst_104 = arith.constant dense<0.000000e+00> : vector<2x128xf32>
    %151 = tpu.matmul %150, %28, %cst_104 {dimension_numbers = #tpu.dot_dimension_numbers<[1], [0], [0], [1], [0, 0, 1, 1], [], []>} : vector<2x32xbf16>, vector<32x128xbf16>, vector<2x128xf32> -> vector<2x128xf32>
    %152 = arith.addf %148, %151 : vector<2x128xf32>
    %c5 = arith.constant 5 : index
    %c0_105 = arith.constant 0 : index
    %c0_106 = arith.constant 0 : index
    %153 = vector.load %arg9[%c5, %c0_105, %c0_106] : memref<8x2x128xf32, #tpu.memory_space<vmem>>, vector<1x2x128xf32>
    %154 = vector.shape_cast %153 : vector<1x2x128xf32> to vector<2x128xf32>
    %c0_107 = arith.constant 0 : index
    %c0_108 = arith.constant 0 : index
    %155 = vector.load %arg11[%c0_107, %c0_108] : memref<2x32xf32, #tpu.memory_space<vmem>>, vector<2x32xf32>
    %156 = arith.truncf %155 : vector<2x32xf32> to vector<2x32xbf16>
    %cst_109 = arith.constant dense<0.000000e+00> : vector<2x128xf32>
    %157 = tpu.matmul %156, %30, %cst_109 {dimension_numbers = #tpu.dot_dimension_numbers<[1], [0], [0], [1], [0, 0, 1, 1], [], []>} : vector<2x32xbf16>, vector<32x128xbf16>, vector<2x128xf32> -> vector<2x128xf32>
    %158 = arith.addf %154, %157 : vector<2x128xf32>
    %cst_110 = arith.constant 0.000000e+00 : f32
    %159 = vector.broadcast %cst_110 : f32 to vector<2x128xf32>
    %160 = arith.subf %159, %152 : vector<2x128xf32>
    %161 = math.exp %160 : vector<2x128xf32>
    %cst_111 = arith.constant 1.000000e+00 : f32
    %162 = vector.broadcast %cst_111 : f32 to vector<2x128xf32>
    %163 = arith.addf %162, %161 : vector<2x128xf32>
    %cst_112 = arith.constant 1.000000e+00 : f32
    %164 = vector.broadcast %cst_112 : f32 to vector<2x128xf32>
    %165 = arith.divf %164, %163 : vector<2x128xf32>
    %cst_113 = arith.constant 0.000000e+00 : f32
    %166 = vector.broadcast %cst_113 : f32 to vector<2x128xf32>
    %167 = arith.subf %166, %158 : vector<2x128xf32>
    %168 = math.exp %167 : vector<2x128xf32>
    %cst_114 = arith.constant 1.000000e+00 : f32
    %169 = vector.broadcast %cst_114 : f32 to vector<2x128xf32>
    %170 = arith.addf %169, %168 : vector<2x128xf32>
    %cst_115 = arith.constant 1.000000e+00 : f32
    %171 = vector.broadcast %cst_115 : f32 to vector<2x128xf32>
    %172 = arith.divf %171, %170 : vector<2x128xf32>
    %173 = vector.extract_strided_slice %152 {offsets = [0, 64], sizes = [2, 32], strides = [1, 1]} : vector<2x128xf32> to vector<2x32xf32>
    %174 = math.tanh %173 : vector<2x32xf32>
    %175 = vector.extract_strided_slice %158 {offsets = [0, 64], sizes = [2, 32], strides = [1, 1]} : vector<2x128xf32> to vector<2x32xf32>
    %176 = math.tanh %175 : vector<2x32xf32>
    %177 = vector.extract_strided_slice %165 {offsets = [0, 32], sizes = [2, 32], strides = [1, 1]} : vector<2x128xf32> to vector<2x32xf32>
    %c0_116 = arith.constant 0 : index
    %c0_117 = arith.constant 0 : index
    %178 = vector.load %arg12[%c0_116, %c0_117] : memref<2x32xf32, #tpu.memory_space<vmem>>, vector<2x32xf32>
    %179 = arith.mulf %177, %178 : vector<2x32xf32>
    %180 = vector.extract_strided_slice %165 {offsets = [0, 0], sizes = [2, 32], strides = [1, 1]} : vector<2x128xf32> to vector<2x32xf32>
    %181 = arith.mulf %180, %174 : vector<2x32xf32>
    %182 = arith.addf %179, %181 : vector<2x32xf32>
    %183 = vector.extract_strided_slice %172 {offsets = [0, 32], sizes = [2, 32], strides = [1, 1]} : vector<2x128xf32> to vector<2x32xf32>
    %c0_118 = arith.constant 0 : index
    %c0_119 = arith.constant 0 : index
    %184 = vector.load %arg13[%c0_118, %c0_119] : memref<2x32xf32, #tpu.memory_space<vmem>>, vector<2x32xf32>
    %185 = arith.mulf %183, %184 : vector<2x32xf32>
    %186 = vector.extract_strided_slice %172 {offsets = [0, 0], sizes = [2, 32], strides = [1, 1]} : vector<2x128xf32> to vector<2x32xf32>
    %187 = arith.mulf %186, %176 : vector<2x32xf32>
    %188 = arith.addf %185, %187 : vector<2x32xf32>
    %189 = vector.extract_strided_slice %165 {offsets = [0, 96], sizes = [2, 32], strides = [1, 1]} : vector<2x128xf32> to vector<2x32xf32>
    %190 = math.tanh %182 : vector<2x32xf32>
    %191 = arith.mulf %189, %190 : vector<2x32xf32>
    %192 = vector.extract_strided_slice %172 {offsets = [0, 96], sizes = [2, 32], strides = [1, 1]} : vector<2x128xf32> to vector<2x32xf32>
    %193 = math.tanh %188 : vector<2x32xf32>
    %194 = arith.mulf %192, %193 : vector<2x32xf32>
    %c0_120 = arith.constant 0 : index
    %c0_121 = arith.constant 0 : index
    %195 = vector.load %arg12[%c0_120, %c0_121] : memref<2x32xf32, #tpu.memory_space<vmem>>, vector<2x32xf32>
    tpu.vector_store %arg12[%c0_120, %c0_121], %182 {strides = array<i32>} : memref<2x32xf32, #tpu.memory_space<vmem>>, vector<2x32xf32>,
    %c0_122 = arith.constant 0 : index
    %c0_123 = arith.constant 0 : index
    %196 = vector.load %arg13[%c0_122, %c0_123] : memref<2x32xf32, #tpu.memory_space<vmem>>, vector<2x32xf32>
    tpu.vector_store %arg13[%c0_122, %c0_123], %188 {strides = array<i32>} : memref<2x32xf32, #tpu.memory_space<vmem>>, vector<2x32xf32>,
    %c0_124 = arith.constant 0 : index
    %c0_125 = arith.constant 0 : index
    %197 = vector.load %arg10[%c0_124, %c0_125] : memref<2x32xf32, #tpu.memory_space<vmem>>, vector<2x32xf32>
    tpu.vector_store %arg10[%c0_124, %c0_125], %191 {strides = array<i32>} : memref<2x32xf32, #tpu.memory_space<vmem>>, vector<2x32xf32>,
    %c0_126 = arith.constant 0 : index
    %c0_127 = arith.constant 0 : index
    %198 = vector.load %arg11[%c0_126, %c0_127] : memref<2x32xf32, #tpu.memory_space<vmem>>, vector<2x32xf32>
    tpu.vector_store %arg11[%c0_126, %c0_127], %194 {strides = array<i32>} : memref<2x32xf32, #tpu.memory_space<vmem>>, vector<2x32xf32>,
    %c2_128 = arith.constant 2 : index
    %c0_129 = arith.constant 0 : index
    %c0_130 = arith.constant 0 : index
    %199 = vector.load %arg6[%c2_128, %c0_129, %c0_130] : memref<8x2x32xf32, #tpu.memory_space<vmem>>, vector<1x2x32xf32>
    %200 = vector.shape_cast %199 : vector<1x2x32xf32> to vector<2x32xf32>
    %201 = vector.shape_cast %191 : vector<2x32xf32> to vector<1x2x32xf32>
    tpu.vector_store %arg6[%c2_128, %c0_129, %c0_130], %201 {strides = array<i32>} : memref<8x2x32xf32, #tpu.memory_space<vmem>>, vector<1x2x32xf32>,
    %c5_131 = arith.constant 5 : index
    %c0_132 = arith.constant 0 : index
    %c0_133 = arith.constant 0 : index
    %202 = vector.load %arg7[%c5_131, %c0_132, %c0_133] : memref<8x2x32xf32, #tpu.memory_space<vmem>>, vector<1x2x32xf32>
    %203 = vector.shape_cast %202 : vector<1x2x32xf32> to vector<2x32xf32>
    %204 = vector.shape_cast %194 : vector<2x32xf32> to vector<1x2x32xf32>
    tpu.vector_store %arg7[%c5_131, %c0_132, %c0_133], %204 {strides = array<i32>} : memref<8x2x32xf32, #tpu.memory_space<vmem>>, vector<1x2x32xf32>,
    %c3 = arith.constant 3 : index
    %c0_134 = arith.constant 0 : index
    %c0_135 = arith.constant 0 : index
    %205 = vector.load %arg8[%c3, %c0_134, %c0_135] : memref<8x2x128xf32, #tpu.memory_space<vmem>>, vector<1x2x128xf32>
    %206 = vector.shape_cast %205 : vector<1x2x128xf32> to vector<2x128xf32>
    %c0_136 = arith.constant 0 : index
    %c0_137 = arith.constant 0 : index
    %207 = vector.load %arg10[%c0_136, %c0_137] : memref<2x32xf32, #tpu.memory_space<vmem>>, vector<2x32xf32>
    %208 = arith.truncf %207 : vector<2x32xf32> to vector<2x32xbf16>
    %cst_138 = arith.constant dense<0.000000e+00> : vector<2x128xf32>
    %209 = tpu.matmul %208, %28, %cst_138 {dimension_numbers = #tpu.dot_dimension_numbers<[1], [0], [0], [1], [0, 0, 1, 1], [], []>} : vector<2x32xbf16>, vector<32x128xbf16>, vector<2x128xf32> -> vector<2x128xf32>
    %210 = arith.addf %206, %209 : vector<2x128xf32>
    %c4 = arith.constant 4 : index
    %c0_139 = arith.constant 0 : index
    %c0_140 = arith.constant 0 : index
    %211 = vector.load %arg9[%c4, %c0_139, %c0_140] : memref<8x2x128xf32, #tpu.memory_space<vmem>>, vector<1x2x128xf32>
    %212 = vector.shape_cast %211 : vector<1x2x128xf32> to vector<2x128xf32>
    %c0_141 = arith.constant 0 : index
    %c0_142 = arith.constant 0 : index
    %213 = vector.load %arg11[%c0_141, %c0_142] : memref<2x32xf32, #tpu.memory_space<vmem>>, vector<2x32xf32>
    %214 = arith.truncf %213 : vector<2x32xf32> to vector<2x32xbf16>
    %cst_143 = arith.constant dense<0.000000e+00> : vector<2x128xf32>
    %215 = tpu.matmul %214, %30, %cst_143 {dimension_numbers = #tpu.dot_dimension_numbers<[1], [0], [0], [1], [0, 0, 1, 1], [], []>} : vector<2x32xbf16>, vector<32x128xbf16>, vector<2x128xf32> -> vector<2x128xf32>
    %216 = arith.addf %212, %215 : vector<2x128xf32>
    %cst_144 = arith.constant 0.000000e+00 : f32
    %217 = vector.broadcast %cst_144 : f32 to vector<2x128xf32>
    %218 = arith.subf %217, %210 : vector<2x128xf32>
    %219 = math.exp %218 : vector<2x128xf32>
    %cst_145 = arith.constant 1.000000e+00 : f32
    %220 = vector.broadcast %cst_145 : f32 to vector<2x128xf32>
    %221 = arith.addf %220, %219 : vector<2x128xf32>
    %cst_146 = arith.constant 1.000000e+00 : f32
    %222 = vector.broadcast %cst_146 : f32 to vector<2x128xf32>
    %223 = arith.divf %222, %221 : vector<2x128xf32>
    %cst_147 = arith.constant 0.000000e+00 : f32
    %224 = vector.broadcast %cst_147 : f32 to vector<2x128xf32>
    %225 = arith.subf %224, %216 : vector<2x128xf32>
    %226 = math.exp %225 : vector<2x128xf32>
    %cst_148 = arith.constant 1.000000e+00 : f32
    %227 = vector.broadcast %cst_148 : f32 to vector<2x128xf32>
    %228 = arith.addf %227, %226 : vector<2x128xf32>
    %cst_149 = arith.constant 1.000000e+00 : f32
    %229 = vector.broadcast %cst_149 : f32 to vector<2x128xf32>
    %230 = arith.divf %229, %228 : vector<2x128xf32>
    %231 = vector.extract_strided_slice %210 {offsets = [0, 64], sizes = [2, 32], strides = [1, 1]} : vector<2x128xf32> to vector<2x32xf32>
    %232 = math.tanh %231 : vector<2x32xf32>
    %233 = vector.extract_strided_slice %216 {offsets = [0, 64], sizes = [2, 32], strides = [1, 1]} : vector<2x128xf32> to vector<2x32xf32>
    %234 = math.tanh %233 : vector<2x32xf32>
    %235 = vector.extract_strided_slice %223 {offsets = [0, 32], sizes = [2, 32], strides = [1, 1]} : vector<2x128xf32> to vector<2x32xf32>
    %c0_150 = arith.constant 0 : index
    %c0_151 = arith.constant 0 : index
    %236 = vector.load %arg12[%c0_150, %c0_151] : memref<2x32xf32, #tpu.memory_space<vmem>>, vector<2x32xf32>
    %237 = arith.mulf %235, %236 : vector<2x32xf32>
    %238 = vector.extract_strided_slice %223 {offsets = [0, 0], sizes = [2, 32], strides = [1, 1]} : vector<2x128xf32> to vector<2x32xf32>
    %239 = arith.mulf %238, %232 : vector<2x32xf32>
    %240 = arith.addf %237, %239 : vector<2x32xf32>
    %241 = vector.extract_strided_slice %230 {offsets = [0, 32], sizes = [2, 32], strides = [1, 1]} : vector<2x128xf32> to vector<2x32xf32>
    %c0_152 = arith.constant 0 : index
    %c0_153 = arith.constant 0 : index
    %242 = vector.load %arg13[%c0_152, %c0_153] : memref<2x32xf32, #tpu.memory_space<vmem>>, vector<2x32xf32>
    %243 = arith.mulf %241, %242 : vector<2x32xf32>
    %244 = vector.extract_strided_slice %230 {offsets = [0, 0], sizes = [2, 32], strides = [1, 1]} : vector<2x128xf32> to vector<2x32xf32>
    %245 = arith.mulf %244, %234 : vector<2x32xf32>
    %246 = arith.addf %243, %245 : vector<2x32xf32>
    %247 = vector.extract_strided_slice %223 {offsets = [0, 96], sizes = [2, 32], strides = [1, 1]} : vector<2x128xf32> to vector<2x32xf32>
    %248 = math.tanh %240 : vector<2x32xf32>
    %249 = arith.mulf %247, %248 : vector<2x32xf32>
    %250 = vector.extract_strided_slice %230 {offsets = [0, 96], sizes = [2, 32], strides = [1, 1]} : vector<2x128xf32> to vector<2x32xf32>
    %251 = math.tanh %246 : vector<2x32xf32>
    %252 = arith.mulf %250, %251 : vector<2x32xf32>
    %c0_154 = arith.constant 0 : index
    %c0_155 = arith.constant 0 : index
    %253 = vector.load %arg12[%c0_154, %c0_155] : memref<2x32xf32, #tpu.memory_space<vmem>>, vector<2x32xf32>
    tpu.vector_store %arg12[%c0_154, %c0_155], %240 {strides = array<i32>} : memref<2x32xf32, #tpu.memory_space<vmem>>, vector<2x32xf32>,
    %c0_156 = arith.constant 0 : index
    %c0_157 = arith.constant 0 : index
    %254 = vector.load %arg13[%c0_156, %c0_157] : memref<2x32xf32, #tpu.memory_space<vmem>>, vector<2x32xf32>
    tpu.vector_store %arg13[%c0_156, %c0_157], %246 {strides = array<i32>} : memref<2x32xf32, #tpu.memory_space<vmem>>, vector<2x32xf32>,
    %c0_158 = arith.constant 0 : index
    %c0_159 = arith.constant 0 : index
    %255 = vector.load %arg10[%c0_158, %c0_159] : memref<2x32xf32, #tpu.memory_space<vmem>>, vector<2x32xf32>
    tpu.vector_store %arg10[%c0_158, %c0_159], %249 {strides = array<i32>} : memref<2x32xf32, #tpu.memory_space<vmem>>, vector<2x32xf32>,
    %c0_160 = arith.constant 0 : index
    %c0_161 = arith.constant 0 : index
    %256 = vector.load %arg11[%c0_160, %c0_161] : memref<2x32xf32, #tpu.memory_space<vmem>>, vector<2x32xf32>
    tpu.vector_store %arg11[%c0_160, %c0_161], %252 {strides = array<i32>} : memref<2x32xf32, #tpu.memory_space<vmem>>, vector<2x32xf32>,
    %c3_162 = arith.constant 3 : index
    %c0_163 = arith.constant 0 : index
    %c0_164 = arith.constant 0 : index
    %257 = vector.load %arg6[%c3_162, %c0_163, %c0_164] : memref<8x2x32xf32, #tpu.memory_space<vmem>>, vector<1x2x32xf32>
    %258 = vector.shape_cast %257 : vector<1x2x32xf32> to vector<2x32xf32>
    %259 = vector.shape_cast %249 : vector<2x32xf32> to vector<1x2x32xf32>
    tpu.vector_store %arg6[%c3_162, %c0_163, %c0_164], %259 {strides = array<i32>} : memref<8x2x32xf32, #tpu.memory_space<vmem>>, vector<1x2x32xf32>,
    %c4_165 = arith.constant 4 : index
    %c0_166 = arith.constant 0 : index
    %c0_167 = arith.constant 0 : index
    %260 = vector.load %arg7[%c4_165, %c0_166, %c0_167] : memref<8x2x32xf32, #tpu.memory_space<vmem>>, vector<1x2x32xf32>
    %261 = vector.shape_cast %260 : vector<1x2x32xf32> to vector<2x32xf32>
    %262 = vector.shape_cast %252 : vector<2x32xf32> to vector<1x2x32xf32>
    tpu.vector_store %arg7[%c4_165, %c0_166, %c0_167], %262 {strides = array<i32>} : memref<8x2x32xf32, #tpu.memory_space<vmem>>, vector<1x2x32xf32>,
    %c4_168 = arith.constant 4 : index
    %c0_169 = arith.constant 0 : index
    %c0_170 = arith.constant 0 : index
    %263 = vector.load %arg8[%c4_168, %c0_169, %c0_170] : memref<8x2x128xf32, #tpu.memory_space<vmem>>, vector<1x2x128xf32>
    %264 = vector.shape_cast %263 : vector<1x2x128xf32> to vector<2x128xf32>
    %c0_171 = arith.constant 0 : index
    %c0_172 = arith.constant 0 : index
    %265 = vector.load %arg10[%c0_171, %c0_172] : memref<2x32xf32, #tpu.memory_space<vmem>>, vector<2x32xf32>
    %266 = arith.truncf %265 : vector<2x32xf32> to vector<2x32xbf16>
    %cst_173 = arith.constant dense<0.000000e+00> : vector<2x128xf32>
    %267 = tpu.matmul %266, %28, %cst_173 {dimension_numbers = #tpu.dot_dimension_numbers<[1], [0], [0], [1], [0, 0, 1, 1], [], []>} : vector<2x32xbf16>, vector<32x128xbf16>, vector<2x128xf32> -> vector<2x128xf32>
    %268 = arith.addf %264, %267 : vector<2x128xf32>
    %c3_174 = arith.constant 3 : index
    %c0_175 = arith.constant 0 : index
    %c0_176 = arith.constant 0 : index
    %269 = vector.load %arg9[%c3_174, %c0_175, %c0_176] : memref<8x2x128xf32, #tpu.memory_space<vmem>>, vector<1x2x128xf32>
    %270 = vector.shape_cast %269 : vector<1x2x128xf32> to vector<2x128xf32>
    %c0_177 = arith.constant 0 : index
    %c0_178 = arith.constant 0 : index
    %271 = vector.load %arg11[%c0_177, %c0_178] : memref<2x32xf32, #tpu.memory_space<vmem>>, vector<2x32xf32>
    %272 = arith.truncf %271 : vector<2x32xf32> to vector<2x32xbf16>
    %cst_179 = arith.constant dense<0.000000e+00> : vector<2x128xf32>
    %273 = tpu.matmul %272, %30, %cst_179 {dimension_numbers = #tpu.dot_dimension_numbers<[1], [0], [0], [1], [0, 0, 1, 1], [], []>} : vector<2x32xbf16>, vector<32x128xbf16>, vector<2x128xf32> -> vector<2x128xf32>
    %274 = arith.addf %270, %273 : vector<2x128xf32>
    %cst_180 = arith.constant 0.000000e+00 : f32
    %275 = vector.broadcast %cst_180 : f32 to vector<2x128xf32>
    %276 = arith.subf %275, %268 : vector<2x128xf32>
    %277 = math.exp %276 : vector<2x128xf32>
    %cst_181 = arith.constant 1.000000e+00 : f32
    %278 = vector.broadcast %cst_181 : f32 to vector<2x128xf32>
    %279 = arith.addf %278, %277 : vector<2x128xf32>
    %cst_182 = arith.constant 1.000000e+00 : f32
    %280 = vector.broadcast %cst_182 : f32 to vector<2x128xf32>
    %281 = arith.divf %280, %279 : vector<2x128xf32>
    %cst_183 = arith.constant 0.000000e+00 : f32
    %282 = vector.broadcast %cst_183 : f32 to vector<2x128xf32>
    %283 = arith.subf %282, %274 : vector<2x128xf32>
    %284 = math.exp %283 : vector<2x128xf32>
    %cst_184 = arith.constant 1.000000e+00 : f32
    %285 = vector.broadcast %cst_184 : f32 to vector<2x128xf32>
    %286 = arith.addf %285, %284 : vector<2x128xf32>
    %cst_185 = arith.constant 1.000000e+00 : f32
    %287 = vector.broadcast %cst_185 : f32 to vector<2x128xf32>
    %288 = arith.divf %287, %286 : vector<2x128xf32>
    %289 = vector.extract_strided_slice %268 {offsets = [0, 64], sizes = [2, 32], strides = [1, 1]} : vector<2x128xf32> to vector<2x32xf32>
    %290 = math.tanh %289 : vector<2x32xf32>
    %291 = vector.extract_strided_slice %274 {offsets = [0, 64], sizes = [2, 32], strides = [1, 1]} : vector<2x128xf32> to vector<2x32xf32>
    %292 = math.tanh %291 : vector<2x32xf32>
    %293 = vector.extract_strided_slice %281 {offsets = [0, 32], sizes = [2, 32], strides = [1, 1]} : vector<2x128xf32> to vector<2x32xf32>
    %c0_186 = arith.constant 0 : index
    %c0_187 = arith.constant 0 : index
    %294 = vector.load %arg12[%c0_186, %c0_187] : memref<2x32xf32, #tpu.memory_space<vmem>>, vector<2x32xf32>
    %295 = arith.mulf %293, %294 : vector<2x32xf32>
    %296 = vector.extract_strided_slice %281 {offsets = [0, 0], sizes = [2, 32], strides = [1, 1]} : vector<2x128xf32> to vector<2x32xf32>
    %297 = arith.mulf %296, %290 : vector<2x32xf32>
    %298 = arith.addf %295, %297 : vector<2x32xf32>
    %299 = vector.extract_strided_slice %288 {offsets = [0, 32], sizes = [2, 32], strides = [1, 1]} : vector<2x128xf32> to vector<2x32xf32>
    %c0_188 = arith.constant 0 : index
    %c0_189 = arith.constant 0 : index
    %300 = vector.load %arg13[%c0_188, %c0_189] : memref<2x32xf32, #tpu.memory_space<vmem>>, vector<2x32xf32>
    %301 = arith.mulf %299, %300 : vector<2x32xf32>
    %302 = vector.extract_strided_slice %288 {offsets = [0, 0], sizes = [2, 32], strides = [1, 1]} : vector<2x128xf32> to vector<2x32xf32>
    %303 = arith.mulf %302, %292 : vector<2x32xf32>
    %304 = arith.addf %301, %303 : vector<2x32xf32>
    %305 = vector.extract_strided_slice %281 {offsets = [0, 96], sizes = [2, 32], strides = [1, 1]} : vector<2x128xf32> to vector<2x32xf32>
    %306 = math.tanh %298 : vector<2x32xf32>
    %307 = arith.mulf %305, %306 : vector<2x32xf32>
    %308 = vector.extract_strided_slice %288 {offsets = [0, 96], sizes = [2, 32], strides = [1, 1]} : vector<2x128xf32> to vector<2x32xf32>
    %309 = math.tanh %304 : vector<2x32xf32>
    %310 = arith.mulf %308, %309 : vector<2x32xf32>
    %c0_190 = arith.constant 0 : index
    %c0_191 = arith.constant 0 : index
    %311 = vector.load %arg12[%c0_190, %c0_191] : memref<2x32xf32, #tpu.memory_space<vmem>>, vector<2x32xf32>
    tpu.vector_store %arg12[%c0_190, %c0_191], %298 {strides = array<i32>} : memref<2x32xf32, #tpu.memory_space<vmem>>, vector<2x32xf32>,
    %c0_192 = arith.constant 0 : index
    %c0_193 = arith.constant 0 : index
    %312 = vector.load %arg13[%c0_192, %c0_193] : memref<2x32xf32, #tpu.memory_space<vmem>>, vector<2x32xf32>
    tpu.vector_store %arg13[%c0_192, %c0_193], %304 {strides = array<i32>} : memref<2x32xf32, #tpu.memory_space<vmem>>, vector<2x32xf32>,
    %c0_194 = arith.constant 0 : index
    %c0_195 = arith.constant 0 : index
    %313 = vector.load %arg10[%c0_194, %c0_195] : memref<2x32xf32, #tpu.memory_space<vmem>>, vector<2x32xf32>
    tpu.vector_store %arg10[%c0_194, %c0_195], %307 {strides = array<i32>} : memref<2x32xf32, #tpu.memory_space<vmem>>, vector<2x32xf32>,
    %c0_196 = arith.constant 0 : index
    %c0_197 = arith.constant 0 : index
    %314 = vector.load %arg11[%c0_196, %c0_197] : memref<2x32xf32, #tpu.memory_space<vmem>>, vector<2x32xf32>
    tpu.vector_store %arg11[%c0_196, %c0_197], %310 {strides = array<i32>} : memref<2x32xf32, #tpu.memory_space<vmem>>, vector<2x32xf32>,
    %c4_198 = arith.constant 4 : index
    %c0_199 = arith.constant 0 : index
    %c0_200 = arith.constant 0 : index
    %315 = vector.load %arg6[%c4_198, %c0_199, %c0_200] : memref<8x2x32xf32, #tpu.memory_space<vmem>>, vector<1x2x32xf32>
    %316 = vector.shape_cast %315 : vector<1x2x32xf32> to vector<2x32xf32>
    %317 = vector.shape_cast %307 : vector<2x32xf32> to vector<1x2x32xf32>
    tpu.vector_store %arg6[%c4_198, %c0_199, %c0_200], %317 {strides = array<i32>} : memref<8x2x32xf32, #tpu.memory_space<vmem>>, vector<1x2x32xf32>,
    %c3_201 = arith.constant 3 : index
    %c0_202 = arith.constant 0 : index
    %c0_203 = arith.constant 0 : index
    %318 = vector.load %arg7[%c3_201, %c0_202, %c0_203] : memref<8x2x32xf32, #tpu.memory_space<vmem>>, vector<1x2x32xf32>
    %319 = vector.shape_cast %318 : vector<1x2x32xf32> to vector<2x32xf32>
    %320 = vector.shape_cast %310 : vector<2x32xf32> to vector<1x2x32xf32>
    tpu.vector_store %arg7[%c3_201, %c0_202, %c0_203], %320 {strides = array<i32>} : memref<8x2x32xf32, #tpu.memory_space<vmem>>, vector<1x2x32xf32>,
    %c5_204 = arith.constant 5 : index
    %c0_205 = arith.constant 0 : index
    %c0_206 = arith.constant 0 : index
    %321 = vector.load %arg8[%c5_204, %c0_205, %c0_206] : memref<8x2x128xf32, #tpu.memory_space<vmem>>, vector<1x2x128xf32>
    %322 = vector.shape_cast %321 : vector<1x2x128xf32> to vector<2x128xf32>
    %c0_207 = arith.constant 0 : index
    %c0_208 = arith.constant 0 : index
    %323 = vector.load %arg10[%c0_207, %c0_208] : memref<2x32xf32, #tpu.memory_space<vmem>>, vector<2x32xf32>
    %324 = arith.truncf %323 : vector<2x32xf32> to vector<2x32xbf16>
    %cst_209 = arith.constant dense<0.000000e+00> : vector<2x128xf32>
    %325 = tpu.matmul %324, %28, %cst_209 {dimension_numbers = #tpu.dot_dimension_numbers<[1], [0], [0], [1], [0, 0, 1, 1], [], []>} : vector<2x32xbf16>, vector<32x128xbf16>, vector<2x128xf32> -> vector<2x128xf32>
    %326 = arith.addf %322, %325 : vector<2x128xf32>
    %c2_210 = arith.constant 2 : index
    %c0_211 = arith.constant 0 : index
    %c0_212 = arith.constant 0 : index
    %327 = vector.load %arg9[%c2_210, %c0_211, %c0_212] : memref<8x2x128xf32, #tpu.memory_space<vmem>>, vector<1x2x128xf32>
    %328 = vector.shape_cast %327 : vector<1x2x128xf32> to vector<2x128xf32>
    %c0_213 = arith.constant 0 : index
    %c0_214 = arith.constant 0 : index
    %329 = vector.load %arg11[%c0_213, %c0_214] : memref<2x32xf32, #tpu.memory_space<vmem>>, vector<2x32xf32>
    %330 = arith.truncf %329 : vector<2x32xf32> to vector<2x32xbf16>
    %cst_215 = arith.constant dense<0.000000e+00> : vector<2x128xf32>
    %331 = tpu.matmul %330, %30, %cst_215 {dimension_numbers = #tpu.dot_dimension_numbers<[1], [0], [0], [1], [0, 0, 1, 1], [], []>} : vector<2x32xbf16>, vector<32x128xbf16>, vector<2x128xf32> -> vector<2x128xf32>
    %332 = arith.addf %328, %331 : vector<2x128xf32>
    %cst_216 = arith.constant 0.000000e+00 : f32
    %333 = vector.broadcast %cst_216 : f32 to vector<2x128xf32>
    %334 = arith.subf %333, %326 : vector<2x128xf32>
    %335 = math.exp %334 : vector<2x128xf32>
    %cst_217 = arith.constant 1.000000e+00 : f32
    %336 = vector.broadcast %cst_217 : f32 to vector<2x128xf32>
    %337 = arith.addf %336, %335 : vector<2x128xf32>
    %cst_218 = arith.constant 1.000000e+00 : f32
    %338 = vector.broadcast %cst_218 : f32 to vector<2x128xf32>
    %339 = arith.divf %338, %337 : vector<2x128xf32>
    %cst_219 = arith.constant 0.000000e+00 : f32
    %340 = vector.broadcast %cst_219 : f32 to vector<2x128xf32>
    %341 = arith.subf %340, %332 : vector<2x128xf32>
    %342 = math.exp %341 : vector<2x128xf32>
    %cst_220 = arith.constant 1.000000e+00 : f32
    %343 = vector.broadcast %cst_220 : f32 to vector<2x128xf32>
    %344 = arith.addf %343, %342 : vector<2x128xf32>
    %cst_221 = arith.constant 1.000000e+00 : f32
    %345 = vector.broadcast %cst_221 : f32 to vector<2x128xf32>
    %346 = arith.divf %345, %344 : vector<2x128xf32>
    %347 = vector.extract_strided_slice %326 {offsets = [0, 64], sizes = [2, 32], strides = [1, 1]} : vector<2x128xf32> to vector<2x32xf32>
    %348 = math.tanh %347 : vector<2x32xf32>
    %349 = vector.extract_strided_slice %332 {offsets = [0, 64], sizes = [2, 32], strides = [1, 1]} : vector<2x128xf32> to vector<2x32xf32>
    %350 = math.tanh %349 : vector<2x32xf32>
    %351 = vector.extract_strided_slice %339 {offsets = [0, 32], sizes = [2, 32], strides = [1, 1]} : vector<2x128xf32> to vector<2x32xf32>
    %c0_222 = arith.constant 0 : index
    %c0_223 = arith.constant 0 : index
    %352 = vector.load %arg12[%c0_222, %c0_223] : memref<2x32xf32, #tpu.memory_space<vmem>>, vector<2x32xf32>
    %353 = arith.mulf %351, %352 : vector<2x32xf32>
    %354 = vector.extract_strided_slice %339 {offsets = [0, 0], sizes = [2, 32], strides = [1, 1]} : vector<2x128xf32> to vector<2x32xf32>
    %355 = arith.mulf %354, %348 : vector<2x32xf32>
    %356 = arith.addf %353, %355 : vector<2x32xf32>
    %357 = vector.extract_strided_slice %346 {offsets = [0, 32], sizes = [2, 32], strides = [1, 1]} : vector<2x128xf32> to vector<2x32xf32>
    %c0_224 = arith.constant 0 : index
    %c0_225 = arith.constant 0 : index
    %358 = vector.load %arg13[%c0_224, %c0_225] : memref<2x32xf32, #tpu.memory_space<vmem>>, vector<2x32xf32>
    %359 = arith.mulf %357, %358 : vector<2x32xf32>
    %360 = vector.extract_strided_slice %346 {offsets = [0, 0], sizes = [2, 32], strides = [1, 1]} : vector<2x128xf32> to vector<2x32xf32>
    %361 = arith.mulf %360, %350 : vector<2x32xf32>
    %362 = arith.addf %359, %361 : vector<2x32xf32>
    %363 = vector.extract_strided_slice %339 {offsets = [0, 96], sizes = [2, 32], strides = [1, 1]} : vector<2x128xf32> to vector<2x32xf32>
    %364 = math.tanh %356 : vector<2x32xf32>
    %365 = arith.mulf %363, %364 : vector<2x32xf32>
    %366 = vector.extract_strided_slice %346 {offsets = [0, 96], sizes = [2, 32], strides = [1, 1]} : vector<2x128xf32> to vector<2x32xf32>
    %367 = math.tanh %362 : vector<2x32xf32>
    %368 = arith.mulf %366, %367 : vector<2x32xf32>
    %c0_226 = arith.constant 0 : index
    %c0_227 = arith.constant 0 : index
    %369 = vector.load %arg12[%c0_226, %c0_227] : memref<2x32xf32, #tpu.memory_space<vmem>>, vector<2x32xf32>
    tpu.vector_store %arg12[%c0_226, %c0_227], %356 {strides = array<i32>} : memref<2x32xf32, #tpu.memory_space<vmem>>, vector<2x32xf32>,
    %c0_228 = arith.constant 0 : index
    %c0_229 = arith.constant 0 : index
    %370 = vector.load %arg13[%c0_228, %c0_229] : memref<2x32xf32, #tpu.memory_space<vmem>>, vector<2x32xf32>
    tpu.vector_store %arg13[%c0_228, %c0_229], %362 {strides = array<i32>} : memref<2x32xf32, #tpu.memory_space<vmem>>, vector<2x32xf32>,
    %c0_230 = arith.constant 0 : index
    %c0_231 = arith.constant 0 : index
    %371 = vector.load %arg10[%c0_230, %c0_231] : memref<2x32xf32, #tpu.memory_space<vmem>>, vector<2x32xf32>
    tpu.vector_store %arg10[%c0_230, %c0_231], %365 {strides = array<i32>} : memref<2x32xf32, #tpu.memory_space<vmem>>, vector<2x32xf32>,
    %c0_232 = arith.constant 0 : index
    %c0_233 = arith.constant 0 : index
    %372 = vector.load %arg11[%c0_232, %c0_233] : memref<2x32xf32, #tpu.memory_space<vmem>>, vector<2x32xf32>
    tpu.vector_store %arg11[%c0_232, %c0_233], %368 {strides = array<i32>} : memref<2x32xf32, #tpu.memory_space<vmem>>, vector<2x32xf32>,
    %c5_234 = arith.constant 5 : index
    %c0_235 = arith.constant 0 : index
    %c0_236 = arith.constant 0 : index
    %373 = vector.load %arg6[%c5_234, %c0_235, %c0_236] : memref<8x2x32xf32, #tpu.memory_space<vmem>>, vector<1x2x32xf32>
    %374 = vector.shape_cast %373 : vector<1x2x32xf32> to vector<2x32xf32>
    %375 = vector.shape_cast %365 : vector<2x32xf32> to vector<1x2x32xf32>
    tpu.vector_store %arg6[%c5_234, %c0_235, %c0_236], %375 {strides = array<i32>} : memref<8x2x32xf32, #tpu.memory_space<vmem>>, vector<1x2x32xf32>,
    %c2_237 = arith.constant 2 : index
    %c0_238 = arith.constant 0 : index
    %c0_239 = arith.constant 0 : index
    %376 = vector.load %arg7[%c2_237, %c0_238, %c0_239] : memref<8x2x32xf32, #tpu.memory_space<vmem>>, vector<1x2x32xf32>
    %377 = vector.shape_cast %376 : vector<1x2x32xf32> to vector<2x32xf32>
    %378 = vector.shape_cast %368 : vector<2x32xf32> to vector<1x2x32xf32>
    tpu.vector_store %arg7[%c2_237, %c0_238, %c0_239], %378 {strides = array<i32>} : memref<8x2x32xf32, #tpu.memory_space<vmem>>, vector<1x2x32xf32>,
    %c6_240 = arith.constant 6 : index
    %c0_241 = arith.constant 0 : index
    %c0_242 = arith.constant 0 : index
    %379 = vector.load %arg8[%c6_240, %c0_241, %c0_242] : memref<8x2x128xf32, #tpu.memory_space<vmem>>, vector<1x2x128xf32>
    %380 = vector.shape_cast %379 : vector<1x2x128xf32> to vector<2x128xf32>
    %c0_243 = arith.constant 0 : index
    %c0_244 = arith.constant 0 : index
    %381 = vector.load %arg10[%c0_243, %c0_244] : memref<2x32xf32, #tpu.memory_space<vmem>>, vector<2x32xf32>
    %382 = arith.truncf %381 : vector<2x32xf32> to vector<2x32xbf16>
    %cst_245 = arith.constant dense<0.000000e+00> : vector<2x128xf32>
    %383 = tpu.matmul %382, %28, %cst_245 {dimension_numbers = #tpu.dot_dimension_numbers<[1], [0], [0], [1], [0, 0, 1, 1], [], []>} : vector<2x32xbf16>, vector<32x128xbf16>, vector<2x128xf32> -> vector<2x128xf32>
    %384 = arith.addf %380, %383 : vector<2x128xf32>
    %c1_246 = arith.constant 1 : index
    %c0_247 = arith.constant 0 : index
    %c0_248 = arith.constant 0 : index
    %385 = vector.load %arg9[%c1_246, %c0_247, %c0_248] : memref<8x2x128xf32, #tpu.memory_space<vmem>>, vector<1x2x128xf32>
    %386 = vector.shape_cast %385 : vector<1x2x128xf32> to vector<2x128xf32>
    %c0_249 = arith.constant 0 : index
    %c0_250 = arith.constant 0 : index
    %387 = vector.load %arg11[%c0_249, %c0_250] : memref<2x32xf32, #tpu.memory_space<vmem>>, vector<2x32xf32>
    %388 = arith.truncf %387 : vector<2x32xf32> to vector<2x32xbf16>
    %cst_251 = arith.constant dense<0.000000e+00> : vector<2x128xf32>
    %389 = tpu.matmul %388, %30, %cst_251 {dimension_numbers = #tpu.dot_dimension_numbers<[1], [0], [0], [1], [0, 0, 1, 1], [], []>} : vector<2x32xbf16>, vector<32x128xbf16>, vector<2x128xf32> -> vector<2x128xf32>
    %390 = arith.addf %386, %389 : vector<2x128xf32>
    %cst_252 = arith.constant 0.000000e+00 : f32
    %391 = vector.broadcast %cst_252 : f32 to vector<2x128xf32>
    %392 = arith.subf %391, %384 : vector<2x128xf32>
    %393 = math.exp %392 : vector<2x128xf32>
    %cst_253 = arith.constant 1.000000e+00 : f32
    %394 = vector.broadcast %cst_253 : f32 to vector<2x128xf32>
    %395 = arith.addf %394, %393 : vector<2x128xf32>
    %cst_254 = arith.constant 1.000000e+00 : f32
    %396 = vector.broadcast %cst_254 : f32 to vector<2x128xf32>
    %397 = arith.divf %396, %395 : vector<2x128xf32>
    %cst_255 = arith.constant 0.000000e+00 : f32
    %398 = vector.broadcast %cst_255 : f32 to vector<2x128xf32>
    %399 = arith.subf %398, %390 : vector<2x128xf32>
    %400 = math.exp %399 : vector<2x128xf32>
    %cst_256 = arith.constant 1.000000e+00 : f32
    %401 = vector.broadcast %cst_256 : f32 to vector<2x128xf32>
    %402 = arith.addf %401, %400 : vector<2x128xf32>
    %cst_257 = arith.constant 1.000000e+00 : f32
    %403 = vector.broadcast %cst_257 : f32 to vector<2x128xf32>
    %404 = arith.divf %403, %402 : vector<2x128xf32>
    %405 = vector.extract_strided_slice %384 {offsets = [0, 64], sizes = [2, 32], strides = [1, 1]} : vector<2x128xf32> to vector<2x32xf32>
    %406 = math.tanh %405 : vector<2x32xf32>
    %407 = vector.extract_strided_slice %390 {offsets = [0, 64], sizes = [2, 32], strides = [1, 1]} : vector<2x128xf32> to vector<2x32xf32>
    %408 = math.tanh %407 : vector<2x32xf32>
    %409 = vector.extract_strided_slice %397 {offsets = [0, 32], sizes = [2, 32], strides = [1, 1]} : vector<2x128xf32> to vector<2x32xf32>
    %c0_258 = arith.constant 0 : index
    %c0_259 = arith.constant 0 : index
    %410 = vector.load %arg12[%c0_258, %c0_259] : memref<2x32xf32, #tpu.memory_space<vmem>>, vector<2x32xf32>
    %411 = arith.mulf %409, %410 : vector<2x32xf32>
    %412 = vector.extract_strided_slice %397 {offsets = [0, 0], sizes = [2, 32], strides = [1, 1]} : vector<2x128xf32> to vector<2x32xf32>
    %413 = arith.mulf %412, %406 : vector<2x32xf32>
    %414 = arith.addf %411, %413 : vector<2x32xf32>
    %415 = vector.extract_strided_slice %404 {offsets = [0, 32], sizes = [2, 32], strides = [1, 1]} : vector<2x128xf32> to vector<2x32xf32>
    %c0_260 = arith.constant 0 : index
    %c0_261 = arith.constant 0 : index
    %416 = vector.load %arg13[%c0_260, %c0_261] : memref<2x32xf32, #tpu.memory_space<vmem>>, vector<2x32xf32>
    %417 = arith.mulf %415, %416 : vector<2x32xf32>
    %418 = vector.extract_strided_slice %404 {offsets = [0, 0], sizes = [2, 32], strides = [1, 1]} : vector<2x128xf32> to vector<2x32xf32>
    %419 = arith.mulf %418, %408 : vector<2x32xf32>
    %420 = arith.addf %417, %419 : vector<2x32xf32>
    %421 = vector.extract_strided_slice %397 {offsets = [0, 96], sizes = [2, 32], strides = [1, 1]} : vector<2x128xf32> to vector<2x32xf32>
    %422 = math.tanh %414 : vector<2x32xf32>
    %423 = arith.mulf %421, %422 : vector<2x32xf32>
    %424 = vector.extract_strided_slice %404 {offsets = [0, 96], sizes = [2, 32], strides = [1, 1]} : vector<2x128xf32> to vector<2x32xf32>
    %425 = math.tanh %420 : vector<2x32xf32>
    %426 = arith.mulf %424, %425 : vector<2x32xf32>
    %c0_262 = arith.constant 0 : index
    %c0_263 = arith.constant 0 : index
    %427 = vector.load %arg12[%c0_262, %c0_263] : memref<2x32xf32, #tpu.memory_space<vmem>>, vector<2x32xf32>
    tpu.vector_store %arg12[%c0_262, %c0_263], %414 {strides = array<i32>} : memref<2x32xf32, #tpu.memory_space<vmem>>, vector<2x32xf32>,
    %c0_264 = arith.constant 0 : index
    %c0_265 = arith.constant 0 : index
    %428 = vector.load %arg13[%c0_264, %c0_265] : memref<2x32xf32, #tpu.memory_space<vmem>>, vector<2x32xf32>
    tpu.vector_store %arg13[%c0_264, %c0_265], %420 {strides = array<i32>} : memref<2x32xf32, #tpu.memory_space<vmem>>, vector<2x32xf32>,
    %c0_266 = arith.constant 0 : index
    %c0_267 = arith.constant 0 : index
    %429 = vector.load %arg10[%c0_266, %c0_267] : memref<2x32xf32, #tpu.memory_space<vmem>>, vector<2x32xf32>
    tpu.vector_store %arg10[%c0_266, %c0_267], %423 {strides = array<i32>} : memref<2x32xf32, #tpu.memory_space<vmem>>, vector<2x32xf32>,
    %c0_268 = arith.constant 0 : index
    %c0_269 = arith.constant 0 : index
    %430 = vector.load %arg11[%c0_268, %c0_269] : memref<2x32xf32, #tpu.memory_space<vmem>>, vector<2x32xf32>
    tpu.vector_store %arg11[%c0_268, %c0_269], %426 {strides = array<i32>} : memref<2x32xf32, #tpu.memory_space<vmem>>, vector<2x32xf32>,
    %c6_270 = arith.constant 6 : index
    %c0_271 = arith.constant 0 : index
    %c0_272 = arith.constant 0 : index
    %431 = vector.load %arg6[%c6_270, %c0_271, %c0_272] : memref<8x2x32xf32, #tpu.memory_space<vmem>>, vector<1x2x32xf32>
    %432 = vector.shape_cast %431 : vector<1x2x32xf32> to vector<2x32xf32>
    %433 = vector.shape_cast %423 : vector<2x32xf32> to vector<1x2x32xf32>
    tpu.vector_store %arg6[%c6_270, %c0_271, %c0_272], %433 {strides = array<i32>} : memref<8x2x32xf32, #tpu.memory_space<vmem>>, vector<1x2x32xf32>,
    %c1_273 = arith.constant 1 : index
    %c0_274 = arith.constant 0 : index
    %c0_275 = arith.constant 0 : index
    %434 = vector.load %arg7[%c1_273, %c0_274, %c0_275] : memref<8x2x32xf32, #tpu.memory_space<vmem>>, vector<1x2x32xf32>
    %435 = vector.shape_cast %434 : vector<1x2x32xf32> to vector<2x32xf32>
    %436 = vector.shape_cast %426 : vector<2x32xf32> to vector<1x2x32xf32>
    tpu.vector_store %arg7[%c1_273, %c0_274, %c0_275], %436 {strides = array<i32>} : memref<8x2x32xf32, #tpu.memory_space<vmem>>, vector<1x2x32xf32>,
    %c7_276 = arith.constant 7 : index
    %c0_277 = arith.constant 0 : index
    %c0_278 = arith.constant 0 : index
    %437 = vector.load %arg8[%c7_276, %c0_277, %c0_278] : memref<8x2x128xf32, #tpu.memory_space<vmem>>, vector<1x2x128xf32>
    %438 = vector.shape_cast %437 : vector<1x2x128xf32> to vector<2x128xf32>
    %c0_279 = arith.constant 0 : index
    %c0_280 = arith.constant 0 : index
    %439 = vector.load %arg10[%c0_279, %c0_280] : memref<2x32xf32, #tpu.memory_space<vmem>>, vector<2x32xf32>
    %440 = arith.truncf %439 : vector<2x32xf32> to vector<2x32xbf16>
    %cst_281 = arith.constant dense<0.000000e+00> : vector<2x128xf32>
    %441 = tpu.matmul %440, %28, %cst_281 {dimension_numbers = #tpu.dot_dimension_numbers<[1], [0], [0], [1], [0, 0, 1, 1], [], []>} : vector<2x32xbf16>, vector<32x128xbf16>, vector<2x128xf32> -> vector<2x128xf32>
    %442 = arith.addf %438, %441 : vector<2x128xf32>
    %c0_282 = arith.constant 0 : index
    %c0_283 = arith.constant 0 : index
    %c0_284 = arith.constant 0 : index
    %443 = vector.load %arg9[%c0_282, %c0_283, %c0_284] : memref<8x2x128xf32, #tpu.memory_space<vmem>>, vector<1x2x128xf32>
    %444 = vector.shape_cast %443 : vector<1x2x128xf32> to vector<2x128xf32>
    %c0_285 = arith.constant 0 : index
    %c0_286 = arith.constant 0 : index
    %445 = vector.load %arg11[%c0_285, %c0_286] : memref<2x32xf32, #tpu.memory_space<vmem>>, vector<2x32xf32>
    %446 = arith.truncf %445 : vector<2x32xf32> to vector<2x32xbf16>
    %cst_287 = arith.constant dense<0.000000e+00> : vector<2x128xf32>
    %447 = tpu.matmul %446, %30, %cst_287 {dimension_numbers = #tpu.dot_dimension_numbers<[1], [0], [0], [1], [0, 0, 1, 1], [], []>} : vector<2x32xbf16>, vector<32x128xbf16>, vector<2x128xf32> -> vector<2x128xf32>
    %448 = arith.addf %444, %447 : vector<2x128xf32>
    %cst_288 = arith.constant 0.000000e+00 : f32
    %449 = vector.broadcast %cst_288 : f32 to vector<2x128xf32>
    %450 = arith.subf %449, %442 : vector<2x128xf32>
    %451 = math.exp %450 : vector<2x128xf32>
    %cst_289 = arith.constant 1.000000e+00 : f32
    %452 = vector.broadcast %cst_289 : f32 to vector<2x128xf32>
    %453 = arith.addf %452, %451 : vector<2x128xf32>
    %cst_290 = arith.constant 1.000000e+00 : f32
    %454 = vector.broadcast %cst_290 : f32 to vector<2x128xf32>
    %455 = arith.divf %454, %453 : vector<2x128xf32>
    %cst_291 = arith.constant 0.000000e+00 : f32
    %456 = vector.broadcast %cst_291 : f32 to vector<2x128xf32>
    %457 = arith.subf %456, %448 : vector<2x128xf32>
    %458 = math.exp %457 : vector<2x128xf32>
    %cst_292 = arith.constant 1.000000e+00 : f32
    %459 = vector.broadcast %cst_292 : f32 to vector<2x128xf32>
    %460 = arith.addf %459, %458 : vector<2x128xf32>
    %cst_293 = arith.constant 1.000000e+00 : f32
    %461 = vector.broadcast %cst_293 : f32 to vector<2x128xf32>
    %462 = arith.divf %461, %460 : vector<2x128xf32>
    %463 = vector.extract_strided_slice %442 {offsets = [0, 64], sizes = [2, 32], strides = [1, 1]} : vector<2x128xf32> to vector<2x32xf32>
    %464 = math.tanh %463 : vector<2x32xf32>
    %465 = vector.extract_strided_slice %448 {offsets = [0, 64], sizes = [2, 32], strides = [1, 1]} : vector<2x128xf32> to vector<2x32xf32>
    %466 = math.tanh %465 : vector<2x32xf32>
    %467 = vector.extract_strided_slice %455 {offsets = [0, 32], sizes = [2, 32], strides = [1, 1]} : vector<2x128xf32> to vector<2x32xf32>
    %c0_294 = arith.constant 0 : index
    %c0_295 = arith.constant 0 : index
    %468 = vector.load %arg12[%c0_294, %c0_295] : memref<2x32xf32, #tpu.memory_space<vmem>>, vector<2x32xf32>
    %469 = arith.mulf %467, %468 : vector<2x32xf32>
    %470 = vector.extract_strided_slice %455 {offsets = [0, 0], sizes = [2, 32], strides = [1, 1]} : vector<2x128xf32> to vector<2x32xf32>
    %471 = arith.mulf %470, %464 : vector<2x32xf32>
    %472 = arith.addf %469, %471 : vector<2x32xf32>
    %473 = vector.extract_strided_slice %462 {offsets = [0, 32], sizes = [2, 32], strides = [1, 1]} : vector<2x128xf32> to vector<2x32xf32>
    %c0_296 = arith.constant 0 : index
    %c0_297 = arith.constant 0 : index
    %474 = vector.load %arg13[%c0_296, %c0_297] : memref<2x32xf32, #tpu.memory_space<vmem>>, vector<2x32xf32>
    %475 = arith.mulf %473, %474 : vector<2x32xf32>
    %476 = vector.extract_strided_slice %462 {offsets = [0, 0], sizes = [2, 32], strides = [1, 1]} : vector<2x128xf32> to vector<2x32xf32>
    %477 = arith.mulf %476, %466 : vector<2x32xf32>
    %478 = arith.addf %475, %477 : vector<2x32xf32>
    %479 = vector.extract_strided_slice %455 {offsets = [0, 96], sizes = [2, 32], strides = [1, 1]} : vector<2x128xf32> to vector<2x32xf32>
    %480 = math.tanh %472 : vector<2x32xf32>
    %481 = arith.mulf %479, %480 : vector<2x32xf32>
    %482 = vector.extract_strided_slice %462 {offsets = [0, 96], sizes = [2, 32], strides = [1, 1]} : vector<2x128xf32> to vector<2x32xf32>
    %483 = math.tanh %478 : vector<2x32xf32>
    %484 = arith.mulf %482, %483 : vector<2x32xf32>
    %c0_298 = arith.constant 0 : index
    %c0_299 = arith.constant 0 : index
    %485 = vector.load %arg12[%c0_298, %c0_299] : memref<2x32xf32, #tpu.memory_space<vmem>>, vector<2x32xf32>
    tpu.vector_store %arg12[%c0_298, %c0_299], %472 {strides = array<i32>} : memref<2x32xf32, #tpu.memory_space<vmem>>, vector<2x32xf32>,
    %c0_300 = arith.constant 0 : index
    %c0_301 = arith.constant 0 : index
    %486 = vector.load %arg13[%c0_300, %c0_301] : memref<2x32xf32, #tpu.memory_space<vmem>>, vector<2x32xf32>
    tpu.vector_store %arg13[%c0_300, %c0_301], %478 {strides = array<i32>} : memref<2x32xf32, #tpu.memory_space<vmem>>, vector<2x32xf32>,
    %c0_302 = arith.constant 0 : index
    %c0_303 = arith.constant 0 : index
    %487 = vector.load %arg10[%c0_302, %c0_303] : memref<2x32xf32, #tpu.memory_space<vmem>>, vector<2x32xf32>
    tpu.vector_store %arg10[%c0_302, %c0_303], %481 {strides = array<i32>} : memref<2x32xf32, #tpu.memory_space<vmem>>, vector<2x32xf32>,
    %c0_304 = arith.constant 0 : index
    %c0_305 = arith.constant 0 : index
    %488 = vector.load %arg11[%c0_304, %c0_305] : memref<2x32xf32, #tpu.memory_space<vmem>>, vector<2x32xf32>
    tpu.vector_store %arg11[%c0_304, %c0_305], %484 {strides = array<i32>} : memref<2x32xf32, #tpu.memory_space<vmem>>, vector<2x32xf32>,
    %c7_306 = arith.constant 7 : index
    %c0_307 = arith.constant 0 : index
    %c0_308 = arith.constant 0 : index
    %489 = vector.load %arg6[%c7_306, %c0_307, %c0_308] : memref<8x2x32xf32, #tpu.memory_space<vmem>>, vector<1x2x32xf32>
    %490 = vector.shape_cast %489 : vector<1x2x32xf32> to vector<2x32xf32>
    %491 = vector.shape_cast %481 : vector<2x32xf32> to vector<1x2x32xf32>
    tpu.vector_store %arg6[%c7_306, %c0_307, %c0_308], %491 {strides = array<i32>} : memref<8x2x32xf32, #tpu.memory_space<vmem>>, vector<1x2x32xf32>,
    %c0_309 = arith.constant 0 : index
    %c0_310 = arith.constant 0 : index
    %c0_311 = arith.constant 0 : index
    %492 = vector.load %arg7[%c0_309, %c0_310, %c0_311] : memref<8x2x32xf32, #tpu.memory_space<vmem>>, vector<1x2x32xf32>
    %493 = vector.shape_cast %492 : vector<1x2x32xf32> to vector<2x32xf32>
    %494 = vector.shape_cast %484 : vector<2x32xf32> to vector<1x2x32xf32>
    tpu.vector_store %arg7[%c0_309, %c0_310, %c0_311], %494 {strides = array<i32>} : memref<8x2x32xf32, #tpu.memory_space<vmem>>, vector<1x2x32xf32>,
    return
  }
  func.func @transform_0(%arg0: i32) -> (i32, i32, i32) {
    %c0_i32 = arith.constant 0 : i32
    %c0_i32_0 = arith.constant 0 : i32
    %c0_i32_1 = arith.constant 0 : i32
    return %arg0, %c0_i32, %c0_i32_0 : i32, i32, i32
  }
  func.func @transform_1(%arg0: i32) -> (i32, i32, i32) {
    %c0_i32 = arith.constant 0 : i32
    %0 = arith.subi %c0_i32, %arg0 : i32
    %c0_i32_0 = arith.constant 0 : i32
    %c0_i32_1 = arith.constant 0 : i32
    %c0_i32_2 = arith.constant 0 : i32
    return %0, %c0_i32_0, %c0_i32_1 : i32, i32, i32
  }
  func.func @transform_2(%arg0: i32) -> (i32, i32, i32) {
    %c0_i32 = arith.constant 0 : i32
    %c0_i32_0 = arith.constant 0 : i32
    %c0_i32_1 = arith.constant 0 : i32
    %c0_i32_2 = arith.constant 0 : i32
    return %c0_i32, %c0_i32_0, %c0_i32_1 : i32, i32, i32
  }
  func.func @transform_3(%arg0: i32) -> (i32, i32, i32) {
    %c0_i32 = arith.constant 0 : i32
    %c0_i32_0 = arith.constant 0 : i32
    %c0_i32_1 = arith.constant 0 : i32
    %c0_i32_2 = arith.constant 0 : i32
    return %c0_i32, %c0_i32_0, %c0_i32_1 : i32, i32, i32
  }
  func.func @transform_4(%arg0: i32) -> (i32, i32, i32) {
    %c0_i32 = arith.constant 0 : i32
    %c0_i32_0 = arith.constant 0 : i32
    %c0_i32_1 = arith.constant 0 : i32
    %c0_i32_2 = arith.constant 0 : i32
    return %c0_i32, %c0_i32_0, %c0_i32_1 : i32, i32, i32
  }
  func.func @transform_5(%arg0: i32) -> (i32, i32, i32) {
    %c0_i32 = arith.constant 0 : i32
    %c0_i32_0 = arith.constant 0 : i32
    %c0_i32_1 = arith.constant 0 : i32
    return %arg0, %c0_i32, %c0_i32_0 : i32, i32, i32
  }
  func.func @transform_6(%arg0: i32) -> (i32, i32, i32) {
    %c0_i32 = arith.constant 0 : i32
    %0 = arith.subi %c0_i32, %arg0 : i32
    %c0_i32_0 = arith.constant 0 : i32
    %c0_i32_1 = arith.constant 0 : i32
    %c0_i32_2 = arith.constant 0 : i32
    return %0, %c0_i32_0, %c0_i32_1 : i32, i32, i32
  }
}

</mosaic_0001>

<bundles_post_ra>
// kernel: forward_pallas.7
= control target key start
LH: loop header
LB: loop body
LE: loop exit
PB: predicated region body
PF: predicated region fallthrough
CT: control target
= control target key end

     0   :  { %s119_s20 = smov 32   ;;  %vm32_vm0 = vcmask 261120   ;;  %vm39_vm1 = vcmask 523264   ;;  %v120_v14 = vmov 64.0   ;;  %s187_s1 = inlined_call_operand.vmem [shape: f32[16,32], index: 1, kind: input, shape index: {}]   ;;  %s188_s0 = inlined_call_operand.vmem [shape: f32[16,32], index: 0, kind: input, shape index: {}]   ;;  %s189_s2 = inlined_call_operand.vmem [shape: f32[16,64], index: 2, kind: input, shape index: {}]   ;;  %s190_s3 = inlined_call_operand.vmem [shape: f32[1,64], index: 3, kind: input, shape index: {}]   ;;  %s191_s4 = inlined_call_operand.vmem [shape: f32[1,64], index: 4, kind: input, shape index: {}]   ;;  %s192_s5 = inlined_call_operand.vmem [shape: f32[16,64], index: 5, kind: output, shape index: {}]  }
   0x1   :  { %v22_v0 = vld [vmem:[%s187_s1] sm:$0xff]  ;;  %v23_v1 = vld [vmem:[%s187_s1 + $0x8] sm:$0xff]  ;;  %113 = vrcp.f32 %v120_v14 }
   0x2   :  { %26 = vrot.lane.b32.xlu0 %v22_v0, %s119_s20  ;;  %v20_v2 = vld [vmem:[%s188_s0] sm:$0xff]  ;;  %v21_v8 = vld [vmem:[%s188_s0 + $0x8] sm:$0xff] }
   0x3   :  { %v35_v3 = vld [vmem:[%s189_s2] sm:$0xff]  ;;  %v36_v9 = vld [vmem:[%s189_s2 + $0x8] sm:$0xff] }
   0x4   :  { %v111_v45 = vld [vmem:[%s190_s3] ss:$0 sm:$0xff] }
   0x5   :  { %v112_v48 = vld [vmem:[%s191_s4] ss:$0 sm:$0xff] }
   0x7   :  { %v114_v15 = vpop.eup %113 }
   0x8   :  { %v47_v16 = vmul.f32 64.0, %v114_v15  ;;  %vm51_vm2 = vweird.f32 %v114_v15 }
   0xa   :  { %28 = vrot.lane.b32.xlu0 %v23_v1, %s119_s20  ;;  %v48_v17 = vsub.f32 1.0, %v47_v16 }
   0xc   :  { %v49_v18 = vmul.f32 %v114_v15, %v48_v17 }
   0xe   :  { %v50_v19 = vadd.f32 %v114_v15, %v49_v18 }
  0x10   :  { %v52_v20 = vsel %vm51_vm2, %v114_v15, %v50_v19 }
  0x74   :  { %v27_v4 = vpop.permute.xlu0 %26 }
  0x75   :  { %v33_v5 = vsel %vm32_vm0, %v20_v2, %v27_v4 }
  0x76   :  { %v37_v6 = vadd.f32 %v35_v3, %v33_v5 }
  0x78   :  { %v40_v7 = vsel %vm39_vm1, %v37_v6, 0.0 }
  0x79   :  { %41 = vadd.xlane.f32.xlu1 %v40_v7 }
  0x7c   :  { %v29_v10 = vpop.permute.xlu0 %28 }
  0x7d   :  { %v34_v11 = vsel %vm32_vm0, %v21_v8, %v29_v10 }
  0x7e   :  { %v38_v12 = vadd.f32 %v36_v9, %v34_v11 }
  0x80   :  { %v43_v13 = vsel %vm39_vm1, %v38_v12, 0.0 }
  0x81   :  { %44 = vadd.xlane.f32.xlu1 %v43_v13 }
  0xec   :  { %v42_v21 = vpop.xlane.xlu1 %41 }
  0xed   :  { %v53_v22 = vmul.f32 %v52_v20, %v42_v21 }
  0xef   :  { %v55_v23 = vsub.f32 %v37_v6, %v53_v22 }
  0xf1   :  { %v57_v24 = vmul.f32 %v55_v23, %v55_v23 }
  0xf3   :  { %v59_v25 = vsel %vm39_vm1, %v57_v24, 0.0 }
  0xf4   :  { %60 = vadd.xlane.f32.xlu2 %v59_v25  ;;  %v45_v26 = vpop.xlane.xlu1 %44 }
  0xf5   :  { %v54_v27 = vmul.f32 %v52_v20, %v45_v26 }
  0xf7   :  { %v56_v28 = vsub.f32 %v38_v12, %v54_v27 }
  0xf9   :  { %v58_v29 = vmul.f32 %v56_v28, %v56_v28 }
  0xfb   :  { %v62_v30 = vsel %vm39_vm1, %v58_v29, 0.0 }
  0xfc   :  { %63 = vadd.xlane.f32.xlu2 %v62_v30 }
 0x167   :  { %v61_v31 = vpop.xlane.xlu2 %60 }
 0x168   :  { %v65_v32 = vmul.f32 %v61_v31, %v52_v20 }
 0x16a   :  { %v67_v33 = vadd.f32 1e-05, %v65_v32 }
 0x16c   :  { %115 = vrsqrt.f32 %v67_v33  ;;  %vm75_vm4 = vweird.f32 %v67_v33 }
 0x16f   :  { %v64_v34 = vpop.xlane.xlu2 %63 }
 0x170   :  { %v66_v35 = vmul.f32 %v64_v34, %v52_v20 }
 0x172   :  { %v116_v36 = vpop.eup %115  ;;  %v68_v37 = vadd.f32 1e-05, %v66_v35 }
 0x173   :  { %v70_v38 = vmul.f32 %v116_v36, %v67_v33  ;;  %vm76_vm3 = vweird.f32 %v116_v36 }
 0x174   :  { %117 = vrsqrt.f32 %v68_v37  ;;  %vm77_vm5 = vmor %vm75_vm4, %vm76_vm3  ;;  %vm85_vm7 = vweird.f32 %v68_v37 }
 0x175   :  { %v71_v39 = vmul.f32 %v116_v36, %v70_v38 }
 0x177   :  { %v72_v40 = vmul.f32 0.5, %v71_v39 }
 0x179   :  { %v73_v41 = vsub.f32 1.5, %v72_v40 }
 0x17a   :  { %v118_v42 = vpop.eup %117 }
 0x17b   :  { %v74_v43 = vmul.f32 %v116_v36, %v73_v41  ;;  %v80_v44 = vmul.f32 %v118_v42, %v68_v37  ;;  %vm86_vm6 = vweird.f32 %v118_v42 }
 0x17c   :  { %vm87_vm8 = vmor %vm85_vm7, %vm86_vm6 }
 0x17d   :  { %v78_v46 = vsel %vm77_vm5, %v116_v36, %v74_v43  ;;  %v81_v47 = vmul.f32 %v118_v42, %v80_v44 }
 0x17e   :  { %v89_v49 = vmul.f32 %v78_v46, %v55_v23 }
 0x17f   :  { %v82_v50 = vmul.f32 0.5, %v81_v47 }
 0x180   :  { %v95_v51 = vmul.f32 %v111_v45, %v89_v49 }
 0x181   :  { %v83_v52 = vsub.f32 1.5, %v82_v50 }
 0x182   :  { %v101_v53 = vadd.f32 %v112_v48, %v95_v51 }
 0x183   :  { %v84_v54 = vmul.f32 %v118_v42, %v83_v52 }
 0x184   :  { %103 = vst.msk [vmem:[%s192_s5] sm:$0xff] %vm39_vm1, %v101_v53 }
 0x185   :  { %v88_v55 = vsel %vm87_vm8, %v118_v42, %v84_v54 }
 0x186   :  { %v90_v56 = vmul.f32 %v88_v55, %v56_v28 }
 0x188   :  { %v96_v57 = vmul.f32 %v111_v45, %v90_v56 }
 0x18a   :  { %v102_v58 = vadd.f32 %v112_v48, %v96_v57 }
 0x18c   :  { %104 = vst.msk [vmem:[%s192_s5 + $0x8] sm:$0xff] %vm39_vm1, %v102_v58 }

// kernel: forward_pallas.5
= control target key start
LH: loop header
LB: loop body
LE: loop exit
PB: predicated region body
PF: predicated region fallthrough
CT: control target
= control target key end

     0   :  { %8 = vsyncpa [#allocation3], 0  ;;  %s108_s15 = smov [#allocation2]   ;;  %s109_s17 = smov 64   ;;  %s149_s0 = inlined_call_operand.vmem [shape: f32[16,16], index: 0, kind: input, shape index: {}]   ;;  %s150_s1 = inlined_call_operand.hbm [shape: bf16[16,64], index: 1, kind: input, shape index: {}]   ;;  %s151_s2 = inlined_call_operand.vmem [shape: f32[1,64], index: 2, kind: input, shape index: {}]   ;;  %s152_s3 = inlined_call_operand.vmem [shape: f32[16,64], index: 3, kind: output, shape index: {}]  }
   0x1   :  { %s15_s14 = sshll.u32 %s150_s1, 4  ;;  %s17_s16 = sshll.u32 %s108_s15, 4  ;;  %s16_s14 = int_to_ptr.hbm [resolvable:$true] %s15_s14  ;;  %s18_s16 = int_to_ptr.vmem [resolvable:$true] %s17_s16 }
   0x2   :  { %s110_s18 = smov 4  }
   0x3   :  { %23 = dma.hbm_to_vmem [thread:$0]  %s16_s14, 128, %s18_s16, [#allocation3], %s109_s17, %s109_s17, %s110_s18  }
   0x4   :  { %106 = dma.done.wait [#allocation3], 128  }
   0x5   :  { %107 = vsyncadd [#allocation3], 4294967168  ;;  %v77_v0 = vld [vmem:[#allocation2] sm:$0xff]  ;;  %v32_v2 = vld [vmem:[%s149_s0 + $0x8] sm:$0xff]  ;;  %vm46_vm0 = vcmask 130048   ;;  %vm64_vm1 = vcmask 523264  }
   0x6   :  { %v31_v1 = vld [vmem:[%s149_s0] sm:$0xff]  ;;  %57 = vmatpush.bf16.msra.mxu0 %v77_v0 }
   0x7   :  { %v33_v3 = vpack.c.bf16 %v32_v2, %v31_v1  ;;  %v81_v4 = vld [vmem:[%s151_s2] ss:$0 sm:$0xff] }
   0x9   :  { %76 = vmatmul.msk.bf16.vlgmr.msra.gmra.mxu0 %vm46_vm0, %v33_v3 }
  0x86   :  { %v59_v5 = vpop.f32.mrf.mxu0 }
  0x87   :  { %v60_v6 = vadd.f32 %v81_v4, %v59_v5 }
  0x89   :  { %65 = vst.msk [vmem:[%s152_s3] sm:$0xff] %vm64_vm1, %v60_v6 }
  0x8e   :  { %v61_v7 = vpop.f32.mrf.mxu0 }
  0x8f   :  { %v62_v8 = vadd.f32 %v81_v4, %v61_v7 }
  0x91   :  { %66 = vst.msk [vmem:[%s152_s3 + $0x8] sm:$0xff] %vm64_vm1, %v62_v8 }
  0x92   :  { %71 = vsyncpa [#allocation3], 1 }

// kernel: forward_pallas.8
= control target key start
LH: loop header
LB: loop body
LE: loop exit
PB: predicated region body
PF: predicated region fallthrough
CT: control target
= control target key end

     0   :  { %12 = vsyncpa [#allocation9], 0  ;;  %s1840_s24 = smov [#allocation8]   ;;  %s1841_s26 = smov 64   ;;  %s2218_s0 = inlined_call_operand.vmem [shape: f32[8,2,64], index: 0, kind: input, shape index: {}, may-alias: {0,1}]   ;;  %s2219_s1 = inlined_call_operand.vmem [shape: f32[8,2,64], index: 1, kind: input, shape index: {}, may-alias: {0,1}]   ;;  %s2220_s2 = inlined_call_operand.vmem [shape: bf16[2,64,128], index: 2, kind: input, shape index: {}]   ;;  %s2221_s3 = inlined_call_operand.hbm [shape: bf16[2,32,128], index: 3, kind: input, shape index: {}]   ;;  %s2222_s4 = inlined_call_operand.vmem [shape: f32[2,1,128], index: 4, kind: input, shape index: {}]   ;;  %s2223_s5 = inlined_call_operand.vmem [shape: f32[8,2,32], index: 5, kind: output, shape index: {0}]   ;;  %s2224_s6 = inlined_call_operand.vmem [shape: f32[8,2,32], index: 6, kind: output, shape index: {1}]  }
   0x1   :  { %s31_s23 = sshll.u32 %s2221_s3, 4  ;;  %s33_s25 = sshll.u32 %s1840_s24, 4  ;;  %s32_s23 = int_to_ptr.hbm [resolvable:$true] %s31_s23  ;;  %s34_s25 = int_to_ptr.vmem [resolvable:$true] %s33_s25 }
   0x2   :  { %s1842_s27 = smov 4  }
   0x3   :  { %39 = dma.hbm_to_vmem [thread:$0]  %s32_s23, 512, %s34_s25, [#allocation9], %s1841_s26, %s1841_s26, %s1842_s27  }
   0x4   :  { %1838 = dma.done.wait [#allocation9], 512  }
   0x5   :  { %1839 = vsyncadd [#allocation9], 4294966784  ;;  %vm79_vm0 = vcmask 254976   ;;  %v1843_v0 = vmov 0.0   ;;  %v1669_v1 = vld [vmem:[%s2220_s2 + $0x18] sm:$0xff]  ;;  %v1668_v4 = vld [vmem:[%s2220_s2 + $0x10] sm:$0xff] }
   0x6   :  { %80 = vst.msk [vmem:[#allocation4] sm:$0x3] %vm79_vm0, %v1843_v0  ;;  %v1673_v2 = vld [vmem:[%s2220_s2 + $0x38] sm:$0xff]  ;;  %200 = vmatpush.bf16.msra.mxu0 %v1669_v1  ;;  %v1672_v5 = vld [vmem:[%s2220_s2 + $0x30] sm:$0xff]  ;;  %v84_v7 = vld [vmem:[%s2218_s0] sm:$0x3] }
   0x7   :  { %81 = vst.msk [vmem:[#allocation5] sm:$0x3] %vm79_vm0, %v1843_v0  ;;  %v1896_v3 = vld [vmem:[#allocation8 + $0x8] sm:$0xff]  ;;  %277 = vmatpush.bf16.msra.mxu1 %v1673_v2  ;;  %v1905_v6 = vld [vmem:[#allocation8] sm:$0xff]  ;;  %v85_v9 = vld [vmem:[%s2218_s0 + $0x2] sm:$0x3] }
   0x8   :  { %82 = vst.msk [vmem:[#allocation6] sm:$0x3] %vm79_vm0, %v1843_v0  ;;  %343 = vmatpush.bf16.msra.mxu2 %v1896_v3  ;;  %v86_v10 = vld [vmem:[%s2218_s0 + $0x4] sm:$0x3]  ;;  %v1667_v11 = vld [vmem:[%s2220_s2 + $0x8] sm:$0xff]  ;;  %vm333_vm1 = vcmask 261120  }
   0x9   :  { %83 = vst.msk [vmem:[#allocation7] sm:$0x3] %vm79_vm0, %v1843_v0  ;;  %v1671_v12 = vld [vmem:[%s2220_s2 + $0x28] sm:$0xff]  ;;  %v87_v13 = vld [vmem:[%s2218_s0 + $0x6] sm:$0x3]  ;;  %s1844_s11 = smov 32  }
   0xa   :  { %201 = vmatpush.bf16.msra.mxu0 %v1668_v4  ;;  %100 = vst [vmem:[#allocation1] ss:$4 sm:$0xff] %v84_v7  ;;  %v88_v15 = vld [vmem:[%s2218_s0 + $0x8] sm:$0x3]  ;;  %v89_v16 = vld [vmem:[%s2218_s0 + $0xa] sm:$0x3] }
   0xb   :  { %278 = vmatpush.bf16.msra.mxu1 %v1672_v5  ;;  %102 = vst [vmem:[#allocation1 + $0x1] ss:$4 sm:$0xff] %v85_v9  ;;  %v1666_v17 = vld [vmem:[%s2220_s2] sm:$0xff]  ;;  %v90_v18 = vld [vmem:[%s2218_s0 + $0xc] sm:$0x3]  ;;  %vm192_vm2 = vcmask 523264  }
   0xc   :  { %344 = vmatpush.bf16.msra.mxu2 %v1905_v6  ;;  %104 = vst [vmem:[#allocation1 + $0x2] ss:$4 sm:$0xff] %v86_v10  ;;  %v1670_v19 = vld [vmem:[%s2220_s2 + $0x20] sm:$0xff]  ;;  %v91_v20 = vld [vmem:[%s2218_s0 + $0xe] sm:$0x3] }
   0xd   :  { %v319_v8 = vld [vmem:[#allocation4] sm:$0x3]  ;;  %106 = vst [vmem:[#allocation1 + $0x3] ss:$4 sm:$0xff] %v87_v13  ;;  %v1948_v22 = vld [vmem:[#allocation8 + $0x10] sm:$0xff] }
   0xe   :  { %v320_v14 = vpack.c.bf16 %v319_v8, %v319_v8  ;;  %202 = vmatpush.bf16.msra.mxu0 %v1667_v11  ;;  %108 = vst [vmem:[#allocation1 + $0x20] ss:$4 sm:$0xff] %v88_v15  ;;  %v1945_v21 = vld [vmem:[#allocation8 + $0x18] sm:$0xff]  ;;  %v120_v25 = vld [vmem:[%s2219_s1] sm:$0x3] }
   0xf   :  { %279 = vmatpush.bf16.msra.mxu1 %v1671_v12  ;;  %110 = vst [vmem:[#allocation1 + $0x21] ss:$4 sm:$0xff] %v89_v16  ;;  %v424_v23 = vld [vmem:[#allocation6] sm:$0x3]  ;;  %376 = vmatpush.bf16.msra.mxu3 %v1945_v21  ;;  %v353_v24 = vld [vmem:[#allocation5] sm:$0x3] }
  0x10   :  { %505 = vmatpush.bf16.msrb.mxu2 %v1896_v3  ;;  %112 = vst [vmem:[#allocation1 + $0x22] ss:$4 sm:$0xff] %v90_v18  ;;  %426 = vrot.lane.b32.xlu1 %v424_v23, %s1844_s11  ;;  %v121_v26 = vld [vmem:[%s2219_s1 + $0x2] sm:$0x3]  ;;  %v354_v27 = vpack.c.bf16 %v353_v24, %v353_v24  ;;  %v122_v29 = vld [vmem:[%s2219_s1 + $0x4] sm:$0x3] }
  0x11   :  { %1628 = vmatmul.msk.bf16.vlgmr.msra.gmra.mxu2 %vm333_vm1, %v320_v14  ;;  %114 = vst [vmem:[#allocation1 + $0x23] ss:$4 sm:$0xff] %v91_v20  ;;  %v123_v30 = vld [vmem:[%s2219_s1 + $0x6] sm:$0x3]  ;;  %v440_v31 = vld [vmem:[#allocation7] sm:$0x3] }
  0x12   :  { %203 = vmatpush.bf16.msra.mxu0 %v1666_v17  ;;  %v124_v32 = vld [vmem:[%s2219_s1 + $0x8] sm:$0x3]  ;;  %v125_v33 = vld [vmem:[%s2219_s1 + $0xa] sm:$0x3]  ;;  %v126_v34 = vld [vmem:[%s2219_s1 + $0xc] sm:$0x3] }
  0x13   :  { %280 = vmatpush.bf16.msra.mxu1 %v1670_v19  ;;  %377 = vmatpush.bf16.msra.mxu3 %v1948_v22  ;;  %v127_v37 = vld [vmem:[%s2219_s1 + $0xe] sm:$0x3]  ;;  %v1684_v42 = vld [vmem:[%s2222_s4] ss:$0 sm:$0xff]  ;;  %v1685_v52 = vld [vmem:[%s2222_s4 + $0x1] ss:$0 sm:$0xff] }
  0x14   :  { %506 = vmatpush.bf16.msrb.mxu2 %v1905_v6  ;;  %v115_v28 = vld.sshfl [vmem:[#allocation1] sm:$0xff pattern:$0x73625140]  ;;  %s1845_s4 = smov 96  }
  0x15   :  { %136 = vst [vmem:[#allocation1] ss:$4 sm:$0xff] %v120_v25 }
  0x16   :  { %655 = vmatpush.bf16.msrb.mxu0 %v1896_v3  ;;  %138 = vst [vmem:[#allocation1 + $0x1] ss:$4 sm:$0xff] %v121_v26  ;;  %1637 = vmatmul.msk.bf16.vlgmr.msra.gmra.mxu3 %vm333_vm1, %v354_v27 }
  0x17   :  { %676 = vmatpush.bf16.msrb.mxu1 %v1945_v21  ;;  %526 = vmatpush.bf16.msrb.mxu3 %v1945_v21  ;;  %140 = vst [vmem:[#allocation1 + $0x2] ss:$4 sm:$0xff] %v122_v29 }
  0x18   :  { %805 = vmatpush.bf16.msra.mxu2 %v1896_v3  ;;  %v116_v35 = vld.sshfl [vmem:[#allocation1 + $0x20] sm:$0xff pattern:$0x73625140]  ;;  %142 = vst [vmem:[#allocation1 + $0x3] ss:$4 sm:$0xff] %v123_v30  ;;  %442 = vrot.lane.b32.xlu1 %v440_v31, %s1844_s11 }
  0x19   :  { %v119_v36 = vpack.c.bf16 %v116_v35, %v115_v28  ;;  %144 = vst [vmem:[#allocation1 + $0x20] ss:$4 sm:$0xff] %v124_v32 }
  0x1a   :  { %656 = vmatpush.bf16.msrb.mxu0 %v1905_v6  ;;  %146 = vst [vmem:[#allocation1 + $0x21] ss:$4 sm:$0xff] %v125_v33 }
  0x1b   :  { %677 = vmatpush.bf16.msrb.mxu1 %v1948_v22  ;;  %527 = vmatpush.bf16.msrb.mxu3 %v1948_v22  ;;  %148 = vst [vmem:[#allocation1 + $0x22] ss:$4 sm:$0xff] %v126_v34 }
  0x1c   :  { %806 = vmatpush.bf16.msra.mxu2 %v1905_v6  ;;  %1593 = vmatmul.msk.bf16.vlgmr.msra.gmra.mxu0 %vm192_vm2, %v119_v36  ;;  %150 = vst [vmem:[#allocation1 + $0x23] ss:$4 sm:$0xff] %v127_v37 }
  0x1e   :  { %955 = vmatpush.bf16.msra.mxu0 %v1896_v3 }
  0x1f   :  { %826 = vmatpush.bf16.msra.mxu3 %v1945_v21  ;;  %v151_v38 = vld.sshfl [vmem:[#allocation1] sm:$0xff pattern:$0x73625140] }
  0x22   :  { %956 = vmatpush.bf16.msra.mxu0 %v1905_v6 }
  0x23   :  { %827 = vmatpush.bf16.msra.mxu3 %v1948_v22  ;;  %v152_v39 = vld.sshfl [vmem:[#allocation1 + $0x20] sm:$0xff pattern:$0x73625140] }
  0x24   :  { %v155_v40 = vpack.c.bf16 %v152_v39, %v151_v38 }
  0x26   :  { %1619 = vmatmul.msk.bf16.vlgmr.msra.gmra.mxu1 %vm192_vm2, %v155_v40 }
  0x27   :  { %976 = vmatpush.bf16.msra.mxu1 %v1945_v21 }
  0x2b   :  { %977 = vmatpush.bf16.msra.mxu1 %v1948_v22 }
  0x94   :  { %v346_v41 = vpop.f32.mrf.mxu2 }
  0x99   :  { %v205_v43 = vpop.f32.mrf.mxu0  ;;  %v379_v46 = vpop.f32.mrf.mxu3 }
  0x9a   :  { %v206_v44 = vadd.f32 %v1684_v42, %v205_v43 }
  0x9c   :  { %v348_v45 = vpop.f32.mrf.mxu2  ;;  %v212_v47 = vrot.slane %v206_v44, 2  ;;  %v213_v48 = vrot.slane %v206_v44, 4  ;;  %v214_v49 = vrot.slane %v206_v44, 6  ;;  %224 = vst [vmem:[#allocation2] sm:$0x3] %v206_v44 }
  0x9d   :  { %v427_v45 = vpop.permute.xlu1 %426 }
  0x9e   :  { %225 = vst [vmem:[#allocation2 + $0x2] sm:$0x3] %v212_v47 }
  0x9f   :  { %226 = vst [vmem:[#allocation2 + $0x4] sm:$0x3] %v213_v48 }
  0xa0   :  { %227 = vst [vmem:[#allocation2 + $0x6] sm:$0x3] %v214_v49 }
  0xa1   :  { %v207_v50 = vpop.f32.mrf.mxu0  ;;  %v381_v54 = vpop.f32.mrf.mxu3 }
  0xa2   :  { %v208_v51 = vadd.f32 %v1684_v42, %v207_v50 }
  0xa3   :  { %v318_v53 = vld [vmem:[#allocation2] sm:$0x3]  ;;  %v282_v55 = vpop.f32.mrf.mxu1 }
  0xa4   :  { %v350_v56 = vadd.f32 %v346_v41, %v318_v53  ;;  %v215_v57 = vrot.slane %v208_v51, 2  ;;  %v216_v58 = vrot.slane %v208_v51, 4  ;;  %228 = vst [vmem:[#allocation2 + $0x8] sm:$0x3] %v208_v51  ;;  %v283_v59 = vadd.f32 %v1685_v52, %v282_v55 }
  0xa5   :  { %v217_v63 = vrot.slane %v208_v51, 6  ;;  %v443_v50 = vpop.permute.xlu1 %442 }
  0xa6   :  { %229 = vst [vmem:[#allocation2 + $0xa] sm:$0x3] %v215_v57  ;;  %1686 = vtanh.f32 %v350_v56  ;;  %v289_v60 = vrot.slane %v283_v59, 2  ;;  %v290_v61 = vrot.slane %v283_v59, 4  ;;  %v291_v62 = vrot.slane %v283_v59, 6 }
  0xa7   :  { %301 = vst [vmem:[#allocation3] sm:$0x3] %v283_v59  ;;  %v384_v11 = vsub.f32 0.0, %v350_v56 }
  0xa8   :  { %230 = vst [vmem:[#allocation2 + $0xc] sm:$0x3] %v216_v58 }
  0xa9   :  { %302 = vst [vmem:[#allocation3 + $0x2] sm:$0x3] %v289_v60  ;;  %v385_v12 = vmul.f32 1.442695, %v384_v11 }
  0xaa   :  { %303 = vst [vmem:[#allocation3 + $0x4] sm:$0x3] %v290_v61 }
  0xab   :  { %304 = vst [vmem:[#allocation3 + $0x6] sm:$0x3] %v291_v62  ;;  %v284_v1 = vpop.f32.mrf.mxu1 }
  0xac   :  { %v1687_v0 = vpop.eup %1686  ;;  %231 = vst [vmem:[#allocation2 + $0xe] sm:$0x3] %v217_v63  ;;  %v285_v2 = vadd.f32 %v1685_v52, %v284_v1 }
  0xad   :  { %431 = vrot.lane.b32.xlu0 %v1687_v0, %s1841_s26 }
  0xae   :  { %v292_v4 = vrot.slane %v285_v2, 2  ;;  %v293_v5 = vrot.slane %v285_v2, 4  ;;  %v294_v7 = vrot.slane %v285_v2, 6  ;;  %305 = vst [vmem:[#allocation3 + $0x8] sm:$0x3] %v285_v2 }
  0xb0   :  { %306 = vst [vmem:[#allocation3 + $0xa] sm:$0x3] %v292_v4 }
  0xb1   :  { %307 = vst [vmem:[#allocation3 + $0xc] sm:$0x3] %v293_v5  ;;  %v493_v5 = vld [vmem:[#allocation2 + $0x2] sm:$0x3] }
  0xb2   :  { %308 = vst [vmem:[#allocation3 + $0xe] sm:$0x3] %v294_v7 }
  0xb9   :  { %v352_v8 = vld [vmem:[#allocation3 + $0xe] sm:$0x3] }
  0xba   :  { %v383_v9 = vadd.f32 %v379_v46, %v352_v8 }
  0xbc   :  { %1688 = vtanh.f32 %v383_v9  ;;  %v403_v15 = vsub.f32 0.0, %v383_v9 }
  0xbd   :  { %1690 = vpow2.f32 %v385_v12  ;;  %v514_v12 = vld [vmem:[#allocation3 + $0xc] sm:$0x3] }
  0xbe   :  { %v404_v17 = vmul.f32 1.442695, %v403_v15 }
  0xc2   :  { %v1689_v10 = vpop.eup %1688 }
  0xc3   :  { %447 = vrot.lane.b32.xlu0 %v1689_v10, %s1841_s26  ;;  %v1691_v13 = vpop.eup %1690 }
  0xc4   :  { %v387_v14 = vadd.f32 1.0, %v1691_v13 }
  0xc6   :  { %1692 = vrcp.f32 %v387_v14  ;;  %v399_v26 = vand.u32 2147483648, %v387_v14  ;;  %vm393_vm4 = vweird.f32 %v387_v14  ;;  %v397_v27 = vand.u32 2147483647, %v387_v14 }
  0xc7   :  { %1694 = vpow2.f32 %v404_v17 }
  0xc8   :  { %v400_v29 = vor.u32 1.1754944e-38, %v399_v26  ;;  %vm398_vm6 = vcmp.eq.f32.partialorder %v397_v27, 8.507059e+37 }
  0xcc   :  { %v1693_v16 = vpop.eup %1692 }
  0xcd   :  { %v389_v18 = vmul.f32 %v1693_v16, %v387_v14  ;;  %v1695_v20 = vpop.eup %1694  ;;  %vm394_vm3 = vweird.f32 %v1693_v16 }
  0xce   :  { %v406_v24 = vadd.f32 1.0, %v1695_v20  ;;  %vm395_vm5 = vmor %vm393_vm4, %vm394_vm3 }
  0xcf   :  { %v390_v19 = vsub.f32 1.0, %v389_v18 }
  0xd0   :  { %1696 = vrcp.f32 %v406_v24  ;;  %v418_v38 = vand.u32 2147483648, %v406_v24  ;;  %vm412_vm8 = vweird.f32 %v406_v24  ;;  %v416_v39 = vand.u32 2147483647, %v406_v24 }
  0xd1   :  { %v391_v23 = vmul.f32 %v1693_v16, %v390_v19 }
  0xd2   :  { %v419_v41 = vor.u32 1.1754944e-38, %v418_v38  ;;  %vm417_vm10 = vcmp.eq.f32.partialorder %v416_v39, 8.507059e+37 }
  0xd3   :  { %v392_v25 = vadd.f32 %v1693_v16, %v391_v23 }
  0xd5   :  { %v396_v28 = vsel %vm395_vm5, %v1693_v16, %v392_v25 }
  0xd6   :  { %v401_v30 = vsel %vm398_vm6, %v400_v29, %v396_v28  ;;  %v1697_v32 = vpop.eup %1696 }
  0xd7   :  { %v408_v34 = vmul.f32 %v1697_v32, %v406_v24  ;;  %vm413_vm7 = vweird.f32 %v1697_v32  ;;  %v429_v46 = vmul.f32 %v427_v45, %v401_v30 }
  0xd8   :  { %vm414_vm9 = vmor %vm412_vm8, %vm413_vm7 }
  0xd9   :  { %v409_v35 = vsub.f32 1.0, %v408_v34 }
  0xdb   :  { %v410_v36 = vmul.f32 %v1697_v32, %v409_v35 }
  0xdd   :  { %v411_v37 = vadd.f32 %v1697_v32, %v410_v36 }
  0xdf   :  { %v415_v40 = vsel %vm414_vm9, %v1697_v32, %v411_v37 }
  0xe0   :  { %v420_v42 = vsel %vm417_vm10, %v419_v41, %v415_v40 }
  0xe1   :  { %v445_v51 = vmul.f32 %v443_v50, %v420_v42 }
 0x11f   :  { %v432_v31 = vpop.permute.xlu0 %431 }
 0x120   :  { %v434_v33 = vmul.f32 %v432_v31, %v401_v30 }
 0x122   :  { %436 = vrot.lane.b32.xlu2 %v434_v33, %s1844_s11 }
 0x135   :  { %v448_v43 = vpop.permute.xlu0 %447 }
 0x136   :  { %v450_v44 = vmul.f32 %v448_v43, %v420_v42 }
 0x138   :  { %452 = vrot.lane.b32.xlu2 %v450_v44, %s1844_s11 }
 0x17c   :  { %v437_v47 = vpop.permute.xlu2 %436 }
 0x17d   :  { %v439_v48 = vadd.f32 %v437_v47, %v429_v46 }
 0x17f   :  { %1698 = vtanh.f32 %v439_v48 }
 0x185   :  { %v1699_v49 = vpop.eup %1698 }
 0x186   :  { %458 = vrot.lane.b32.xlu0 %v1699_v49, %s1841_s26 }
 0x192   :  { %v453_v52 = vpop.permute.xlu2 %452 }
 0x193   :  { %v455_v53 = vadd.f32 %v453_v52, %v445_v51 }
 0x195   :  { %1700 = vtanh.f32 %v455_v53 }
 0x19b   :  { %v1701_v54 = vpop.eup %1700 }
 0x19c   :  { %464 = vrot.lane.b32.xlu1 %v1701_v54, %s1841_s26 }
 0x1a4   :  { %469 = vrot.lane.b32.xlu1 %v439_v48, %s1845_s4 }
 0x1f8   :  { %v459_v55 = vpop.permute.xlu0 %458 }
 0x1f9   :  { %v461_v56 = vmul.f32 %v459_v55, %v401_v30 }
 0x1fb   :  { %480 = vrot.lane.b32.xlu2 %v461_v56, %s1844_s11 }
 0x203   :  { %475 = vrot.lane.b32.xlu2 %v455_v53, %s1845_s4 }
 0x20e   :  { %v465_v57 = vpop.permute.xlu1 %464 }
 0x20f   :  { %v467_v58 = vmul.f32 %v465_v57, %v420_v42 }
 0x211   :  { %485 = vrot.lane.b32.xlu0 %v467_v58, %s1844_s11 }
 0x216   :  { %v470_v59 = vpop.permute.xlu1 %469 }
 0x217   :  { %473 = vst.msk [vmem:[#allocation6] sm:$0x3] %vm79_vm0, %v470_v59 }
 0x21e   :  { %v574_v60 = vld [vmem:[#allocation6] sm:$0x3] }
 0x21f   :  { %576 = vrot.lane.b32.xlu2 %v574_v60, %s1844_s11 }
 0x255   :  { %v481_v61 = vpop.permute.xlu2 %480 }
 0x256   :  { %483 = vst.msk [vmem:[#allocation4] sm:$0x3] %vm79_vm0, %v481_v61 }
 0x257   :  { %489 = vst.msk [vmem:[%s2223_s5] sm:$0x3] %vm79_vm0, %v481_v61 }
 0x25d   :  { %v476_v62 = vpop.permute.xlu2 %475  ;;  %v494_v63 = vld [vmem:[#allocation4] sm:$0x3] }
 0x25e   :  { %478 = vst.msk [vmem:[#allocation7] sm:$0x3] %vm79_vm0, %v476_v62  ;;  %v495_v0 = vpack.c.bf16 %v494_v63, %v494_v63 }
 0x260   :  { %1639 = vmatmul.msk.bf16.vlgmr.msrb.gmra.mxu2 %vm333_vm1, %v495_v0 }
 0x261   :  { %1105 = vmatpush.bf16.msrb.mxu2 %v1896_v3 }
 0x265   :  { %1106 = vmatpush.bf16.msrb.mxu2 %v1905_v6  ;;  %v590_v11 = vld [vmem:[#allocation7] sm:$0x3] }
 0x279   :  { %v577_v51 = vpop.permute.xlu2 %576 }
 0x283   :  { %v486_v1 = vpop.permute.xlu0 %485 }
 0x284   :  { %488 = vst.msk [vmem:[#allocation5] sm:$0x3] %vm79_vm0, %v486_v1 }
 0x285   :  { %1638 = vst.msk [vmem:[%s2224_s6 + $0xe] sm:$0x3] %vm79_vm0, %v486_v1 }
 0x28b   :  { %v515_v2 = vld [vmem:[#allocation5] sm:$0x3] }
 0x28c   :  { %v516_v4 = vpack.c.bf16 %v515_v2, %v515_v2 }
 0x28e   :  { %1640 = vmatmul.msk.bf16.vlgmr.msrb.gmra.mxu3 %vm333_vm1, %v516_v4 }
 0x28f   :  { %1126 = vmatpush.bf16.msrb.mxu3 %v1945_v21 }
 0x293   :  { %1127 = vmatpush.bf16.msrb.mxu3 %v1948_v22 }
 0x2e3   :  { %v508_v7 = vpop.f32.mrf.mxu2 }
 0x2e4   :  { %v512_v8 = vadd.f32 %v508_v7, %v493_v5 }
 0x2e6   :  { %1702 = vtanh.f32 %v512_v8  ;;  %v534_v17 = vsub.f32 0.0, %v512_v8 }
 0x2e8   :  { %v535_v18 = vmul.f32 1.442695, %v534_v17 }
 0x2eb   :  { %v510_v9 = vpop.f32.mrf.mxu2 }
 0x2ec   :  { %v1703_v10 = vpop.eup %1702 }
 0x2ed   :  { %581 = vrot.lane.b32.xlu0 %v1703_v10, %s1841_s26 }
 0x2f5   :  { %592 = vrot.lane.b32.xlu0 %v590_v11, %s1844_s11 }
 0x311   :  { %v529_v13 = vpop.f32.mrf.mxu3 }
 0x312   :  { %v533_v14 = vadd.f32 %v529_v13, %v514_v12  ;;  %v643_v12 = vld [vmem:[#allocation2 + $0x4] sm:$0x3] }
 0x314   :  { %1704 = vtanh.f32 %v533_v14  ;;  %v553_v31 = vsub.f32 0.0, %v533_v14 }
 0x315   :  { %1706 = vpow2.f32 %v535_v18  ;;  %v664_v18 = vld [vmem:[#allocation3 + $0xa] sm:$0x3] }
 0x316   :  { %v554_v36 = vmul.f32 1.442695, %v553_v31 }
 0x319   :  { %v531_v15 = vpop.f32.mrf.mxu3 }
 0x31a   :  { %v1705_v16 = vpop.eup %1704 }
 0x31b   :  { %597 = vrot.lane.b32.xlu1 %v1705_v16, %s1841_s26  ;;  %v1707_v19 = vpop.eup %1706 }
 0x31c   :  { %v537_v20 = vadd.f32 1.0, %v1707_v19 }
 0x31e   :  { %1708 = vrcp.f32 %v537_v20  ;;  %v549_v28 = vand.u32 2147483648, %v537_v20  ;;  %vm543_vm12 = vweird.f32 %v537_v20  ;;  %v547_v29 = vand.u32 2147483647, %v537_v20 }
 0x31f   :  { %1710 = vpow2.f32 %v554_v36 }
 0x320   :  { %v550_v32 = vor.u32 1.1754944e-38, %v549_v28  ;;  %vm548_vm14 = vcmp.eq.f32.partialorder %v547_v29, 8.507059e+37 }
 0x324   :  { %v1709_v23 = vpop.eup %1708 }
 0x325   :  { %v539_v24 = vmul.f32 %v1709_v23, %v537_v20  ;;  %vm544_vm11 = vweird.f32 %v1709_v23  ;;  %v1711_v37 = vpop.eup %1710 }
 0x326   :  { %vm545_vm13 = vmor %vm543_vm12, %vm544_vm11  ;;  %v556_v38 = vadd.f32 1.0, %v1711_v37 }
 0x327   :  { %v540_v25 = vsub.f32 1.0, %v539_v24 }
 0x328   :  { %1712 = vrcp.f32 %v556_v38  ;;  %v568_v44 = vand.u32 2147483648, %v556_v38  ;;  %vm562_vm2 = vweird.f32 %v556_v38  ;;  %v566_v45 = vand.u32 2147483647, %v556_v38 }
 0x329   :  { %v541_v26 = vmul.f32 %v1709_v23, %v540_v25 }
 0x32a   :  { %v569_v47 = vor.u32 1.1754944e-38, %v568_v44  ;;  %vm567_vm4 = vcmp.eq.f32.partialorder %v566_v45, 8.507059e+37 }
 0x32b   :  { %v542_v27 = vadd.f32 %v1709_v23, %v541_v26 }
 0x32d   :  { %v546_v30 = vsel %vm545_vm13, %v1709_v23, %v542_v27 }
 0x32e   :  { %v551_v34 = vsel %vm548_vm14, %v550_v32, %v546_v30  ;;  %v1713_v39 = vpop.eup %1712 }
 0x32f   :  { %v558_v40 = vmul.f32 %v1713_v39, %v556_v38  ;;  %vm563_vm15 = vweird.f32 %v1713_v39  ;;  %v579_v52 = vmul.f32 %v577_v51, %v551_v34 }
 0x330   :  { %vm564_vm3 = vmor %vm562_vm2, %vm563_vm15 }
 0x331   :  { %v559_v41 = vsub.f32 1.0, %v558_v40 }
 0x333   :  { %v560_v42 = vmul.f32 %v1713_v39, %v559_v41 }
 0x335   :  { %v561_v43 = vadd.f32 %v1713_v39, %v560_v42 }
 0x337   :  { %v565_v46 = vsel %vm564_vm3, %v1713_v39, %v561_v43 }
 0x338   :  { %v570_v48 = vsel %vm567_vm4, %v569_v47, %v565_v46 }
 0x35f   :  { %v582_v33 = vpop.permute.xlu0 %581 }
 0x360   :  { %v584_v35 = vmul.f32 %v582_v33, %v551_v34 }
 0x362   :  { %586 = vrot.lane.b32.xlu1 %v584_v35, %s1844_s11 }
 0x367   :  { %v593_v56 = vpop.permute.xlu0 %592 }
 0x368   :  { %v595_v57 = vmul.f32 %v593_v56, %v570_v48 }
 0x38d   :  { %v598_v49 = vpop.permute.xlu1 %597 }
 0x38e   :  { %v600_v50 = vmul.f32 %v598_v49, %v570_v48 }
 0x390   :  { %602 = vrot.lane.b32.xlu2 %v600_v50, %s1844_s11 }
 0x3d4   :  { %v587_v53 = vpop.permute.xlu1 %586 }
 0x3d5   :  { %v589_v54 = vadd.f32 %v587_v53, %v579_v52 }
 0x3d7   :  { %1714 = vtanh.f32 %v589_v54 }
 0x3dd   :  { %v1715_v55 = vpop.eup %1714 }
 0x3de   :  { %608 = vrot.lane.b32.xlu0 %v1715_v55, %s1841_s26 }
 0x3ea   :  { %v603_v58 = vpop.permute.xlu2 %602 }
 0x3eb   :  { %v605_v59 = vadd.f32 %v603_v58, %v595_v57 }
 0x3ed   :  { %1716 = vtanh.f32 %v605_v59 }
 0x3f3   :  { %v1717_v60 = vpop.eup %1716 }
 0x3f4   :  { %614 = vrot.lane.b32.xlu1 %v1717_v60, %s1841_s26 }
 0x3fc   :  { %619 = vrot.lane.b32.xlu1 %v589_v54, %s1845_s4 }
 0x450   :  { %v609_v61 = vpop.permute.xlu0 %608 }
 0x451   :  { %v611_v62 = vmul.f32 %v609_v61, %v551_v34 }
 0x453   :  { %629 = vrot.lane.b32.xlu2 %v611_v62, %s1844_s11 }
 0x45b   :  { %624 = vrot.lane.b32.xlu2 %v605_v59, %s1845_s4 }
 0x466   :  { %v615_v63 = vpop.permute.xlu1 %614 }
 0x467   :  { %v617_v0 = vmul.f32 %v615_v63, %v570_v48 }
 0x469   :  { %634 = vrot.lane.b32.xlu0 %v617_v0, %s1844_s11 }
 0x46e   :  { %v620_v1 = vpop.permute.xlu1 %619 }
 0x46f   :  { %622 = vst.msk [vmem:[#allocation6] sm:$0x3] %vm79_vm0, %v620_v1 }
 0x476   :  { %v724_v2 = vld [vmem:[#allocation6] sm:$0x3] }
 0x477   :  { %726 = vrot.lane.b32.xlu2 %v724_v2, %s1844_s11 }
 0x4ad   :  { %v630_v4 = vpop.permute.xlu2 %629 }
 0x4ae   :  { %632 = vst.msk [vmem:[#allocation4] sm:$0x3] %vm79_vm0, %v630_v4 }
 0x4af   :  { %1641 = vst.msk [vmem:[%s2223_s5 + $0x2] sm:$0x3] %vm79_vm0, %v630_v4 }
 0x4b5   :  { %v625_v5 = vpop.permute.xlu2 %624  ;;  %v644_v7 = vld [vmem:[#allocation4] sm:$0x3] }
 0x4b6   :  { %627 = vst.msk [vmem:[#allocation7] sm:$0x3] %vm79_vm0, %v625_v5  ;;  %v645_v8 = vpack.c.bf16 %v644_v7, %v644_v7 }
 0x4b8   :  { %1643 = vmatmul.msk.bf16.vlgmr.msrb.gmra.mxu0 %vm333_vm1, %v645_v8 }
 0x4b9   :  { %1255 = vmatpush.bf16.msrb.mxu0 %v1896_v3 }
 0x4bd   :  { %1256 = vmatpush.bf16.msrb.mxu0 %v1905_v6  ;;  %v740_v17 = vld [vmem:[#allocation7] sm:$0x3] }
 0x4d1   :  { %v727_v57 = vpop.permute.xlu2 %726 }
 0x4db   :  { %v635_v9 = vpop.permute.xlu0 %634 }
 0x4dc   :  { %637 = vst.msk [vmem:[#allocation5] sm:$0x3] %vm79_vm0, %v635_v9 }
 0x4dd   :  { %1642 = vst.msk [vmem:[%s2224_s6 + $0xc] sm:$0x3] %vm79_vm0, %v635_v9 }
 0x4e3   :  { %v665_v10 = vld [vmem:[#allocation5] sm:$0x3] }
 0x4e4   :  { %v666_v11 = vpack.c.bf16 %v665_v10, %v665_v10 }
 0x4e6   :  { %1644 = vmatmul.msk.bf16.vlgmr.msrb.gmra.mxu1 %vm333_vm1, %v666_v11 }
 0x4e7   :  { %1276 = vmatpush.bf16.msrb.mxu1 %v1945_v21 }
 0x4eb   :  { %1277 = vmatpush.bf16.msrb.mxu1 %v1948_v22 }
 0x535   :  { %v658_v13 = vpop.f32.mrf.mxu0 }
 0x536   :  { %v662_v14 = vadd.f32 %v658_v13, %v643_v12 }
 0x538   :  { %1718 = vtanh.f32 %v662_v14  ;;  %v684_v25 = vsub.f32 0.0, %v662_v14 }
 0x53a   :  { %v685_v26 = vmul.f32 1.442695, %v684_v25 }
 0x53d   :  { %v660_v15 = vpop.f32.mrf.mxu0 }
 0x53e   :  { %v1719_v16 = vpop.eup %1718 }
 0x53f   :  { %731 = vrot.lane.b32.xlu0 %v1719_v16, %s1841_s26 }
 0x547   :  { %742 = vrot.lane.b32.xlu0 %v740_v17, %s1844_s11 }
 0x563   :  { %v679_v19 = vpop.f32.mrf.mxu1 }
 0x564   :  { %v683_v20 = vadd.f32 %v679_v19, %v664_v18  ;;  %v793_v18 = vld [vmem:[#allocation2 + $0x6] sm:$0x3] }
 0x566   :  { %1720 = vtanh.f32 %v683_v20  ;;  %v703_v37 = vsub.f32 0.0, %v683_v20 }
 0x567   :  { %1722 = vpow2.f32 %v685_v26 }
 0x568   :  { %v704_v42 = vmul.f32 1.442695, %v703_v37 }
 0x56b   :  { %v681_v23 = vpop.f32.mrf.mxu1 }
 0x56c   :  { %v1721_v24 = vpop.eup %1720 }
 0x56d   :  { %747 = vrot.lane.b32.xlu1 %v1721_v24, %s1841_s26  ;;  %v1723_v27 = vpop.eup %1722  ;;  %v814_v24 = vld [vmem:[#allocation3 + $0x8] sm:$0x3] }
 0x56e   :  { %v687_v28 = vadd.f32 1.0, %v1723_v27 }
 0x570   :  { %1724 = vrcp.f32 %v687_v28  ;;  %v699_v34 = vand.u32 2147483648, %v687_v28  ;;  %vm693_vm6 = vweird.f32 %v687_v28  ;;  %v697_v35 = vand.u32 2147483647, %v687_v28 }
 0x571   :  { %1726 = vpow2.f32 %v704_v42 }
 0x572   :  { %v700_v38 = vor.u32 1.1754944e-38, %v699_v34  ;;  %vm698_vm8 = vcmp.eq.f32.partialorder %v697_v35, 8.507059e+37 }
 0x576   :  { %v1725_v29 = vpop.eup %1724 }
 0x577   :  { %v689_v30 = vmul.f32 %v1725_v29, %v687_v28  ;;  %vm694_vm5 = vweird.f32 %v1725_v29  ;;  %v1727_v43 = vpop.eup %1726 }
 0x578   :  { %vm695_vm7 = vmor %vm693_vm6, %vm694_vm5  ;;  %v706_v44 = vadd.f32 1.0, %v1727_v43 }
 0x579   :  { %v690_v31 = vsub.f32 1.0, %v689_v30 }
 0x57a   :  { %1728 = vrcp.f32 %v706_v44  ;;  %v718_v50 = vand.u32 2147483648, %v706_v44  ;;  %vm712_vm10 = vweird.f32 %v706_v44  ;;  %v716_v51 = vand.u32 2147483647, %v706_v44 }
 0x57b   :  { %v691_v32 = vmul.f32 %v1725_v29, %v690_v31 }
 0x57c   :  { %v719_v53 = vor.u32 1.1754944e-38, %v718_v50  ;;  %vm717_vm12 = vcmp.eq.f32.partialorder %v716_v51, 8.507059e+37 }
 0x57d   :  { %v692_v33 = vadd.f32 %v1725_v29, %v691_v32 }
 0x57f   :  { %v696_v36 = vsel %vm695_vm7, %v1725_v29, %v692_v33 }
 0x580   :  { %v701_v39 = vsel %vm698_vm8, %v700_v38, %v696_v36  ;;  %v1729_v45 = vpop.eup %1728 }
 0x581   :  { %v708_v46 = vmul.f32 %v1729_v45, %v706_v44  ;;  %vm713_vm9 = vweird.f32 %v1729_v45  ;;  %v729_v58 = vmul.f32 %v727_v57, %v701_v39 }
 0x582   :  { %vm714_vm11 = vmor %vm712_vm10, %vm713_vm9 }
 0x583   :  { %v709_v47 = vsub.f32 1.0, %v708_v46 }
 0x585   :  { %v710_v48 = vmul.f32 %v1729_v45, %v709_v47 }
 0x587   :  { %v711_v49 = vadd.f32 %v1729_v45, %v710_v48 }
 0x589   :  { %v715_v52 = vsel %vm714_vm11, %v1729_v45, %v711_v49 }
 0x58a   :  { %v720_v54 = vsel %vm717_vm12, %v719_v53, %v715_v52 }
 0x5b1   :  { %v732_v40 = vpop.permute.xlu0 %731 }
 0x5b2   :  { %v734_v41 = vmul.f32 %v732_v40, %v701_v39 }
 0x5b4   :  { %736 = vrot.lane.b32.xlu1 %v734_v41, %s1844_s11 }
 0x5b9   :  { %v743_v62 = vpop.permute.xlu0 %742 }
 0x5ba   :  { %v745_v63 = vmul.f32 %v743_v62, %v720_v54 }
 0x5df   :  { %v748_v55 = vpop.permute.xlu1 %747 }
 0x5e0   :  { %v750_v56 = vmul.f32 %v748_v55, %v720_v54 }
 0x5e2   :  { %752 = vrot.lane.b32.xlu2 %v750_v56, %s1844_s11 }
 0x626   :  { %v737_v59 = vpop.permute.xlu1 %736 }
 0x627   :  { %v739_v60 = vadd.f32 %v737_v59, %v729_v58 }
 0x629   :  { %1730 = vtanh.f32 %v739_v60 }
 0x62f   :  { %v1731_v61 = vpop.eup %1730 }
 0x630   :  { %758 = vrot.lane.b32.xlu0 %v1731_v61, %s1841_s26 }
 0x63c   :  { %v753_v0 = vpop.permute.xlu2 %752 }
 0x63d   :  { %v755_v1 = vadd.f32 %v753_v0, %v745_v63 }
 0x63f   :  { %1732 = vtanh.f32 %v755_v1 }
 0x645   :  { %v1733_v2 = vpop.eup %1732 }
 0x646   :  { %764 = vrot.lane.b32.xlu1 %v1733_v2, %s1841_s26 }
 0x64e   :  { %769 = vrot.lane.b32.xlu1 %v739_v60, %s1845_s4 }
 0x6a2   :  { %v759_v4 = vpop.permute.xlu0 %758 }
 0x6a3   :  { %v761_v5 = vmul.f32 %v759_v4, %v701_v39 }
 0x6a5   :  { %779 = vrot.lane.b32.xlu2 %v761_v5, %s1844_s11 }
 0x6ad   :  { %774 = vrot.lane.b32.xlu2 %v755_v1, %s1845_s4 }
 0x6b8   :  { %v765_v7 = vpop.permute.xlu1 %764 }
 0x6b9   :  { %v767_v8 = vmul.f32 %v765_v7, %v720_v54 }
 0x6bb   :  { %784 = vrot.lane.b32.xlu0 %v767_v8, %s1844_s11 }
 0x6c0   :  { %v770_v9 = vpop.permute.xlu1 %769 }
 0x6c1   :  { %772 = vst.msk [vmem:[#allocation6] sm:$0x3] %vm79_vm0, %v770_v9 }
 0x6c8   :  { %v874_v10 = vld [vmem:[#allocation6] sm:$0x3] }
 0x6c9   :  { %876 = vrot.lane.b32.xlu2 %v874_v10, %s1844_s11 }
 0x6ff   :  { %v780_v11 = vpop.permute.xlu2 %779 }
 0x700   :  { %782 = vst.msk [vmem:[#allocation4] sm:$0x3] %vm79_vm0, %v780_v11 }
 0x701   :  { %1645 = vst.msk [vmem:[%s2223_s5 + $0x4] sm:$0x3] %vm79_vm0, %v780_v11 }
 0x707   :  { %v775_v12 = vpop.permute.xlu2 %774  ;;  %v794_v13 = vld [vmem:[#allocation4] sm:$0x3] }
 0x708   :  { %777 = vst.msk [vmem:[#allocation7] sm:$0x3] %vm79_vm0, %v775_v12  ;;  %v795_v14 = vpack.c.bf16 %v794_v13, %v794_v13 }
 0x70a   :  { %1647 = vmatmul.msk.bf16.vlgmr.msra.gmra.mxu2 %vm333_vm1, %v795_v14 }
 0x70b   :  { %1405 = vmatpush.bf16.msra.mxu2 %v1896_v3 }
 0x70f   :  { %1406 = vmatpush.bf16.msra.mxu2 %v1905_v6  ;;  %v890_v23 = vld [vmem:[#allocation7] sm:$0x3] }
 0x723   :  { %v877_v59 = vpop.permute.xlu2 %876 }
 0x72d   :  { %v785_v15 = vpop.permute.xlu0 %784 }
 0x72e   :  { %787 = vst.msk [vmem:[#allocation5] sm:$0x3] %vm79_vm0, %v785_v15 }
 0x72f   :  { %1646 = vst.msk [vmem:[%s2224_s6 + $0xa] sm:$0x3] %vm79_vm0, %v785_v15 }
 0x735   :  { %v815_v16 = vld [vmem:[#allocation5] sm:$0x3] }
 0x736   :  { %v816_v17 = vpack.c.bf16 %v815_v16, %v815_v16 }
 0x738   :  { %1648 = vmatmul.msk.bf16.vlgmr.msra.gmra.mxu3 %vm333_vm1, %v816_v17 }
 0x739   :  { %1425 = vmatpush.bf16.msra.mxu3 %v1945_v21 }
 0x73d   :  { %1426 = vmatpush.bf16.msra.mxu3 %v1948_v22 }
 0x78d   :  { %v808_v3 = vpop.f32.mrf.mxu2 }
 0x78e   :  { %v812_v19 = vadd.f32 %v808_v3, %v793_v18 }
 0x790   :  { %1734 = vtanh.f32 %v812_v19  ;;  %v834_v21 = vsub.f32 0.0, %v812_v19  ;;  %v943_v19 = vld [vmem:[#allocation2 + $0x8] sm:$0x3] }
 0x792   :  { %v835_v22 = vmul.f32 1.442695, %v834_v21 }
 0x795   :  { %v810_v6 = vpop.f32.mrf.mxu2 }
 0x796   :  { %v1735_v20 = vpop.eup %1734 }
 0x797   :  { %881 = vrot.lane.b32.xlu0 %v1735_v20, %s1841_s26 }
 0x79f   :  { %892 = vrot.lane.b32.xlu0 %v890_v23, %s1844_s11 }
 0x7bb   :  { %v829_v25 = vpop.f32.mrf.mxu3 }
 0x7bc   :  { %v833_v26 = vadd.f32 %v829_v25, %v814_v24 }
 0x7be   :  { %1736 = vtanh.f32 %v833_v26  ;;  %v853_v39 = vsub.f32 0.0, %v833_v26  ;;  %v964_v26 = vld [vmem:[#allocation3 + $0x6] sm:$0x3] }
 0x7bf   :  { %1738 = vpow2.f32 %v835_v22 }
 0x7c0   :  { %v854_v44 = vmul.f32 1.442695, %v853_v39 }
 0x7c3   :  { %v831_v27 = vpop.f32.mrf.mxu3 }
 0x7c4   :  { %v1737_v28 = vpop.eup %1736 }
 0x7c5   :  { %897 = vrot.lane.b32.xlu1 %v1737_v28, %s1841_s26  ;;  %v1739_v29 = vpop.eup %1738 }
 0x7c6   :  { %v837_v30 = vadd.f32 1.0, %v1739_v29 }
 0x7c8   :  { %1740 = vrcp.f32 %v837_v30  ;;  %v849_v36 = vand.u32 2147483648, %v837_v30  ;;  %vm843_vm14 = vweird.f32 %v837_v30  ;;  %v847_v37 = vand.u32 2147483647, %v837_v30 }
 0x7c9   :  { %1742 = vpow2.f32 %v854_v44 }
 0x7ca   :  { %v850_v40 = vor.u32 1.1754944e-38, %v849_v36  ;;  %vm848_vm2 = vcmp.eq.f32.partialorder %v847_v37, 8.507059e+37 }
 0x7ce   :  { %v1741_v31 = vpop.eup %1740 }
 0x7cf   :  { %v839_v32 = vmul.f32 %v1741_v31, %v837_v30  ;;  %vm844_vm13 = vweird.f32 %v1741_v31  ;;  %v1743_v45 = vpop.eup %1742 }
 0x7d0   :  { %vm845_vm15 = vmor %vm843_vm14, %vm844_vm13  ;;  %v856_v46 = vadd.f32 1.0, %v1743_v45 }
 0x7d1   :  { %v840_v33 = vsub.f32 1.0, %v839_v32 }
 0x7d2   :  { %1744 = vrcp.f32 %v856_v46  ;;  %v868_v52 = vand.u32 2147483648, %v856_v46  ;;  %vm862_vm4 = vweird.f32 %v856_v46  ;;  %v866_v53 = vand.u32 2147483647, %v856_v46 }
 0x7d3   :  { %v841_v34 = vmul.f32 %v1741_v31, %v840_v33 }
 0x7d4   :  { %v869_v55 = vor.u32 1.1754944e-38, %v868_v52  ;;  %vm867_vm6 = vcmp.eq.f32.partialorder %v866_v53, 8.507059e+37 }
 0x7d5   :  { %v842_v35 = vadd.f32 %v1741_v31, %v841_v34 }
 0x7d7   :  { %v846_v38 = vsel %vm845_vm15, %v1741_v31, %v842_v35 }
 0x7d8   :  { %v851_v42 = vsel %vm848_vm2, %v850_v40, %v846_v38  ;;  %v1745_v47 = vpop.eup %1744 }
 0x7d9   :  { %v858_v48 = vmul.f32 %v1745_v47, %v856_v46  ;;  %vm863_vm3 = vweird.f32 %v1745_v47  ;;  %v879_v60 = vmul.f32 %v877_v59, %v851_v42 }
 0x7da   :  { %vm864_vm5 = vmor %vm862_vm4, %vm863_vm3 }
 0x7db   :  { %v859_v49 = vsub.f32 1.0, %v858_v48 }
 0x7dd   :  { %v860_v50 = vmul.f32 %v1745_v47, %v859_v49 }
 0x7df   :  { %v861_v51 = vadd.f32 %v1745_v47, %v860_v50 }
 0x7e1   :  { %v865_v54 = vsel %vm864_vm5, %v1745_v47, %v861_v51 }
 0x7e2   :  { %v870_v56 = vsel %vm867_vm6, %v869_v55, %v865_v54 }
 0x809   :  { %v882_v41 = vpop.permute.xlu0 %881 }
 0x80a   :  { %v884_v43 = vmul.f32 %v882_v41, %v851_v42 }
 0x80c   :  { %886 = vrot.lane.b32.xlu1 %v884_v43, %s1844_s11 }
 0x811   :  { %v893_v0 = vpop.permute.xlu0 %892 }
 0x812   :  { %v895_v1 = vmul.f32 %v893_v0, %v870_v56 }
 0x837   :  { %v898_v57 = vpop.permute.xlu1 %897 }
 0x838   :  { %v900_v58 = vmul.f32 %v898_v57, %v870_v56 }
 0x83a   :  { %902 = vrot.lane.b32.xlu2 %v900_v58, %s1844_s11 }
 0x87e   :  { %v887_v61 = vpop.permute.xlu1 %886 }
 0x87f   :  { %v889_v62 = vadd.f32 %v887_v61, %v879_v60 }
 0x881   :  { %1746 = vtanh.f32 %v889_v62 }
 0x887   :  { %v1747_v63 = vpop.eup %1746 }
 0x888   :  { %908 = vrot.lane.b32.xlu0 %v1747_v63, %s1841_s26 }
 0x894   :  { %v903_v2 = vpop.permute.xlu2 %902 }
 0x895   :  { %v905_v4 = vadd.f32 %v903_v2, %v895_v1 }
 0x897   :  { %1748 = vtanh.f32 %v905_v4 }
 0x89d   :  { %v1749_v5 = vpop.eup %1748 }
 0x89e   :  { %914 = vrot.lane.b32.xlu1 %v1749_v5, %s1841_s26 }
 0x8a6   :  { %919 = vrot.lane.b32.xlu1 %v889_v62, %s1845_s4 }
 0x8fa   :  { %v909_v7 = vpop.permute.xlu0 %908 }
 0x8fb   :  { %v911_v8 = vmul.f32 %v909_v7, %v851_v42 }
 0x8fd   :  { %929 = vrot.lane.b32.xlu2 %v911_v8, %s1844_s11 }
 0x905   :  { %924 = vrot.lane.b32.xlu2 %v905_v4, %s1845_s4 }
 0x910   :  { %v915_v9 = vpop.permute.xlu1 %914 }
 0x911   :  { %v917_v10 = vmul.f32 %v915_v9, %v870_v56 }
 0x913   :  { %934 = vrot.lane.b32.xlu0 %v917_v10, %s1844_s11 }
 0x918   :  { %v920_v11 = vpop.permute.xlu1 %919 }
 0x919   :  { %922 = vst.msk [vmem:[#allocation6] sm:$0x3] %vm79_vm0, %v920_v11 }
 0x920   :  { %v1024_v12 = vld [vmem:[#allocation6] sm:$0x3] }
 0x921   :  { %1026 = vrot.lane.b32.xlu2 %v1024_v12, %s1844_s11 }
 0x957   :  { %v930_v13 = vpop.permute.xlu2 %929 }
 0x958   :  { %932 = vst.msk [vmem:[#allocation4] sm:$0x3] %vm79_vm0, %v930_v13 }
 0x959   :  { %1649 = vst.msk [vmem:[%s2223_s5 + $0x6] sm:$0x3] %vm79_vm0, %v930_v13 }
 0x95f   :  { %v925_v14 = vpop.permute.xlu2 %924  ;;  %v944_v15 = vld [vmem:[#allocation4] sm:$0x3] }
 0x960   :  { %927 = vst.msk [vmem:[#allocation7] sm:$0x3] %vm79_vm0, %v925_v14  ;;  %v945_v16 = vpack.c.bf16 %v944_v15, %v944_v15 }
 0x962   :  { %1651 = vmatmul.msk.bf16.vlgmr.msra.gmra.mxu0 %vm333_vm1, %v945_v16 }
 0x967   :  { %v1040_v25 = vld [vmem:[#allocation7] sm:$0x3] }
 0x97b   :  { %v1027_v61 = vpop.permute.xlu2 %1026 }
 0x985   :  { %v935_v17 = vpop.permute.xlu0 %934 }
 0x986   :  { %937 = vst.msk [vmem:[#allocation5] sm:$0x3] %vm79_vm0, %v935_v17 }
 0x987   :  { %1650 = vst.msk [vmem:[%s2224_s6 + $0x8] sm:$0x3] %vm79_vm0, %v935_v17 }
 0x98d   :  { %v965_v18 = vld [vmem:[#allocation5] sm:$0x3] }
 0x98e   :  { %v966_v3 = vpack.c.bf16 %v965_v18, %v965_v18 }
 0x990   :  { %1652 = vmatmul.msk.bf16.vlgmr.msra.gmra.mxu1 %vm333_vm1, %v966_v3 }
 0x9df   :  { %v958_v6 = vpop.f32.mrf.mxu0 }
 0x9e0   :  { %v962_v20 = vadd.f32 %v958_v6, %v943_v19 }
 0x9e2   :  { %1750 = vtanh.f32 %v962_v20  ;;  %v984_v29 = vsub.f32 0.0, %v962_v20  ;;  %v1093_v20 = vld [vmem:[#allocation2 + $0xa] sm:$0x3] }
 0x9e4   :  { %v985_v30 = vmul.f32 1.442695, %v984_v29 }
 0x9e7   :  { %v960_v23 = vpop.f32.mrf.mxu0 }
 0x9e8   :  { %v1751_v24 = vpop.eup %1750 }
 0x9e9   :  { %1031 = vrot.lane.b32.xlu0 %v1751_v24, %s1841_s26 }
 0x9f1   :  { %1042 = vrot.lane.b32.xlu0 %v1040_v25, %s1844_s11 }
 0xa0d   :  { %v979_v27 = vpop.f32.mrf.mxu1 }
 0xa0e   :  { %v983_v28 = vadd.f32 %v979_v27, %v964_v26 }
 0xa10   :  { %1752 = vtanh.f32 %v983_v28  ;;  %v1003_v41 = vsub.f32 0.0, %v983_v28  ;;  %v1114_v28 = vld [vmem:[#allocation3 + $0x4] sm:$0x3] }
 0xa11   :  { %1754 = vpow2.f32 %v985_v30 }
 0xa12   :  { %v1004_v46 = vmul.f32 1.442695, %v1003_v41 }
 0xa15   :  { %v981_v21 = vpop.f32.mrf.mxu1 }
 0xa16   :  { %v1753_v22 = vpop.eup %1752 }
 0xa17   :  { %1047 = vrot.lane.b32.xlu1 %v1753_v22, %s1841_s26  ;;  %v1755_v31 = vpop.eup %1754 }
 0xa18   :  { %v987_v32 = vadd.f32 1.0, %v1755_v31 }
 0xa1a   :  { %1756 = vrcp.f32 %v987_v32  ;;  %v999_v38 = vand.u32 2147483648, %v987_v32  ;;  %vm993_vm8 = vweird.f32 %v987_v32  ;;  %v997_v39 = vand.u32 2147483647, %v987_v32 }
 0xa1b   :  { %1758 = vpow2.f32 %v1004_v46 }
 0xa1c   :  { %v1000_v42 = vor.u32 1.1754944e-38, %v999_v38  ;;  %vm998_vm10 = vcmp.eq.f32.partialorder %v997_v39, 8.507059e+37 }
 0xa20   :  { %v1757_v33 = vpop.eup %1756 }
 0xa21   :  { %v989_v34 = vmul.f32 %v1757_v33, %v987_v32  ;;  %vm994_vm7 = vweird.f32 %v1757_v33  ;;  %v1759_v47 = vpop.eup %1758 }
 0xa22   :  { %vm995_vm9 = vmor %vm993_vm8, %vm994_vm7  ;;  %v1006_v48 = vadd.f32 1.0, %v1759_v47 }
 0xa23   :  { %v990_v35 = vsub.f32 1.0, %v989_v34 }
 0xa24   :  { %1760 = vrcp.f32 %v1006_v48  ;;  %v1018_v54 = vand.u32 2147483648, %v1006_v48  ;;  %vm1012_vm12 = vweird.f32 %v1006_v48  ;;  %v1016_v55 = vand.u32 2147483647, %v1006_v48 }
 0xa25   :  { %v991_v36 = vmul.f32 %v1757_v33, %v990_v35 }
 0xa26   :  { %v1019_v57 = vor.u32 1.1754944e-38, %v1018_v54  ;;  %vm1017_vm14 = vcmp.eq.f32.partialorder %v1016_v55, 8.507059e+37 }
 0xa27   :  { %v992_v37 = vadd.f32 %v1757_v33, %v991_v36 }
 0xa29   :  { %v996_v40 = vsel %vm995_vm9, %v1757_v33, %v992_v37 }
 0xa2a   :  { %v1001_v43 = vsel %vm998_vm10, %v1000_v42, %v996_v40  ;;  %v1761_v49 = vpop.eup %1760 }
 0xa2b   :  { %v1008_v50 = vmul.f32 %v1761_v49, %v1006_v48  ;;  %vm1013_vm11 = vweird.f32 %v1761_v49  ;;  %v1029_v62 = vmul.f32 %v1027_v61, %v1001_v43 }
 0xa2c   :  { %vm1014_vm13 = vmor %vm1012_vm12, %vm1013_vm11 }
 0xa2d   :  { %v1009_v51 = vsub.f32 1.0, %v1008_v50 }
 0xa2f   :  { %v1010_v52 = vmul.f32 %v1761_v49, %v1009_v51 }
 0xa31   :  { %v1011_v53 = vadd.f32 %v1761_v49, %v1010_v52 }
 0xa33   :  { %v1015_v56 = vsel %vm1014_vm13, %v1761_v49, %v1011_v53 }
 0xa34   :  { %v1020_v58 = vsel %vm1017_vm14, %v1019_v57, %v1015_v56 }
 0xa5b   :  { %v1032_v44 = vpop.permute.xlu0 %1031 }
 0xa5c   :  { %v1034_v45 = vmul.f32 %v1032_v44, %v1001_v43 }
 0xa5e   :  { %1036 = vrot.lane.b32.xlu1 %v1034_v45, %s1844_s11 }
 0xa63   :  { %v1043_v2 = vpop.permute.xlu0 %1042 }
 0xa64   :  { %v1045_v4 = vmul.f32 %v1043_v2, %v1020_v58 }
 0xa89   :  { %v1048_v59 = vpop.permute.xlu1 %1047 }
 0xa8a   :  { %v1050_v60 = vmul.f32 %v1048_v59, %v1020_v58 }
 0xa8c   :  { %1052 = vrot.lane.b32.xlu2 %v1050_v60, %s1844_s11 }
 0xad0   :  { %v1037_v63 = vpop.permute.xlu1 %1036 }
 0xad1   :  { %v1039_v0 = vadd.f32 %v1037_v63, %v1029_v62 }
 0xad3   :  { %1762 = vtanh.f32 %v1039_v0 }
 0xad9   :  { %v1763_v1 = vpop.eup %1762 }
 0xada   :  { %1058 = vrot.lane.b32.xlu0 %v1763_v1, %s1841_s26 }
 0xae6   :  { %v1053_v5 = vpop.permute.xlu2 %1052 }
 0xae7   :  { %v1055_v7 = vadd.f32 %v1053_v5, %v1045_v4 }
 0xae9   :  { %1764 = vtanh.f32 %v1055_v7 }
 0xaef   :  { %v1765_v8 = vpop.eup %1764 }
 0xaf0   :  { %1064 = vrot.lane.b32.xlu1 %v1765_v8, %s1841_s26 }
 0xaf8   :  { %1069 = vrot.lane.b32.xlu1 %v1039_v0, %s1845_s4 }
 0xb4c   :  { %v1059_v9 = vpop.permute.xlu0 %1058 }
 0xb4d   :  { %v1061_v10 = vmul.f32 %v1059_v9, %v1001_v43 }
 0xb4f   :  { %1079 = vrot.lane.b32.xlu2 %v1061_v10, %s1844_s11 }
 0xb57   :  { %1074 = vrot.lane.b32.xlu2 %v1055_v7, %s1845_s4 }
 0xb62   :  { %v1065_v11 = vpop.permute.xlu1 %1064 }
 0xb63   :  { %v1067_v12 = vmul.f32 %v1065_v11, %v1020_v58 }
 0xb65   :  { %1084 = vrot.lane.b32.xlu0 %v1067_v12, %s1844_s11 }
 0xb6a   :  { %v1070_v13 = vpop.permute.xlu1 %1069 }
 0xb6b   :  { %1072 = vst.msk [vmem:[#allocation6] sm:$0x3] %vm79_vm0, %v1070_v13 }
 0xb72   :  { %v1174_v14 = vld [vmem:[#allocation6] sm:$0x3] }
 0xb73   :  { %1176 = vrot.lane.b32.xlu2 %v1174_v14, %s1844_s11 }
 0xba9   :  { %v1080_v15 = vpop.permute.xlu2 %1079 }
 0xbaa   :  { %1082 = vst.msk [vmem:[#allocation4] sm:$0x3] %vm79_vm0, %v1080_v15 }
 0xbab   :  { %1653 = vst.msk [vmem:[%s2223_s5 + $0x8] sm:$0x3] %vm79_vm0, %v1080_v15 }
 0xbb1   :  { %v1075_v16 = vpop.permute.xlu2 %1074  ;;  %v1094_v17 = vld [vmem:[#allocation4] sm:$0x3] }
 0xbb2   :  { %1077 = vst.msk [vmem:[#allocation7] sm:$0x3] %vm79_vm0, %v1075_v16  ;;  %v1095_v18 = vpack.c.bf16 %v1094_v17, %v1094_v17 }
 0xbb4   :  { %1655 = vmatmul.msk.bf16.vlgmr.msrb.gmra.mxu2 %vm333_vm1, %v1095_v18 }
 0xbb9   :  { %v1190_v27 = vld [vmem:[#allocation7] sm:$0x3] }
 0xbcd   :  { %v1177_v63 = vpop.permute.xlu2 %1176 }
 0xbd7   :  { %v1085_v3 = vpop.permute.xlu0 %1084 }
 0xbd8   :  { %1087 = vst.msk [vmem:[#allocation5] sm:$0x3] %vm79_vm0, %v1085_v3 }
 0xbd9   :  { %1654 = vst.msk [vmem:[%s2224_s6 + $0x6] sm:$0x3] %vm79_vm0, %v1085_v3 }
 0xbdf   :  { %v1115_v19 = vld [vmem:[#allocation5] sm:$0x3] }
 0xbe0   :  { %v1116_v6 = vpack.c.bf16 %v1115_v19, %v1115_v19 }
 0xbe2   :  { %1656 = vmatmul.msk.bf16.vlgmr.msrb.gmra.mxu3 %vm333_vm1, %v1116_v6 }
 0xc37   :  { %v1108_v23 = vpop.f32.mrf.mxu2 }
 0xc38   :  { %v1112_v24 = vadd.f32 %v1108_v23, %v1093_v20 }
 0xc3a   :  { %1766 = vtanh.f32 %v1112_v24  ;;  %v1134_v31 = vsub.f32 0.0, %v1112_v24  ;;  %v1243_v24 = vld [vmem:[#allocation2 + $0xc] sm:$0x3] }
 0xc3c   :  { %v1135_v32 = vmul.f32 1.442695, %v1134_v31 }
 0xc3f   :  { %v1110_v25 = vpop.f32.mrf.mxu2 }
 0xc40   :  { %v1767_v26 = vpop.eup %1766 }
 0xc41   :  { %1181 = vrot.lane.b32.xlu0 %v1767_v26, %s1841_s26 }
 0xc49   :  { %1192 = vrot.lane.b32.xlu0 %v1190_v27, %s1844_s11 }
 0xc65   :  { %v1129_v21 = vpop.f32.mrf.mxu3 }
 0xc66   :  { %v1133_v22 = vadd.f32 %v1129_v21, %v1114_v28 }
 0xc68   :  { %1768 = vtanh.f32 %v1133_v22  ;;  %v1153_v43 = vsub.f32 0.0, %v1133_v22  ;;  %v1264_v22 = vld [vmem:[#allocation3 + $0x2] sm:$0x3] }
 0xc69   :  { %1770 = vpow2.f32 %v1135_v32 }
 0xc6a   :  { %v1154_v48 = vmul.f32 1.442695, %v1153_v43 }
 0xc6d   :  { %v1131_v29 = vpop.f32.mrf.mxu3 }
 0xc6e   :  { %v1769_v30 = vpop.eup %1768 }
 0xc6f   :  { %1197 = vrot.lane.b32.xlu1 %v1769_v30, %s1841_s26  ;;  %v1771_v33 = vpop.eup %1770 }
 0xc70   :  { %v1137_v34 = vadd.f32 1.0, %v1771_v33 }
 0xc72   :  { %1772 = vrcp.f32 %v1137_v34  ;;  %v1149_v40 = vand.u32 2147483648, %v1137_v34  ;;  %vm1143_vm2 = vweird.f32 %v1137_v34  ;;  %v1147_v41 = vand.u32 2147483647, %v1137_v34 }
 0xc73   :  { %1774 = vpow2.f32 %v1154_v48 }
 0xc74   :  { %v1150_v44 = vor.u32 1.1754944e-38, %v1149_v40  ;;  %vm1148_vm4 = vcmp.eq.f32.partialorder %v1147_v41, 8.507059e+37 }
 0xc78   :  { %v1773_v35 = vpop.eup %1772 }
 0xc79   :  { %v1139_v36 = vmul.f32 %v1773_v35, %v1137_v34  ;;  %vm1144_vm15 = vweird.f32 %v1773_v35  ;;  %v1775_v49 = vpop.eup %1774 }
 0xc7a   :  { %vm1145_vm3 = vmor %vm1143_vm2, %vm1144_vm15  ;;  %v1156_v50 = vadd.f32 1.0, %v1775_v49 }
 0xc7b   :  { %v1140_v37 = vsub.f32 1.0, %v1139_v36 }
 0xc7c   :  { %1776 = vrcp.f32 %v1156_v50  ;;  %v1168_v56 = vand.u32 2147483648, %v1156_v50  ;;  %vm1162_vm6 = vweird.f32 %v1156_v50  ;;  %v1166_v57 = vand.u32 2147483647, %v1156_v50 }
 0xc7d   :  { %v1141_v38 = vmul.f32 %v1773_v35, %v1140_v37 }
 0xc7e   :  { %v1169_v59 = vor.u32 1.1754944e-38, %v1168_v56  ;;  %vm1167_vm8 = vcmp.eq.f32.partialorder %v1166_v57, 8.507059e+37 }
 0xc7f   :  { %v1142_v39 = vadd.f32 %v1773_v35, %v1141_v38 }
 0xc81   :  { %v1146_v42 = vsel %vm1145_vm3, %v1773_v35, %v1142_v39 }
 0xc82   :  { %v1151_v46 = vsel %vm1148_vm4, %v1150_v44, %v1146_v42  ;;  %v1777_v51 = vpop.eup %1776 }
 0xc83   :  { %v1158_v52 = vmul.f32 %v1777_v51, %v1156_v50  ;;  %vm1163_vm5 = vweird.f32 %v1777_v51  ;;  %v1179_v0 = vmul.f32 %v1177_v63, %v1151_v46 }
 0xc84   :  { %vm1164_vm7 = vmor %vm1162_vm6, %vm1163_vm5 }
 0xc85   :  { %v1159_v53 = vsub.f32 1.0, %v1158_v52 }
 0xc87   :  { %v1160_v54 = vmul.f32 %v1777_v51, %v1159_v53 }
 0xc89   :  { %v1161_v55 = vadd.f32 %v1777_v51, %v1160_v54 }
 0xc8b   :  { %v1165_v58 = vsel %vm1164_vm7, %v1777_v51, %v1161_v55 }
 0xc8c   :  { %v1170_v60 = vsel %vm1167_vm8, %v1169_v59, %v1165_v58 }
 0xcb3   :  { %v1182_v45 = vpop.permute.xlu0 %1181 }
 0xcb4   :  { %v1184_v47 = vmul.f32 %v1182_v45, %v1151_v46 }
 0xcb6   :  { %1186 = vrot.lane.b32.xlu1 %v1184_v47, %s1844_s11 }
 0xcbb   :  { %v1193_v5 = vpop.permute.xlu0 %1192 }
 0xcbc   :  { %v1195_v7 = vmul.f32 %v1193_v5, %v1170_v60 }
 0xce1   :  { %v1198_v61 = vpop.permute.xlu1 %1197 }
 0xce2   :  { %v1200_v62 = vmul.f32 %v1198_v61, %v1170_v60 }
 0xce4   :  { %1202 = vrot.lane.b32.xlu2 %v1200_v62, %s1844_s11 }
 0xd28   :  { %v1187_v1 = vpop.permute.xlu1 %1186 }
 0xd29   :  { %v1189_v2 = vadd.f32 %v1187_v1, %v1179_v0 }
 0xd2b   :  { %1778 = vtanh.f32 %v1189_v2 }
 0xd31   :  { %v1779_v4 = vpop.eup %1778 }
 0xd32   :  { %1208 = vrot.lane.b32.xlu0 %v1779_v4, %s1841_s26 }
 0xd3e   :  { %v1203_v8 = vpop.permute.xlu2 %1202 }
 0xd3f   :  { %v1205_v9 = vadd.f32 %v1203_v8, %v1195_v7 }
 0xd41   :  { %1780 = vtanh.f32 %v1205_v9 }
 0xd47   :  { %v1781_v10 = vpop.eup %1780 }
 0xd48   :  { %1214 = vrot.lane.b32.xlu1 %v1781_v10, %s1841_s26 }
 0xd50   :  { %1219 = vrot.lane.b32.xlu1 %v1189_v2, %s1845_s4 }
 0xda4   :  { %v1209_v11 = vpop.permute.xlu0 %1208 }
 0xda5   :  { %v1211_v12 = vmul.f32 %v1209_v11, %v1151_v46 }
 0xda7   :  { %1229 = vrot.lane.b32.xlu2 %v1211_v12, %s1844_s11 }
 0xdaf   :  { %1224 = vrot.lane.b32.xlu2 %v1205_v9, %s1845_s4 }
 0xdba   :  { %v1215_v13 = vpop.permute.xlu1 %1214 }
 0xdbb   :  { %v1217_v14 = vmul.f32 %v1215_v13, %v1170_v60 }
 0xdbd   :  { %1234 = vrot.lane.b32.xlu0 %v1217_v14, %s1844_s11 }
 0xdc2   :  { %v1220_v15 = vpop.permute.xlu1 %1219 }
 0xdc3   :  { %1222 = vst.msk [vmem:[#allocation6] sm:$0x3] %vm79_vm0, %v1220_v15 }
 0xdca   :  { %v1324_v16 = vld [vmem:[#allocation6] sm:$0x3] }
 0xdcb   :  { %1326 = vrot.lane.b32.xlu2 %v1324_v16, %s1844_s11 }
 0xe01   :  { %v1230_v17 = vpop.permute.xlu2 %1229 }
 0xe02   :  { %1232 = vst.msk [vmem:[#allocation4] sm:$0x3] %vm79_vm0, %v1230_v17 }
 0xe03   :  { %1657 = vst.msk [vmem:[%s2223_s5 + $0xa] sm:$0x3] %vm79_vm0, %v1230_v17 }
 0xe09   :  { %v1225_v18 = vpop.permute.xlu2 %1224  ;;  %v1244_v3 = vld [vmem:[#allocation4] sm:$0x3] }
 0xe0a   :  { %1227 = vst.msk [vmem:[#allocation7] sm:$0x3] %vm79_vm0, %v1225_v18  ;;  %v1245_v19 = vpack.c.bf16 %v1244_v3, %v1244_v3 }
 0xe0c   :  { %1659 = vmatmul.msk.bf16.vlgmr.msrb.gmra.mxu0 %vm333_vm1, %v1245_v19 }
 0xe11   :  { %v1340_v21 = vld [vmem:[#allocation7] sm:$0x3] }
 0xe25   :  { %v1327_v1 = vpop.permute.xlu2 %1326 }
 0xe2f   :  { %v1235_v6 = vpop.permute.xlu0 %1234 }
 0xe30   :  { %1237 = vst.msk [vmem:[#allocation5] sm:$0x3] %vm79_vm0, %v1235_v6 }
 0xe31   :  { %1658 = vst.msk [vmem:[%s2224_s6 + $0x4] sm:$0x3] %vm79_vm0, %v1235_v6 }
 0xe37   :  { %v1265_v20 = vld [vmem:[#allocation5] sm:$0x3] }
 0xe38   :  { %v1266_v23 = vpack.c.bf16 %v1265_v20, %v1265_v20 }
 0xe3a   :  { %1660 = vmatmul.msk.bf16.vlgmr.msrb.gmra.mxu1 %vm333_vm1, %v1266_v23 }
 0xe89   :  { %v1258_v25 = vpop.f32.mrf.mxu0 }
 0xe8a   :  { %v1262_v26 = vadd.f32 %v1258_v25, %v1243_v24 }
 0xe8c   :  { %1782 = vtanh.f32 %v1262_v26  ;;  %v1284_v33 = vsub.f32 0.0, %v1262_v26  ;;  %v1393_v26 = vld [vmem:[#allocation2 + $0xe] sm:$0x3] }
 0xe8e   :  { %v1285_v34 = vmul.f32 1.442695, %v1284_v33 }
 0xe91   :  { %v1260_v27 = vpop.f32.mrf.mxu0 }
 0xe92   :  { %v1783_v28 = vpop.eup %1782 }
 0xe93   :  { %1331 = vrot.lane.b32.xlu0 %v1783_v28, %s1841_s26 }
 0xe9b   :  { %1342 = vrot.lane.b32.xlu0 %v1340_v21, %s1844_s11 }
 0xeb7   :  { %v1279_v29 = vpop.f32.mrf.mxu1 }
 0xeb8   :  { %v1283_v30 = vadd.f32 %v1279_v29, %v1264_v22 }
 0xeba   :  { %1784 = vtanh.f32 %v1283_v30  ;;  %v1303_v45 = vsub.f32 0.0, %v1283_v30  ;;  %v1413_v30 = vld [vmem:[#allocation3] sm:$0x3] }
 0xebb   :  { %1786 = vpow2.f32 %v1285_v34 }
 0xebc   :  { %v1304_v50 = vmul.f32 1.442695, %v1303_v45 }
 0xebf   :  { %v1281_v31 = vpop.f32.mrf.mxu1 }
 0xec0   :  { %v1785_v32 = vpop.eup %1784 }
 0xec1   :  { %1347 = vrot.lane.b32.xlu1 %v1785_v32, %s1841_s26  ;;  %v1787_v35 = vpop.eup %1786 }
 0xec2   :  { %v1287_v36 = vadd.f32 1.0, %v1787_v35 }
 0xec4   :  { %1788 = vrcp.f32 %v1287_v36  ;;  %v1299_v42 = vand.u32 2147483648, %v1287_v36  ;;  %vm1293_vm10 = vweird.f32 %v1287_v36  ;;  %v1297_v43 = vand.u32 2147483647, %v1287_v36 }
 0xec5   :  { %1790 = vpow2.f32 %v1304_v50 }
 0xec6   :  { %v1300_v46 = vor.u32 1.1754944e-38, %v1299_v42  ;;  %vm1298_vm12 = vcmp.eq.f32.partialorder %v1297_v43, 8.507059e+37 }
 0xeca   :  { %v1789_v37 = vpop.eup %1788 }
 0xecb   :  { %v1289_v38 = vmul.f32 %v1789_v37, %v1287_v36  ;;  %vm1294_vm9 = vweird.f32 %v1789_v37  ;;  %v1791_v51 = vpop.eup %1790 }
 0xecc   :  { %vm1295_vm11 = vmor %vm1293_vm10, %vm1294_vm9  ;;  %v1306_v52 = vadd.f32 1.0, %v1791_v51 }
 0xecd   :  { %v1290_v39 = vsub.f32 1.0, %v1289_v38 }
 0xece   :  { %1792 = vrcp.f32 %v1306_v52  ;;  %v1318_v58 = vand.u32 2147483648, %v1306_v52  ;;  %vm1312_vm14 = vweird.f32 %v1306_v52  ;;  %v1316_v59 = vand.u32 2147483647, %v1306_v52 }
 0xecf   :  { %v1291_v40 = vmul.f32 %v1789_v37, %v1290_v39 }
 0xed0   :  { %v1319_v61 = vor.u32 1.1754944e-38, %v1318_v58  ;;  %vm1317_vm2 = vcmp.eq.f32.partialorder %v1316_v59, 8.507059e+37 }
 0xed1   :  { %v1292_v41 = vadd.f32 %v1789_v37, %v1291_v40 }
 0xed3   :  { %v1296_v44 = vsel %vm1295_vm11, %v1789_v37, %v1292_v41 }
 0xed4   :  { %v1301_v47 = vsel %vm1298_vm12, %v1300_v46, %v1296_v44  ;;  %v1793_v53 = vpop.eup %1792 }
 0xed5   :  { %v1308_v54 = vmul.f32 %v1793_v53, %v1306_v52  ;;  %vm1313_vm13 = vweird.f32 %v1793_v53  ;;  %v1329_v2 = vmul.f32 %v1327_v1, %v1301_v47 }
 0xed6   :  { %vm1314_vm15 = vmor %vm1312_vm14, %vm1313_vm13 }
 0xed7   :  { %v1309_v55 = vsub.f32 1.0, %v1308_v54 }
 0xed9   :  { %v1310_v56 = vmul.f32 %v1793_v53, %v1309_v55 }
 0xedb   :  { %v1311_v57 = vadd.f32 %v1793_v53, %v1310_v56 }
 0xedd   :  { %v1315_v60 = vsel %vm1314_vm15, %v1793_v53, %v1311_v57 }
 0xede   :  { %v1320_v62 = vsel %vm1317_vm2, %v1319_v61, %v1315_v60 }
 0xf05   :  { %v1332_v48 = vpop.permute.xlu0 %1331 }
 0xf06   :  { %v1334_v49 = vmul.f32 %v1332_v48, %v1301_v47 }
 0xf08   :  { %1336 = vrot.lane.b32.xlu1 %v1334_v49, %s1844_s11 }
 0xf0d   :  { %v1343_v8 = vpop.permute.xlu0 %1342 }
 0xf0e   :  { %v1345_v9 = vmul.f32 %v1343_v8, %v1320_v62 }
 0xf33   :  { %v1348_v63 = vpop.permute.xlu1 %1347 }
 0xf34   :  { %v1350_v0 = vmul.f32 %v1348_v63, %v1320_v62 }
 0xf36   :  { %1352 = vrot.lane.b32.xlu2 %v1350_v0, %s1844_s11 }
 0xf7a   :  { %v1337_v4 = vpop.permute.xlu1 %1336 }
 0xf7b   :  { %v1339_v5 = vadd.f32 %v1337_v4, %v1329_v2 }
 0xf7d   :  { %1794 = vtanh.f32 %v1339_v5 }
 0xf83   :  { %v1795_v7 = vpop.eup %1794 }
 0xf84   :  { %1358 = vrot.lane.b32.xlu0 %v1795_v7, %s1841_s26 }
 0xf90   :  { %v1353_v10 = vpop.permute.xlu2 %1352 }
 0xf91   :  { %v1355_v11 = vadd.f32 %v1353_v10, %v1345_v9 }
 0xf93   :  { %1796 = vtanh.f32 %v1355_v11 }
 0xf99   :  { %v1797_v12 = vpop.eup %1796 }
 0xf9a   :  { %1364 = vrot.lane.b32.xlu1 %v1797_v12, %s1841_s26 }
 0xfa2   :  { %1369 = vrot.lane.b32.xlu1 %v1339_v5, %s1845_s4 }
 0xff6   :  { %v1359_v13 = vpop.permute.xlu0 %1358 }
 0xff7   :  { %v1361_v14 = vmul.f32 %v1359_v13, %v1301_v47 }
 0xff9   :  { %1379 = vrot.lane.b32.xlu2 %v1361_v14, %s1844_s11 }
0x1001   :  { %1374 = vrot.lane.b32.xlu2 %v1355_v11, %s1845_s4 }
0x100c   :  { %v1365_v15 = vpop.permute.xlu1 %1364 }
0x100d   :  { %v1367_v16 = vmul.f32 %v1365_v15, %v1320_v62 }
0x100f   :  { %1384 = vrot.lane.b32.xlu0 %v1367_v16, %s1844_s11 }
0x1014   :  { %v1370_v17 = vpop.permute.xlu1 %1369 }
0x1015   :  { %1372 = vst.msk [vmem:[#allocation6] sm:$0x3] %vm79_vm0, %v1370_v17 }
0x101c   :  { %v1473_v18 = vld [vmem:[#allocation6] sm:$0x3] }
0x101d   :  { %1475 = vrot.lane.b32.xlu2 %v1473_v18, %s1844_s11 }
0x1053   :  { %v1380_v3 = vpop.permute.xlu2 %1379 }
0x1054   :  { %1382 = vst.msk [vmem:[#allocation4] sm:$0x3] %vm79_vm0, %v1380_v3 }
0x1055   :  { %1661 = vst.msk [vmem:[%s2223_s5 + $0xc] sm:$0x3] %vm79_vm0, %v1380_v3 }
0x105b   :  { %v1375_v19 = vpop.permute.xlu2 %1374  ;;  %v1394_v6 = vld [vmem:[#allocation4] sm:$0x3] }
0x105c   :  { %1377 = vst.msk [vmem:[#allocation7] sm:$0x3] %vm79_vm0, %v1375_v19  ;;  %v1395_v20 = vpack.c.bf16 %v1394_v6, %v1394_v6 }
0x105e   :  { %1663 = vmatmul.msk.bf16.vlgmr.msra.gmra.mxu2 %vm333_vm1, %v1395_v20 }
0x1063   :  { %v1489_v29 = vld [vmem:[#allocation7] sm:$0x3] }
0x1077   :  { %v1476_v4 = vpop.permute.xlu2 %1475 }
0x1081   :  { %v1385_v23 = vpop.permute.xlu0 %1384 }
0x1082   :  { %1387 = vst.msk [vmem:[#allocation5] sm:$0x3] %vm79_vm0, %v1385_v23 }
0x1083   :  { %1662 = vst.msk [vmem:[%s2224_s6 + $0x2] sm:$0x3] %vm79_vm0, %v1385_v23 }
0x1089   :  { %v1414_v24 = vld [vmem:[#allocation5] sm:$0x3] }
0x108a   :  { %v1415_v25 = vpack.c.bf16 %v1414_v24, %v1414_v24 }
0x108c   :  { %1664 = vmatmul.msk.bf16.vlgmr.msra.gmra.mxu3 %vm333_vm1, %v1415_v25 }
0x10e1   :  { %v1408_v27 = vpop.f32.mrf.mxu2 }
0x10e2   :  { %v1412_v28 = vadd.f32 %v1408_v27, %v1393_v26 }
0x10e4   :  { %1798 = vtanh.f32 %v1412_v28  ;;  %v1433_v35 = vsub.f32 0.0, %v1412_v28 }
0x10e6   :  { %v1434_v36 = vmul.f32 1.442695, %v1433_v35 }
0x10e9   :  { %v1410_v21 = vpop.f32.mrf.mxu2 }
0x10ea   :  { %v1799_v22 = vpop.eup %1798 }
0x10eb   :  { %1480 = vrot.lane.b32.xlu0 %v1799_v22, %s1841_s26 }
0x10f3   :  { %1491 = vrot.lane.b32.xlu0 %v1489_v29, %s1844_s11 }
0x110f   :  { %v1428_v31 = vpop.f32.mrf.mxu3 }
0x1110   :  { %v1432_v32 = vadd.f32 %v1428_v31, %v1413_v30 }
0x1112   :  { %1800 = vtanh.f32 %v1432_v32  ;;  %v1452_v47 = vsub.f32 0.0, %v1432_v32 }
0x1113   :  { %1802 = vpow2.f32 %v1434_v36 }
0x1114   :  { %v1453_v52 = vmul.f32 1.442695, %v1452_v47 }
0x1117   :  { %v1430_v33 = vpop.f32.mrf.mxu3 }
0x1118   :  { %v1801_v34 = vpop.eup %1800 }
0x1119   :  { %1496 = vrot.lane.b32.xlu1 %v1801_v34, %s1841_s26  ;;  %v1803_v37 = vpop.eup %1802 }
0x111a   :  { %v1436_v38 = vadd.f32 1.0, %v1803_v37 }
0x111c   :  { %1804 = vrcp.f32 %v1436_v38  ;;  %v1448_v44 = vand.u32 2147483648, %v1436_v38  ;;  %vm1442_vm3 = vweird.f32 %v1436_v38  ;;  %v1446_v45 = vand.u32 2147483647, %v1436_v38 }
0x111d   :  { %1806 = vpow2.f32 %v1453_v52 }
0x111e   :  { %v1449_v48 = vor.u32 1.1754944e-38, %v1448_v44  ;;  %vm1447_vm5 = vcmp.eq.f32.partialorder %v1446_v45, 8.507059e+37 }
0x1122   :  { %v1805_v39 = vpop.eup %1804 }
0x1123   :  { %v1438_v40 = vmul.f32 %v1805_v39, %v1436_v38  ;;  %vm1443_vm1 = vweird.f32 %v1805_v39  ;;  %v1807_v53 = vpop.eup %1806 }
0x1124   :  { %vm1444_vm4 = vmor %vm1442_vm3, %vm1443_vm1  ;;  %v1455_v54 = vadd.f32 1.0, %v1807_v53 }
0x1125   :  { %v1439_v41 = vsub.f32 1.0, %v1438_v40 }
0x1126   :  { %1808 = vrcp.f32 %v1455_v54  ;;  %v1467_v60 = vand.u32 2147483648, %v1455_v54  ;;  %vm1461_vm7 = vweird.f32 %v1455_v54  ;;  %v1465_v61 = vand.u32 2147483647, %v1455_v54 }
0x1127   :  { %v1440_v42 = vmul.f32 %v1805_v39, %v1439_v41 }
0x1128   :  { %v1468_v63 = vor.u32 1.1754944e-38, %v1467_v60  ;;  %vm1466_vm9 = vcmp.eq.f32.partialorder %v1465_v61, 8.507059e+37 }
0x1129   :  { %v1441_v43 = vadd.f32 %v1805_v39, %v1440_v42 }
0x112b   :  { %v1445_v46 = vsel %vm1444_vm4, %v1805_v39, %v1441_v43 }
0x112c   :  { %v1450_v50 = vsel %vm1447_vm5, %v1449_v48, %v1445_v46  ;;  %v1809_v55 = vpop.eup %1808 }
0x112d   :  { %v1457_v56 = vmul.f32 %v1809_v55, %v1455_v54  ;;  %vm1462_vm6 = vweird.f32 %v1809_v55  ;;  %v1478_v5 = vmul.f32 %v1476_v4, %v1450_v50 }
0x112e   :  { %vm1463_vm8 = vmor %vm1461_vm7, %vm1462_vm6 }
0x112f   :  { %v1458_v57 = vsub.f32 1.0, %v1457_v56 }
0x1131   :  { %v1459_v58 = vmul.f32 %v1809_v55, %v1458_v57 }
0x1133   :  { %v1460_v59 = vadd.f32 %v1809_v55, %v1459_v58 }
0x1135   :  { %v1464_v62 = vsel %vm1463_vm8, %v1809_v55, %v1460_v59 }
0x1136   :  { %v1469_v0 = vsel %vm1466_vm9, %v1468_v63, %v1464_v62 }
0x115d   :  { %v1481_v49 = vpop.permute.xlu0 %1480 }
0x115e   :  { %v1483_v51 = vmul.f32 %v1481_v49, %v1450_v50 }
0x1160   :  { %1485 = vrot.lane.b32.xlu1 %v1483_v51, %s1844_s11 }
0x1165   :  { %v1492_v10 = vpop.permute.xlu0 %1491 }
0x1166   :  { %v1494_v11 = vmul.f32 %v1492_v10, %v1469_v0 }
0x118b   :  { %v1497_v1 = vpop.permute.xlu1 %1496 }
0x118c   :  { %v1499_v2 = vmul.f32 %v1497_v1, %v1469_v0 }
0x118e   :  { %1501 = vrot.lane.b32.xlu2 %v1499_v2, %s1844_s11 }
0x11d2   :  { %v1486_v7 = vpop.permute.xlu1 %1485 }
0x11d3   :  { %v1488_v8 = vadd.f32 %v1486_v7, %v1478_v5 }
0x11d5   :  { %1810 = vtanh.f32 %v1488_v8  ;;  %1518 = vrot.lane.b32.xlu2 %v1488_v8, %s1845_s4 }
0x11db   :  { %v1811_v9 = vpop.eup %1810 }
0x11dc   :  { %1507 = vrot.lane.b32.xlu0 %v1811_v9, %s1841_s26 }
0x11e8   :  { %v1502_v12 = vpop.permute.xlu2 %1501 }
0x11e9   :  { %v1504_v13 = vadd.f32 %v1502_v12, %v1494_v11 }
0x11eb   :  { %1812 = vtanh.f32 %v1504_v13  ;;  %1523 = vrot.lane.b32.xlu0 %v1504_v13, %s1845_s4 }
0x11f1   :  { %v1813_v14 = vpop.eup %1812 }
0x11f2   :  { %1513 = vrot.lane.b32.xlu1 %v1813_v14, %s1841_s26 }
0x122f   :  { %v1519_v15 = vpop.permute.xlu2 %1518 }
0x1230   :  { %1521 = vst.msk [vmem:[#allocation6] sm:$0x3] %vm79_vm0, %v1519_v15 }
0x124e   :  { %v1508_v16 = vpop.permute.xlu0 %1507 }
0x124f   :  { %v1510_v17 = vmul.f32 %v1508_v16, %v1450_v50 }
0x1251   :  { %1528 = vrot.lane.b32.xlu1 %v1510_v17, %s1844_s11 }
0x125d   :  { %v1524_v18 = vpop.permute.xlu0 %1523 }
0x125e   :  { %1526 = vst.msk [vmem:[#allocation7] sm:$0x3] %vm79_vm0, %v1524_v18 }
0x1264   :  { %v1514_v3 = vpop.permute.xlu1 %1513 }
0x1265   :  { %v1516_v19 = vmul.f32 %v1514_v3, %v1469_v0 }
0x1267   :  { %1533 = vrot.lane.b32.xlu2 %v1516_v19, %s1844_s11 }
0x12c1   :  { %v1534_v6 = vpop.permute.xlu2 %1533 }
0x12c2   :  { %1536 = vst.msk [vmem:[#allocation5] sm:$0x3] %vm79_vm0, %v1534_v6 }
0x12c3   :  { %v1529_v20 = vpop.permute.xlu1 %1528  ;;  %1539 = vst.msk [vmem:[%s2224_s6] sm:$0x3] %vm79_vm0, %v1534_v6 }
0x12c4   :  { %1531 = vst.msk [vmem:[#allocation4] sm:$0x3] %vm79_vm0, %v1529_v20 }
0x12c5   :  { %1665 = vst.msk [vmem:[%s2223_s5 + $0xe] sm:$0x3] %vm79_vm0, %v1529_v20 }
0x12c6   :  { %1562 = vsyncpa [#allocation9], 1 }

// kernel: forward_pallas.6
= control target key start
LH: loop header
LB: loop body
LE: loop exit
PB: predicated region body
PF: predicated region fallthrough
CT: control target
= control target key end

     0   :  { %12 = vsyncpa [#allocation9], 0  ;;  %s2158_s0 = inlined_call_operand.vmem [shape: f32[8,2,16], index: 0, kind: input, shape index: {}, may-alias: {0,1}]   ;;  %s2159_s1 = inlined_call_operand.vmem [shape: f32[8,2,16], index: 1, kind: input, shape index: {}, may-alias: {0,1}]   ;;  %s2160_s2 = inlined_call_operand.hbm [shape: bf16[2,16,128], index: 2, kind: input, shape index: {}]   ;;  %s2161_s3 = inlined_call_operand.hbm [shape: bf16[2,32,128], index: 3, kind: input, shape index: {}]   ;;  %s2162_s4 = inlined_call_operand.vmem [shape: f32[2,1,128], index: 4, kind: input, shape index: {}]   ;;  %s2163_s5 = inlined_call_operand.vmem [shape: f32[8,2,32], index: 5, kind: output, shape index: {0}]   ;;  %s2164_s6 = inlined_call_operand.vmem [shape: f32[8,2,32], index: 6, kind: output, shape index: {1}]  }
   0x1   :  { %s30_s23 = sshll.u32 %s2160_s2, 4  ;;  %s31_s23 = int_to_ptr.hbm [resolvable:$true] %s30_s23 }
   0x2   :  { %13 = vsyncpa [#allocation11], 0  ;;  %s1798_s24 = smov [#allocation8]   ;;  %s43_s28 = sshll.u32 %s2161_s3, 4  ;;  %s44_s28 = int_to_ptr.hbm [resolvable:$true] %s43_s28 }
   0x3   :  { %s32_s25 = sshll.u32 %s1798_s24, 4  ;;  %s1799_s29 = smov 64   ;;  %s33_s25 = int_to_ptr.vmem [resolvable:$true] %s32_s25 }
   0x4   :  { %s1800_s30 = smov 4   ;;  %s1801_s7 = smov [#allocation10]  }
   0x5   :  { %38 = dma.hbm_to_vmem [thread:$0]  %s31_s23, 256, %s33_s25, [#allocation9], %s1799_s29, %s1799_s29, %s1800_s30  }
   0x6   :  { %s45_s8 = sshll.u32 %s1801_s7, 4  ;;  %s46_s8 = int_to_ptr.vmem [resolvable:$true] %s45_s8 }
   0x7   :  { %51 = dma.hbm_to_vmem [thread:$0]  %s44_s28, 512, %s46_s8, [#allocation11], %s1799_s29, %s1799_s29, %s1800_s30  }
   0x8   :  { %1794 = dma.done.wait [#allocation9], 256  }
   0x9   :  { %1795 = vsyncadd [#allocation9], 4294967040 }
   0xa   :  { %1796 = dma.done.wait [#allocation11], 512  }
   0xb   :  { %1797 = vsyncadd [#allocation11], 4294966784  ;;  %vm95_vm0 = vcmask 254976   ;;  %v1802_v0 = vmov 0.0   ;;  %v1854_v1 = vld [vmem:[#allocation10 + $0x8] sm:$0xff]  ;;  %v1603_v2 = vld [vmem:[#allocation8] sm:$0xff] }
   0xc   :  { %96 = vst.msk [vmem:[#allocation4] sm:$0x3] %vm95_vm0, %v1802_v0  ;;  %v100_v3 = vld [vmem:[%s2158_s0] sm:$0x3]  ;;  %311 = vmatpush.bf16.msra.mxu2 %v1854_v1  ;;  %195 = vmatpush.bf16.msra.mxu0 %v1603_v2  ;;  %v101_v6 = vld [vmem:[%s2158_s0 + $0x2] sm:$0x3] }
   0xd   :  { %97 = vst.msk [vmem:[#allocation5] sm:$0x3] %vm95_vm0, %v1802_v0  ;;  %v1860_v4 = vld [vmem:[#allocation10] sm:$0xff]  ;;  %v104_v10 = vld [vmem:[%s2158_s0 + $0x8] sm:$0x3]  ;;  %vm301_vm1 = vcmask 261120  }
   0xe   :  { %98 = vst.msk [vmem:[#allocation6] sm:$0x3] %vm95_vm0, %v1802_v0  ;;  %v102_v7 = vld [vmem:[%s2158_s0 + $0x4] sm:$0x3]  ;;  %v103_v8 = vld [vmem:[%s2158_s0 + $0x6] sm:$0x3] }
   0xf   :  { %99 = vst.msk [vmem:[#allocation7] sm:$0x3] %vm95_vm0, %v1802_v0  ;;  %v105_v11 = vld [vmem:[%s2158_s0 + $0xa] sm:$0x3]  ;;  %v106_v12 = vld [vmem:[%s2158_s0 + $0xc] sm:$0x3] }
  0x10   :  { %473 = vmatpush.bf16.msrb.mxu0 %v1854_v1  ;;  %116 = vst [vmem:[#allocation1] ss:$4 sm:$0xff] %v100_v3  ;;  %312 = vmatpush.bf16.msra.mxu2 %v1860_v4  ;;  %v107_v13 = vld [vmem:[%s2158_s0 + $0xe] sm:$0x3]  ;;  %v1604_v14 = vld [vmem:[#allocation8 + $0x8] sm:$0xff]  ;;  %v1890_v16 = vld [vmem:[#allocation10 + $0x10] sm:$0xff] }
  0x11   :  { %118 = vst [vmem:[#allocation1 + $0x1] ss:$4 sm:$0xff] %v101_v6  ;;  %v1887_v15 = vld [vmem:[#allocation10 + $0x18] sm:$0xff]  ;;  %248 = vmatpush.bf16.msra.mxu1 %v1604_v14  ;;  %s1803_s23 = smov 32   ;;  %v136_v19 = vld [vmem:[%s2159_s1] sm:$0x3] }
  0x12   :  { %120 = vst [vmem:[#allocation1 + $0x2] ss:$4 sm:$0xff] %v102_v7  ;;  %344 = vmatpush.bf16.msra.mxu3 %v1887_v15  ;;  %v137_v20 = vld [vmem:[%s2159_s1 + $0x2] sm:$0x3]  ;;  %v138_v23 = vld [vmem:[%s2159_s1 + $0x4] sm:$0x3] }
  0x13   :  { %v287_v5 = vld [vmem:[#allocation4] sm:$0x3]  ;;  %122 = vst [vmem:[#allocation1 + $0x3] ss:$4 sm:$0xff] %v103_v8  ;;  %v139_v24 = vld [vmem:[%s2159_s1 + $0x6] sm:$0x3] }
  0x14   :  { %v288_v9 = vpack.c.bf16 %v287_v5, %v287_v5  ;;  %474 = vmatpush.bf16.msrb.mxu0 %v1860_v4  ;;  %623 = vmatpush.bf16.msrb.mxu2 %v1854_v1  ;;  %124 = vst [vmem:[#allocation1 + $0x20] ss:$4 sm:$0xff] %v104_v10  ;;  %v321_v18 = vld [vmem:[#allocation5] sm:$0x3]  ;;  %v140_v25 = vld [vmem:[%s2159_s1 + $0x8] sm:$0x3] }
  0x15   :  { %126 = vst [vmem:[#allocation1 + $0x21] ss:$4 sm:$0xff] %v105_v11  ;;  %v392_v17 = vld [vmem:[#allocation6] sm:$0x3]  ;;  %494 = vmatpush.bf16.msrb.mxu1 %v1887_v15  ;;  %v322_v21 = vpack.c.bf16 %v321_v18, %v321_v18  ;;  %v141_v27 = vld [vmem:[%s2159_s1 + $0xa] sm:$0x3] }
  0x16   :  { %1565 = vmatmul.msk.bf16.vlgmr.msra.gmra.mxu2 %vm301_vm1, %v288_v9  ;;  %128 = vst [vmem:[#allocation1 + $0x22] ss:$4 sm:$0xff] %v106_v12  ;;  %394 = vrot.lane.b32.xlu1 %v392_v17, %s1803_s23  ;;  %v408_v26 = vld [vmem:[#allocation7] sm:$0x3]  ;;  %v142_v28 = vld [vmem:[%s2159_s1 + $0xc] sm:$0x3] }
  0x17   :  { %130 = vst [vmem:[#allocation1 + $0x23] ss:$4 sm:$0xff] %v107_v13  ;;  %345 = vmatpush.bf16.msra.mxu3 %v1890_v16  ;;  %vm184_vm2 = vcmask 130048   ;;  %v143_v31 = vld [vmem:[%s2159_s1 + $0xe] sm:$0x3] }
  0x18   :  { %624 = vmatpush.bf16.msrb.mxu2 %v1860_v4  ;;  %v1616_v36 = vld [vmem:[%s2162_s4] ss:$0 sm:$0xff]  ;;  %v1617_v45 = vld [vmem:[%s2162_s4 + $0x1] ss:$0 sm:$0xff]  ;;  %s1804_s4 = smov 96  }
  0x19   :  { %495 = vmatpush.bf16.msrb.mxu1 %v1890_v16 }
  0x1a   :  { %v131_v22 = vld.sshfl [vmem:[#allocation1] sm:$0xff pattern:$0x73625140]  ;;  %1574 = vmatmul.msk.bf16.vlgmr.msra.gmra.mxu3 %vm301_vm1, %v322_v21 }
  0x1b   :  { %152 = vst [vmem:[#allocation1] ss:$4 sm:$0xff] %v136_v19  ;;  %644 = vmatpush.bf16.msrb.mxu3 %v1887_v15 }
  0x1c   :  { %923 = vmatpush.bf16.msra.mxu2 %v1854_v1  ;;  %154 = vst [vmem:[#allocation1 + $0x1] ss:$4 sm:$0xff] %v137_v20 }
  0x1d   :  { %156 = vst [vmem:[#allocation1 + $0x2] ss:$4 sm:$0xff] %v138_v23 }
  0x1e   :  { %v132_v29 = vld.sshfl [vmem:[#allocation1 + $0x20] sm:$0xff pattern:$0x73625140]  ;;  %158 = vst [vmem:[#allocation1 + $0x3] ss:$4 sm:$0xff] %v139_v24  ;;  %410 = vrot.lane.b32.xlu1 %v408_v26, %s1803_s23 }
  0x1f   :  { %v135_v30 = vpack.c.bf16 %v132_v29, %v131_v22  ;;  %160 = vst [vmem:[#allocation1 + $0x20] ss:$4 sm:$0xff] %v140_v25  ;;  %645 = vmatpush.bf16.msrb.mxu3 %v1890_v16 }
  0x20   :  { %924 = vmatpush.bf16.msra.mxu2 %v1860_v4  ;;  %162 = vst [vmem:[#allocation1 + $0x21] ss:$4 sm:$0xff] %v141_v27 }
  0x21   :  { %164 = vst [vmem:[#allocation1 + $0x22] ss:$4 sm:$0xff] %v142_v28  ;;  %1550 = vmatmul.msk.bf16.vlgmr.msra.gmra.mxu0 %vm184_vm2, %v135_v30 }
  0x22   :  { %166 = vst [vmem:[#allocation1 + $0x23] ss:$4 sm:$0xff] %v143_v31  ;;  %773 = vmatpush.bf16.msra.mxu0 %v1854_v1 }
  0x23   :  { %944 = vmatpush.bf16.msra.mxu3 %v1887_v15 }
  0x25   :  { %v167_v32 = vld.sshfl [vmem:[#allocation1] sm:$0xff pattern:$0x73625140] }
  0x26   :  { %774 = vmatpush.bf16.msra.mxu0 %v1860_v4 }
  0x27   :  { %945 = vmatpush.bf16.msra.mxu3 %v1890_v16 }
  0x29   :  { %v168_v33 = vld.sshfl [vmem:[#allocation1 + $0x20] sm:$0xff pattern:$0x73625140] }
  0x2a   :  { %v171_v34 = vpack.c.bf16 %v168_v33, %v167_v32 }
  0x2c   :  { %1556 = vmatmul.msk.bf16.vlgmr.msra.gmra.mxu1 %vm184_vm2, %v171_v34 }
  0x2d   :  { %794 = vmatpush.bf16.msra.mxu1 %v1887_v15 }
  0x31   :  { %795 = vmatpush.bf16.msra.mxu1 %v1890_v16 }
  0x99   :  { %v314_v35 = vpop.f32.mrf.mxu2 }
  0x9d   :  { %v347_v40 = vpop.f32.mrf.mxu3 }
  0x9e   :  { %v197_v37 = vpop.f32.mrf.mxu0 }
  0x9f   :  { %v198_v38 = vadd.f32 %v1616_v36, %v197_v37 }
  0xa1   :  { %v316_v39 = vpop.f32.mrf.mxu2  ;;  %v204_v41 = vrot.slane %v198_v38, 2  ;;  %v205_v42 = vrot.slane %v198_v38, 4  ;;  %v206_v43 = vrot.slane %v198_v38, 6  ;;  %216 = vst [vmem:[#allocation2] sm:$0x3] %v198_v38 }
  0xa2   :  { %v395_v39 = vpop.permute.xlu1 %394 }
  0xa3   :  { %217 = vst [vmem:[#allocation2 + $0x2] sm:$0x3] %v204_v41 }
  0xa4   :  { %218 = vst [vmem:[#allocation2 + $0x4] sm:$0x3] %v205_v42 }
  0xa5   :  { %219 = vst [vmem:[#allocation2 + $0x6] sm:$0x3] %v206_v43  ;;  %v349_v48 = vpop.f32.mrf.mxu3 }
  0xa6   :  { %v199_v44 = vpop.f32.mrf.mxu0 }
  0xa7   :  { %v200_v46 = vadd.f32 %v1616_v36, %v199_v44 }
  0xa8   :  { %v286_v47 = vld [vmem:[#allocation2] sm:$0x3] }
  0xa9   :  { %v318_v49 = vadd.f32 %v314_v35, %v286_v47  ;;  %v207_v50 = vrot.slane %v200_v46, 2  ;;  %v208_v51 = vrot.slane %v200_v46, 4  ;;  %v209_v52 = vrot.slane %v200_v46, 6  ;;  %220 = vst [vmem:[#allocation2 + $0x8] sm:$0x3] %v200_v46  ;;  %v250_v53 = vpop.f32.mrf.mxu1 }
  0xaa   :  { %v251_v54 = vadd.f32 %v1617_v45, %v250_v53  ;;  %v411_v44 = vpop.permute.xlu1 %410 }
  0xab   :  { %221 = vst [vmem:[#allocation2 + $0xa] sm:$0x3] %v207_v50  ;;  %1618 = vtanh.f32 %v318_v49  ;;  %v352_v5 = vsub.f32 0.0, %v318_v49 }
  0xac   :  { %222 = vst [vmem:[#allocation2 + $0xc] sm:$0x3] %v208_v51  ;;  %v257_v55 = vrot.slane %v251_v54, 2  ;;  %v258_v56 = vrot.slane %v251_v54, 4  ;;  %v259_v57 = vrot.slane %v251_v54, 6 }
  0xad   :  { %223 = vst [vmem:[#allocation2 + $0xe] sm:$0x3] %v209_v52  ;;  %v353_v6 = vmul.f32 1.442695, %v352_v5 }
  0xae   :  { %269 = vst [vmem:[#allocation3] sm:$0x3] %v251_v54 }
  0xaf   :  { %270 = vst [vmem:[#allocation3 + $0x2] sm:$0x3] %v257_v55 }
  0xb0   :  { %271 = vst [vmem:[#allocation3 + $0x4] sm:$0x3] %v258_v56 }
  0xb1   :  { %v1619_v58 = vpop.eup %1618  ;;  %272 = vst [vmem:[#allocation3 + $0x6] sm:$0x3] %v259_v57  ;;  %v252_v59 = vpop.f32.mrf.mxu1 }
  0xb2   :  { %v253_v60 = vadd.f32 %v1617_v45, %v252_v59  ;;  %399 = vrot.lane.b32.xlu0 %v1619_v58, %s1799_s29 }
  0xb4   :  { %v260_v61 = vrot.slane %v253_v60, 2  ;;  %v261_v62 = vrot.slane %v253_v60, 4  ;;  %v262_v63 = vrot.slane %v253_v60, 6  ;;  %273 = vst [vmem:[#allocation3 + $0x8] sm:$0x3] %v253_v60 }
  0xb6   :  { %274 = vst [vmem:[#allocation3 + $0xa] sm:$0x3] %v260_v61 }
  0xb7   :  { %275 = vst [vmem:[#allocation3 + $0xc] sm:$0x3] %v261_v62  ;;  %v461_v62 = vld [vmem:[#allocation2 + $0x2] sm:$0x3] }
  0xb8   :  { %276 = vst [vmem:[#allocation3 + $0xe] sm:$0x3] %v262_v63 }
  0xbf   :  { %v320_v0 = vld [vmem:[#allocation3 + $0xe] sm:$0x3] }
  0xc0   :  { %v351_v2 = vadd.f32 %v347_v40, %v320_v0 }
  0xc2   :  { %1620 = vtanh.f32 %v351_v2  ;;  %v371_v9 = vsub.f32 0.0, %v351_v2 }
  0xc3   :  { %1622 = vpow2.f32 %v353_v6  ;;  %v482_v6 = vld [vmem:[#allocation3 + $0xc] sm:$0x3] }
  0xc4   :  { %v372_v11 = vmul.f32 1.442695, %v371_v9 }
  0xc8   :  { %v1621_v3 = vpop.eup %1620 }
  0xc9   :  { %415 = vrot.lane.b32.xlu0 %v1621_v3, %s1799_s29  ;;  %v1623_v7 = vpop.eup %1622 }
  0xca   :  { %v355_v8 = vadd.f32 1.0, %v1623_v7 }
  0xcc   :  { %1624 = vrcp.f32 %v355_v8  ;;  %v367_v20 = vand.u32 2147483648, %v355_v8  ;;  %vm361_vm4 = vweird.f32 %v355_v8  ;;  %v365_v21 = vand.u32 2147483647, %v355_v8 }
  0xcd   :  { %1626 = vpow2.f32 %v372_v11 }
  0xce   :  { %v368_v23 = vor.u32 1.1754944e-38, %v367_v20  ;;  %vm366_vm6 = vcmp.eq.f32.partialorder %v365_v21, 8.507059e+37 }
  0xd2   :  { %v1625_v10 = vpop.eup %1624 }
  0xd3   :  { %v357_v12 = vmul.f32 %v1625_v10, %v355_v8  ;;  %v1627_v14 = vpop.eup %1626  ;;  %vm362_vm3 = vweird.f32 %v1625_v10 }
  0xd4   :  { %v374_v18 = vadd.f32 1.0, %v1627_v14  ;;  %vm363_vm5 = vmor %vm361_vm4, %vm362_vm3 }
  0xd5   :  { %v358_v13 = vsub.f32 1.0, %v357_v12 }
  0xd6   :  { %1628 = vrcp.f32 %v374_v18  ;;  %v386_v32 = vand.u32 2147483648, %v374_v18  ;;  %vm380_vm8 = vweird.f32 %v374_v18  ;;  %v384_v33 = vand.u32 2147483647, %v374_v18 }
  0xd7   :  { %v359_v17 = vmul.f32 %v1625_v10, %v358_v13 }
  0xd8   :  { %v387_v35 = vor.u32 1.1754944e-38, %v386_v32  ;;  %vm385_vm10 = vcmp.eq.f32.partialorder %v384_v33, 8.507059e+37 }
  0xd9   :  { %v360_v19 = vadd.f32 %v1625_v10, %v359_v17 }
  0xdb   :  { %v364_v22 = vsel %vm363_vm5, %v1625_v10, %v360_v19 }
  0xdc   :  { %v369_v24 = vsel %vm366_vm6, %v368_v23, %v364_v22  ;;  %v1629_v26 = vpop.eup %1628 }
  0xdd   :  { %v376_v28 = vmul.f32 %v1629_v26, %v374_v18  ;;  %vm381_vm7 = vweird.f32 %v1629_v26  ;;  %v397_v40 = vmul.f32 %v395_v39, %v369_v24 }
  0xde   :  { %vm382_vm9 = vmor %vm380_vm8, %vm381_vm7 }
  0xdf   :  { %v377_v29 = vsub.f32 1.0, %v376_v28 }
  0xe1   :  { %v378_v30 = vmul.f32 %v1629_v26, %v377_v29 }
  0xe3   :  { %v379_v31 = vadd.f32 %v1629_v26, %v378_v30 }
  0xe5   :  { %v383_v34 = vsel %vm382_vm9, %v1629_v26, %v379_v31 }
  0xe6   :  { %v388_v36 = vsel %vm385_vm10, %v387_v35, %v383_v34 }
  0xe7   :  { %v413_v45 = vmul.f32 %v411_v44, %v388_v36 }
 0x124   :  { %v400_v25 = vpop.permute.xlu0 %399 }
 0x125   :  { %v402_v27 = vmul.f32 %v400_v25, %v369_v24 }
 0x127   :  { %404 = vrot.lane.b32.xlu2 %v402_v27, %s1803_s23 }
 0x13b   :  { %v416_v37 = vpop.permute.xlu0 %415 }
 0x13c   :  { %v418_v38 = vmul.f32 %v416_v37, %v388_v36 }
 0x13e   :  { %420 = vrot.lane.b32.xlu2 %v418_v38, %s1803_s23 }
 0x181   :  { %v405_v41 = vpop.permute.xlu2 %404 }
 0x182   :  { %v407_v42 = vadd.f32 %v405_v41, %v397_v40 }
 0x184   :  { %1630 = vtanh.f32 %v407_v42 }
 0x18a   :  { %v1631_v43 = vpop.eup %1630 }
 0x18b   :  { %426 = vrot.lane.b32.xlu0 %v1631_v43, %s1799_s29 }
 0x198   :  { %v421_v46 = vpop.permute.xlu2 %420 }
 0x199   :  { %v423_v47 = vadd.f32 %v421_v46, %v413_v45 }
 0x19b   :  { %1632 = vtanh.f32 %v423_v47 }
 0x1a1   :  { %v1633_v48 = vpop.eup %1632 }
 0x1a2   :  { %432 = vrot.lane.b32.xlu1 %v1633_v48, %s1799_s29 }
 0x1aa   :  { %437 = vrot.lane.b32.xlu1 %v407_v42, %s1804_s4 }
 0x1fd   :  { %v427_v49 = vpop.permute.xlu0 %426 }
 0x1fe   :  { %v429_v50 = vmul.f32 %v427_v49, %v369_v24 }
 0x200   :  { %448 = vrot.lane.b32.xlu2 %v429_v50, %s1803_s23 }
 0x208   :  { %443 = vrot.lane.b32.xlu2 %v423_v47, %s1804_s4 }
 0x214   :  { %v433_v51 = vpop.permute.xlu1 %432 }
 0x215   :  { %v435_v52 = vmul.f32 %v433_v51, %v388_v36 }
 0x217   :  { %453 = vrot.lane.b32.xlu0 %v435_v52, %s1803_s23 }
 0x21c   :  { %v438_v53 = vpop.permute.xlu1 %437 }
 0x21d   :  { %441 = vst.msk [vmem:[#allocation6] sm:$0x3] %vm95_vm0, %v438_v53 }
 0x224   :  { %v542_v54 = vld [vmem:[#allocation6] sm:$0x3] }
 0x225   :  { %544 = vrot.lane.b32.xlu2 %v542_v54, %s1803_s23 }
 0x25a   :  { %v449_v55 = vpop.permute.xlu2 %448 }
 0x25b   :  { %451 = vst.msk [vmem:[#allocation4] sm:$0x3] %vm95_vm0, %v449_v55 }
 0x25c   :  { %457 = vst.msk [vmem:[%s2163_s5] sm:$0x3] %vm95_vm0, %v449_v55 }
 0x262   :  { %v444_v56 = vpop.permute.xlu2 %443  ;;  %v462_v57 = vld [vmem:[#allocation4] sm:$0x3] }
 0x263   :  { %446 = vst.msk [vmem:[#allocation7] sm:$0x3] %vm95_vm0, %v444_v56  ;;  %v463_v58 = vpack.c.bf16 %v462_v57, %v462_v57 }
 0x265   :  { %1576 = vmatmul.msk.bf16.vlgmr.msrb.gmra.mxu0 %vm301_vm1, %v463_v58 }
 0x266   :  { %1073 = vmatpush.bf16.msrb.mxu0 %v1854_v1 }
 0x26a   :  { %1074 = vmatpush.bf16.msrb.mxu0 %v1860_v4  ;;  %v558_v5 = vld [vmem:[#allocation7] sm:$0x3] }
 0x27f   :  { %v545_v45 = vpop.permute.xlu2 %544 }
 0x289   :  { %v454_v59 = vpop.permute.xlu0 %453 }
 0x28a   :  { %456 = vst.msk [vmem:[#allocation5] sm:$0x3] %vm95_vm0, %v454_v59 }
 0x28b   :  { %1575 = vst.msk [vmem:[%s2164_s6 + $0xe] sm:$0x3] %vm95_vm0, %v454_v59 }
 0x291   :  { %v483_v60 = vld [vmem:[#allocation5] sm:$0x3] }
 0x292   :  { %v484_v61 = vpack.c.bf16 %v483_v60, %v483_v60 }
 0x294   :  { %1577 = vmatmul.msk.bf16.vlgmr.msrb.gmra.mxu1 %vm301_vm1, %v484_v61 }
 0x295   :  { %1094 = vmatpush.bf16.msrb.mxu1 %v1887_v15 }
 0x299   :  { %1095 = vmatpush.bf16.msrb.mxu1 %v1890_v16 }
 0x2e2   :  { %v476_v63 = vpop.f32.mrf.mxu0 }
 0x2e3   :  { %v480_v0 = vadd.f32 %v476_v63, %v461_v62 }
 0x2e5   :  { %1634 = vtanh.f32 %v480_v0  ;;  %v502_v11 = vsub.f32 0.0, %v480_v0 }
 0x2e7   :  { %v503_v12 = vmul.f32 1.442695, %v502_v11 }
 0x2ea   :  { %v478_v2 = vpop.f32.mrf.mxu0 }
 0x2eb   :  { %v1635_v3 = vpop.eup %1634 }
 0x2ec   :  { %549 = vrot.lane.b32.xlu0 %v1635_v3, %s1799_s29 }
 0x2f4   :  { %560 = vrot.lane.b32.xlu0 %v558_v5, %s1803_s23 }
 0x311   :  { %v497_v7 = vpop.f32.mrf.mxu1 }
 0x312   :  { %v501_v8 = vadd.f32 %v497_v7, %v482_v6  ;;  %v611_v6 = vld [vmem:[#allocation2 + $0x4] sm:$0x3] }
 0x314   :  { %1636 = vtanh.f32 %v501_v8  ;;  %v521_v25 = vsub.f32 0.0, %v501_v8 }
 0x315   :  { %1638 = vpow2.f32 %v503_v12  ;;  %v632_v12 = vld [vmem:[#allocation3 + $0xa] sm:$0x3] }
 0x316   :  { %v522_v30 = vmul.f32 1.442695, %v521_v25 }
 0x319   :  { %v499_v9 = vpop.f32.mrf.mxu1 }
 0x31a   :  { %v1637_v10 = vpop.eup %1636 }
 0x31b   :  { %565 = vrot.lane.b32.xlu1 %v1637_v10, %s1799_s29  ;;  %v1639_v13 = vpop.eup %1638 }
 0x31c   :  { %v505_v14 = vadd.f32 1.0, %v1639_v13 }
 0x31e   :  { %1640 = vrcp.f32 %v505_v14  ;;  %v517_v22 = vand.u32 2147483648, %v505_v14  ;;  %vm511_vm12 = vweird.f32 %v505_v14  ;;  %v515_v23 = vand.u32 2147483647, %v505_v14 }
 0x31f   :  { %1642 = vpow2.f32 %v522_v30 }
 0x320   :  { %v518_v26 = vor.u32 1.1754944e-38, %v517_v22  ;;  %vm516_vm14 = vcmp.eq.f32.partialorder %v515_v23, 8.507059e+37 }
 0x324   :  { %v1641_v17 = vpop.eup %1640 }
 0x325   :  { %v507_v18 = vmul.f32 %v1641_v17, %v505_v14  ;;  %vm512_vm11 = vweird.f32 %v1641_v17  ;;  %v1643_v31 = vpop.eup %1642 }
 0x326   :  { %vm513_vm13 = vmor %vm511_vm12, %vm512_vm11  ;;  %v524_v32 = vadd.f32 1.0, %v1643_v31 }
 0x327   :  { %v508_v19 = vsub.f32 1.0, %v507_v18 }
 0x328   :  { %1644 = vrcp.f32 %v524_v32  ;;  %v536_v38 = vand.u32 2147483648, %v524_v32  ;;  %vm530_vm2 = vweird.f32 %v524_v32  ;;  %v534_v39 = vand.u32 2147483647, %v524_v32 }
 0x329   :  { %v509_v20 = vmul.f32 %v1641_v17, %v508_v19 }
 0x32a   :  { %v537_v41 = vor.u32 1.1754944e-38, %v536_v38  ;;  %vm535_vm4 = vcmp.eq.f32.partialorder %v534_v39, 8.507059e+37 }
 0x32b   :  { %v510_v21 = vadd.f32 %v1641_v17, %v509_v20 }
 0x32d   :  { %v514_v24 = vsel %vm513_vm13, %v1641_v17, %v510_v21 }
 0x32e   :  { %v519_v27 = vsel %vm516_vm14, %v518_v26, %v514_v24  ;;  %v1645_v33 = vpop.eup %1644 }
 0x32f   :  { %v526_v34 = vmul.f32 %v1645_v33, %v524_v32  ;;  %vm531_vm15 = vweird.f32 %v1645_v33  ;;  %v547_v46 = vmul.f32 %v545_v45, %v519_v27 }
 0x330   :  { %vm532_vm3 = vmor %vm530_vm2, %vm531_vm15 }
 0x331   :  { %v527_v35 = vsub.f32 1.0, %v526_v34 }
 0x333   :  { %v528_v36 = vmul.f32 %v1645_v33, %v527_v35 }
 0x335   :  { %v529_v37 = vadd.f32 %v1645_v33, %v528_v36 }
 0x337   :  { %v533_v40 = vsel %vm532_vm3, %v1645_v33, %v529_v37 }
 0x338   :  { %v538_v42 = vsel %vm535_vm4, %v537_v41, %v533_v40 }
 0x35e   :  { %v550_v28 = vpop.permute.xlu0 %549 }
 0x35f   :  { %v552_v29 = vmul.f32 %v550_v28, %v519_v27 }
 0x361   :  { %554 = vrot.lane.b32.xlu1 %v552_v29, %s1803_s23 }
 0x366   :  { %v561_v50 = vpop.permute.xlu0 %560 }
 0x367   :  { %v563_v51 = vmul.f32 %v561_v50, %v538_v42 }
 0x38d   :  { %v566_v43 = vpop.permute.xlu1 %565 }
 0x38e   :  { %v568_v44 = vmul.f32 %v566_v43, %v538_v42 }
 0x390   :  { %570 = vrot.lane.b32.xlu2 %v568_v44, %s1803_s23 }
 0x3d3   :  { %v555_v47 = vpop.permute.xlu1 %554 }
 0x3d4   :  { %v557_v48 = vadd.f32 %v555_v47, %v547_v46 }
 0x3d6   :  { %1646 = vtanh.f32 %v557_v48 }
 0x3dc   :  { %v1647_v49 = vpop.eup %1646 }
 0x3dd   :  { %576 = vrot.lane.b32.xlu0 %v1647_v49, %s1799_s29 }
 0x3ea   :  { %v571_v52 = vpop.permute.xlu2 %570 }
 0x3eb   :  { %v573_v53 = vadd.f32 %v571_v52, %v563_v51 }
 0x3ed   :  { %1648 = vtanh.f32 %v573_v53 }
 0x3f3   :  { %v1649_v54 = vpop.eup %1648 }
 0x3f4   :  { %582 = vrot.lane.b32.xlu1 %v1649_v54, %s1799_s29 }
 0x3fc   :  { %587 = vrot.lane.b32.xlu1 %v557_v48, %s1804_s4 }
 0x44f   :  { %v577_v55 = vpop.permute.xlu0 %576 }
 0x450   :  { %v579_v56 = vmul.f32 %v577_v55, %v519_v27 }
 0x452   :  { %597 = vrot.lane.b32.xlu2 %v579_v56, %s1803_s23 }
 0x45a   :  { %592 = vrot.lane.b32.xlu2 %v573_v53, %s1804_s4 }
 0x466   :  { %v583_v57 = vpop.permute.xlu1 %582 }
 0x467   :  { %v585_v58 = vmul.f32 %v583_v57, %v538_v42 }
 0x469   :  { %602 = vrot.lane.b32.xlu0 %v585_v58, %s1803_s23 }
 0x46e   :  { %v588_v59 = vpop.permute.xlu1 %587 }
 0x46f   :  { %590 = vst.msk [vmem:[#allocation6] sm:$0x3] %vm95_vm0, %v588_v59 }
 0x476   :  { %v692_v60 = vld [vmem:[#allocation6] sm:$0x3] }
 0x477   :  { %694 = vrot.lane.b32.xlu2 %v692_v60, %s1803_s23 }
 0x4ac   :  { %v598_v61 = vpop.permute.xlu2 %597 }
 0x4ad   :  { %600 = vst.msk [vmem:[#allocation4] sm:$0x3] %vm95_vm0, %v598_v61 }
 0x4ae   :  { %1578 = vst.msk [vmem:[%s2163_s5 + $0x2] sm:$0x3] %vm95_vm0, %v598_v61 }
 0x4b4   :  { %v593_v62 = vpop.permute.xlu2 %592  ;;  %v612_v63 = vld [vmem:[#allocation4] sm:$0x3] }
 0x4b5   :  { %595 = vst.msk [vmem:[#allocation7] sm:$0x3] %vm95_vm0, %v593_v62  ;;  %v613_v0 = vpack.c.bf16 %v612_v63, %v612_v63 }
 0x4b7   :  { %1580 = vmatmul.msk.bf16.vlgmr.msrb.gmra.mxu2 %vm301_vm1, %v613_v0 }
 0x4b8   :  { %1223 = vmatpush.bf16.msrb.mxu2 %v1854_v1 }
 0x4bc   :  { %1224 = vmatpush.bf16.msrb.mxu2 %v1860_v4  ;;  %v708_v11 = vld [vmem:[#allocation7] sm:$0x3] }
 0x4d1   :  { %v695_v51 = vpop.permute.xlu2 %694 }
 0x4db   :  { %v603_v2 = vpop.permute.xlu0 %602 }
 0x4dc   :  { %605 = vst.msk [vmem:[#allocation5] sm:$0x3] %vm95_vm0, %v603_v2 }
 0x4dd   :  { %1579 = vst.msk [vmem:[%s2164_s6 + $0xc] sm:$0x3] %vm95_vm0, %v603_v2 }
 0x4e3   :  { %v633_v3 = vld [vmem:[#allocation5] sm:$0x3] }
 0x4e4   :  { %v634_v5 = vpack.c.bf16 %v633_v3, %v633_v3 }
 0x4e6   :  { %1581 = vmatmul.msk.bf16.vlgmr.msrb.gmra.mxu3 %vm301_vm1, %v634_v5 }
 0x4e7   :  { %1244 = vmatpush.bf16.msrb.mxu3 %v1887_v15 }
 0x4eb   :  { %1245 = vmatpush.bf16.msrb.mxu3 %v1890_v16 }
 0x53a   :  { %v626_v7 = vpop.f32.mrf.mxu2 }
 0x53b   :  { %v630_v8 = vadd.f32 %v626_v7, %v611_v6 }
 0x53d   :  { %1650 = vtanh.f32 %v630_v8  ;;  %v652_v19 = vsub.f32 0.0, %v630_v8 }
 0x53f   :  { %v653_v20 = vmul.f32 1.442695, %v652_v19 }
 0x542   :  { %v628_v9 = vpop.f32.mrf.mxu2 }
 0x543   :  { %v1651_v10 = vpop.eup %1650 }
 0x544   :  { %699 = vrot.lane.b32.xlu0 %v1651_v10, %s1799_s29 }
 0x54c   :  { %710 = vrot.lane.b32.xlu0 %v708_v11, %s1803_s23 }
 0x569   :  { %v647_v13 = vpop.f32.mrf.mxu3 }
 0x56a   :  { %v651_v14 = vadd.f32 %v647_v13, %v632_v12  ;;  %v761_v12 = vld [vmem:[#allocation2 + $0x6] sm:$0x3] }
 0x56c   :  { %1652 = vtanh.f32 %v651_v14  ;;  %v671_v31 = vsub.f32 0.0, %v651_v14 }
 0x56d   :  { %1654 = vpow2.f32 %v653_v20 }
 0x56e   :  { %v672_v36 = vmul.f32 1.442695, %v671_v31 }
 0x571   :  { %v649_v17 = vpop.f32.mrf.mxu3 }
 0x572   :  { %v1653_v18 = vpop.eup %1652 }
 0x573   :  { %715 = vrot.lane.b32.xlu1 %v1653_v18, %s1799_s29  ;;  %v1655_v21 = vpop.eup %1654  ;;  %v782_v18 = vld [vmem:[#allocation3 + $0x8] sm:$0x3] }
 0x574   :  { %v655_v22 = vadd.f32 1.0, %v1655_v21 }
 0x576   :  { %1656 = vrcp.f32 %v655_v22  ;;  %v667_v28 = vand.u32 2147483648, %v655_v22  ;;  %vm661_vm6 = vweird.f32 %v655_v22  ;;  %v665_v29 = vand.u32 2147483647, %v655_v22 }
 0x577   :  { %1658 = vpow2.f32 %v672_v36 }
 0x578   :  { %v668_v32 = vor.u32 1.1754944e-38, %v667_v28  ;;  %vm666_vm8 = vcmp.eq.f32.partialorder %v665_v29, 8.507059e+37 }
 0x57c   :  { %v1657_v23 = vpop.eup %1656 }
 0x57d   :  { %v657_v24 = vmul.f32 %v1657_v23, %v655_v22  ;;  %vm662_vm5 = vweird.f32 %v1657_v23  ;;  %v1659_v37 = vpop.eup %1658 }
 0x57e   :  { %vm663_vm7 = vmor %vm661_vm6, %vm662_vm5  ;;  %v674_v38 = vadd.f32 1.0, %v1659_v37 }
 0x57f   :  { %v658_v25 = vsub.f32 1.0, %v657_v24 }
 0x580   :  { %1660 = vrcp.f32 %v674_v38  ;;  %v686_v44 = vand.u32 2147483648, %v674_v38  ;;  %vm680_vm10 = vweird.f32 %v674_v38  ;;  %v684_v45 = vand.u32 2147483647, %v674_v38 }
 0x581   :  { %v659_v26 = vmul.f32 %v1657_v23, %v658_v25 }
 0x582   :  { %v687_v47 = vor.u32 1.1754944e-38, %v686_v44  ;;  %vm685_vm12 = vcmp.eq.f32.partialorder %v684_v45, 8.507059e+37 }
 0x583   :  { %v660_v27 = vadd.f32 %v1657_v23, %v659_v26 }
 0x585   :  { %v664_v30 = vsel %vm663_vm7, %v1657_v23, %v660_v27 }
 0x586   :  { %v669_v34 = vsel %vm666_vm8, %v668_v32, %v664_v30  ;;  %v1661_v39 = vpop.eup %1660 }
 0x587   :  { %v676_v40 = vmul.f32 %v1661_v39, %v674_v38  ;;  %vm681_vm9 = vweird.f32 %v1661_v39  ;;  %v697_v52 = vmul.f32 %v695_v51, %v669_v34 }
 0x588   :  { %vm682_vm11 = vmor %vm680_vm10, %vm681_vm9 }
 0x589   :  { %v677_v41 = vsub.f32 1.0, %v676_v40 }
 0x58b   :  { %v678_v42 = vmul.f32 %v1661_v39, %v677_v41 }
 0x58d   :  { %v679_v43 = vadd.f32 %v1661_v39, %v678_v42 }
 0x58f   :  { %v683_v46 = vsel %vm682_vm11, %v1661_v39, %v679_v43 }
 0x590   :  { %v688_v48 = vsel %vm685_vm12, %v687_v47, %v683_v46 }
 0x5b6   :  { %v700_v33 = vpop.permute.xlu0 %699 }
 0x5b7   :  { %v702_v35 = vmul.f32 %v700_v33, %v669_v34 }
 0x5b9   :  { %704 = vrot.lane.b32.xlu1 %v702_v35, %s1803_s23 }
 0x5be   :  { %v711_v56 = vpop.permute.xlu0 %710 }
 0x5bf   :  { %v713_v57 = vmul.f32 %v711_v56, %v688_v48 }
 0x5e5   :  { %v716_v49 = vpop.permute.xlu1 %715 }
 0x5e6   :  { %v718_v50 = vmul.f32 %v716_v49, %v688_v48 }
 0x5e8   :  { %720 = vrot.lane.b32.xlu2 %v718_v50, %s1803_s23 }
 0x62b   :  { %v705_v53 = vpop.permute.xlu1 %704 }
 0x62c   :  { %v707_v54 = vadd.f32 %v705_v53, %v697_v52 }
 0x62e   :  { %1662 = vtanh.f32 %v707_v54 }
 0x634   :  { %v1663_v55 = vpop.eup %1662 }
 0x635   :  { %726 = vrot.lane.b32.xlu0 %v1663_v55, %s1799_s29 }
 0x642   :  { %v721_v58 = vpop.permute.xlu2 %720 }
 0x643   :  { %v723_v59 = vadd.f32 %v721_v58, %v713_v57 }
 0x645   :  { %1664 = vtanh.f32 %v723_v59 }
 0x64b   :  { %v1665_v60 = vpop.eup %1664 }
 0x64c   :  { %732 = vrot.lane.b32.xlu1 %v1665_v60, %s1799_s29 }
 0x654   :  { %737 = vrot.lane.b32.xlu1 %v707_v54, %s1804_s4 }
 0x6a7   :  { %v727_v61 = vpop.permute.xlu0 %726 }
 0x6a8   :  { %v729_v62 = vmul.f32 %v727_v61, %v669_v34 }
 0x6aa   :  { %747 = vrot.lane.b32.xlu2 %v729_v62, %s1803_s23 }
 0x6b2   :  { %742 = vrot.lane.b32.xlu2 %v723_v59, %s1804_s4 }
 0x6be   :  { %v733_v63 = vpop.permute.xlu1 %732 }
 0x6bf   :  { %v735_v0 = vmul.f32 %v733_v63, %v688_v48 }
 0x6c1   :  { %752 = vrot.lane.b32.xlu0 %v735_v0, %s1803_s23 }
 0x6c6   :  { %v738_v2 = vpop.permute.xlu1 %737 }
 0x6c7   :  { %740 = vst.msk [vmem:[#allocation6] sm:$0x3] %vm95_vm0, %v738_v2 }
 0x6ce   :  { %v842_v3 = vld [vmem:[#allocation6] sm:$0x3] }
 0x6cf   :  { %844 = vrot.lane.b32.xlu2 %v842_v3, %s1803_s23 }
 0x704   :  { %v748_v5 = vpop.permute.xlu2 %747 }
 0x705   :  { %750 = vst.msk [vmem:[#allocation4] sm:$0x3] %vm95_vm0, %v748_v5 }
 0x706   :  { %1582 = vst.msk [vmem:[%s2163_s5 + $0x4] sm:$0x3] %vm95_vm0, %v748_v5 }
 0x70c   :  { %v743_v6 = vpop.permute.xlu2 %742  ;;  %v762_v7 = vld [vmem:[#allocation4] sm:$0x3] }
 0x70d   :  { %745 = vst.msk [vmem:[#allocation7] sm:$0x3] %vm95_vm0, %v743_v6  ;;  %v763_v8 = vpack.c.bf16 %v762_v7, %v762_v7 }
 0x70f   :  { %1584 = vmatmul.msk.bf16.vlgmr.msra.gmra.mxu0 %vm301_vm1, %v763_v8 }
 0x710   :  { %1373 = vmatpush.bf16.msra.mxu0 %v1854_v1 }
 0x714   :  { %1374 = vmatpush.bf16.msra.mxu0 %v1860_v4  ;;  %v858_v17 = vld [vmem:[#allocation7] sm:$0x3] }
 0x729   :  { %v845_v53 = vpop.permute.xlu2 %844 }
 0x733   :  { %v753_v9 = vpop.permute.xlu0 %752 }
 0x734   :  { %755 = vst.msk [vmem:[#allocation5] sm:$0x3] %vm95_vm0, %v753_v9 }
 0x735   :  { %1583 = vst.msk [vmem:[%s2164_s6 + $0xa] sm:$0x3] %vm95_vm0, %v753_v9 }
 0x73b   :  { %v783_v10 = vld [vmem:[#allocation5] sm:$0x3] }
 0x73c   :  { %v784_v11 = vpack.c.bf16 %v783_v10, %v783_v10 }
 0x73e   :  { %1585 = vmatmul.msk.bf16.vlgmr.msra.gmra.mxu1 %vm301_vm1, %v784_v11 }
 0x73f   :  { %1393 = vmatpush.bf16.msra.mxu1 %v1887_v15 }
 0x743   :  { %1394 = vmatpush.bf16.msra.mxu1 %v1890_v16 }
 0x78c   :  { %v776_v1 = vpop.f32.mrf.mxu0 }
 0x78d   :  { %v780_v13 = vadd.f32 %v776_v1, %v761_v12 }
 0x78f   :  { %1666 = vtanh.f32 %v780_v13  ;;  %v802_v15 = vsub.f32 0.0, %v780_v13  ;;  %v911_v13 = vld [vmem:[#allocation2 + $0x8] sm:$0x3] }
 0x791   :  { %v803_v16 = vmul.f32 1.442695, %v802_v15 }
 0x794   :  { %v778_v4 = vpop.f32.mrf.mxu0 }
 0x795   :  { %v1667_v14 = vpop.eup %1666 }
 0x796   :  { %849 = vrot.lane.b32.xlu0 %v1667_v14, %s1799_s29 }
 0x79e   :  { %860 = vrot.lane.b32.xlu0 %v858_v17, %s1803_s23 }
 0x7bb   :  { %v797_v19 = vpop.f32.mrf.mxu1 }
 0x7bc   :  { %v801_v20 = vadd.f32 %v797_v19, %v782_v18 }
 0x7be   :  { %1668 = vtanh.f32 %v801_v20  ;;  %v821_v33 = vsub.f32 0.0, %v801_v20  ;;  %v932_v20 = vld [vmem:[#allocation3 + $0x6] sm:$0x3] }
 0x7bf   :  { %1670 = vpow2.f32 %v803_v16 }
 0x7c0   :  { %v822_v38 = vmul.f32 1.442695, %v821_v33 }
 0x7c3   :  { %v799_v21 = vpop.f32.mrf.mxu1 }
 0x7c4   :  { %v1669_v22 = vpop.eup %1668 }
 0x7c5   :  { %865 = vrot.lane.b32.xlu1 %v1669_v22, %s1799_s29  ;;  %v1671_v23 = vpop.eup %1670 }
 0x7c6   :  { %v805_v24 = vadd.f32 1.0, %v1671_v23 }
 0x7c8   :  { %1672 = vrcp.f32 %v805_v24  ;;  %v817_v30 = vand.u32 2147483648, %v805_v24  ;;  %vm811_vm14 = vweird.f32 %v805_v24  ;;  %v815_v31 = vand.u32 2147483647, %v805_v24 }
 0x7c9   :  { %1674 = vpow2.f32 %v822_v38 }
 0x7ca   :  { %v818_v34 = vor.u32 1.1754944e-38, %v817_v30  ;;  %vm816_vm2 = vcmp.eq.f32.partialorder %v815_v31, 8.507059e+37 }
 0x7ce   :  { %v1673_v25 = vpop.eup %1672 }
 0x7cf   :  { %v807_v26 = vmul.f32 %v1673_v25, %v805_v24  ;;  %vm812_vm13 = vweird.f32 %v1673_v25  ;;  %v1675_v39 = vpop.eup %1674 }
 0x7d0   :  { %vm813_vm15 = vmor %vm811_vm14, %vm812_vm13  ;;  %v824_v40 = vadd.f32 1.0, %v1675_v39 }
 0x7d1   :  { %v808_v27 = vsub.f32 1.0, %v807_v26 }
 0x7d2   :  { %1676 = vrcp.f32 %v824_v40  ;;  %v836_v46 = vand.u32 2147483648, %v824_v40  ;;  %vm830_vm4 = vweird.f32 %v824_v40  ;;  %v834_v47 = vand.u32 2147483647, %v824_v40 }
 0x7d3   :  { %v809_v28 = vmul.f32 %v1673_v25, %v808_v27 }
 0x7d4   :  { %v837_v49 = vor.u32 1.1754944e-38, %v836_v46  ;;  %vm835_vm6 = vcmp.eq.f32.partialorder %v834_v47, 8.507059e+37 }
 0x7d5   :  { %v810_v29 = vadd.f32 %v1673_v25, %v809_v28 }
 0x7d7   :  { %v814_v32 = vsel %vm813_vm15, %v1673_v25, %v810_v29 }
 0x7d8   :  { %v819_v35 = vsel %vm816_vm2, %v818_v34, %v814_v32  ;;  %v1677_v41 = vpop.eup %1676 }
 0x7d9   :  { %v826_v42 = vmul.f32 %v1677_v41, %v824_v40  ;;  %vm831_vm3 = vweird.f32 %v1677_v41  ;;  %v847_v54 = vmul.f32 %v845_v53, %v819_v35 }
 0x7da   :  { %vm832_vm5 = vmor %vm830_vm4, %vm831_vm3 }
 0x7db   :  { %v827_v43 = vsub.f32 1.0, %v826_v42 }
 0x7dd   :  { %v828_v44 = vmul.f32 %v1677_v41, %v827_v43 }
 0x7df   :  { %v829_v45 = vadd.f32 %v1677_v41, %v828_v44 }
 0x7e1   :  { %v833_v48 = vsel %vm832_vm5, %v1677_v41, %v829_v45 }
 0x7e2   :  { %v838_v50 = vsel %vm835_vm6, %v837_v49, %v833_v48 }
 0x808   :  { %v850_v36 = vpop.permute.xlu0 %849 }
 0x809   :  { %v852_v37 = vmul.f32 %v850_v36, %v819_v35 }
 0x80b   :  { %854 = vrot.lane.b32.xlu1 %v852_v37, %s1803_s23 }
 0x810   :  { %v861_v58 = vpop.permute.xlu0 %860 }
 0x811   :  { %v863_v59 = vmul.f32 %v861_v58, %v838_v50 }
 0x837   :  { %v866_v51 = vpop.permute.xlu1 %865 }
 0x838   :  { %v868_v52 = vmul.f32 %v866_v51, %v838_v50 }
 0x83a   :  { %870 = vrot.lane.b32.xlu2 %v868_v52, %s1803_s23 }
 0x87d   :  { %v855_v55 = vpop.permute.xlu1 %854 }
 0x87e   :  { %v857_v56 = vadd.f32 %v855_v55, %v847_v54 }
 0x880   :  { %1678 = vtanh.f32 %v857_v56 }
 0x886   :  { %v1679_v57 = vpop.eup %1678 }
 0x887   :  { %876 = vrot.lane.b32.xlu0 %v1679_v57, %s1799_s29 }
 0x894   :  { %v871_v60 = vpop.permute.xlu2 %870 }
 0x895   :  { %v873_v61 = vadd.f32 %v871_v60, %v863_v59 }
 0x897   :  { %1680 = vtanh.f32 %v873_v61 }
 0x89d   :  { %v1681_v62 = vpop.eup %1680 }
 0x89e   :  { %882 = vrot.lane.b32.xlu1 %v1681_v62, %s1799_s29 }
 0x8a6   :  { %887 = vrot.lane.b32.xlu1 %v857_v56, %s1804_s4 }
 0x8f9   :  { %v877_v63 = vpop.permute.xlu0 %876 }
 0x8fa   :  { %v879_v0 = vmul.f32 %v877_v63, %v819_v35 }
 0x8fc   :  { %897 = vrot.lane.b32.xlu2 %v879_v0, %s1803_s23 }
 0x904   :  { %892 = vrot.lane.b32.xlu2 %v873_v61, %s1804_s4 }
 0x910   :  { %v883_v2 = vpop.permute.xlu1 %882 }
 0x911   :  { %v885_v3 = vmul.f32 %v883_v2, %v838_v50 }
 0x913   :  { %902 = vrot.lane.b32.xlu0 %v885_v3, %s1803_s23 }
 0x918   :  { %v888_v5 = vpop.permute.xlu1 %887 }
 0x919   :  { %890 = vst.msk [vmem:[#allocation6] sm:$0x3] %vm95_vm0, %v888_v5 }
 0x920   :  { %v992_v6 = vld [vmem:[#allocation6] sm:$0x3] }
 0x921   :  { %994 = vrot.lane.b32.xlu2 %v992_v6, %s1803_s23 }
 0x956   :  { %v898_v7 = vpop.permute.xlu2 %897 }
 0x957   :  { %900 = vst.msk [vmem:[#allocation4] sm:$0x3] %vm95_vm0, %v898_v7 }
 0x958   :  { %1586 = vst.msk [vmem:[%s2163_s5 + $0x6] sm:$0x3] %vm95_vm0, %v898_v7 }
 0x95e   :  { %v893_v8 = vpop.permute.xlu2 %892  ;;  %v912_v9 = vld [vmem:[#allocation4] sm:$0x3] }
 0x95f   :  { %895 = vst.msk [vmem:[#allocation7] sm:$0x3] %vm95_vm0, %v893_v8  ;;  %v913_v10 = vpack.c.bf16 %v912_v9, %v912_v9 }
 0x961   :  { %1588 = vmatmul.msk.bf16.vlgmr.msra.gmra.mxu2 %vm301_vm1, %v913_v10 }
 0x966   :  { %v1008_v19 = vld [vmem:[#allocation7] sm:$0x3] }
 0x97b   :  { %v995_v55 = vpop.permute.xlu2 %994 }
 0x985   :  { %v903_v11 = vpop.permute.xlu0 %902 }
 0x986   :  { %905 = vst.msk [vmem:[#allocation5] sm:$0x3] %vm95_vm0, %v903_v11 }
 0x987   :  { %1587 = vst.msk [vmem:[%s2164_s6 + $0x8] sm:$0x3] %vm95_vm0, %v903_v11 }
 0x98d   :  { %v933_v12 = vld [vmem:[#allocation5] sm:$0x3] }
 0x98e   :  { %v934_v1 = vpack.c.bf16 %v933_v12, %v933_v12 }
 0x990   :  { %1589 = vmatmul.msk.bf16.vlgmr.msra.gmra.mxu3 %vm301_vm1, %v934_v1 }
 0x9e4   :  { %v926_v4 = vpop.f32.mrf.mxu2 }
 0x9e5   :  { %v930_v14 = vadd.f32 %v926_v4, %v911_v13 }
 0x9e7   :  { %1682 = vtanh.f32 %v930_v14  ;;  %v952_v23 = vsub.f32 0.0, %v930_v14  ;;  %v1061_v14 = vld [vmem:[#allocation2 + $0xa] sm:$0x3] }
 0x9e9   :  { %v953_v24 = vmul.f32 1.442695, %v952_v23 }
 0x9ec   :  { %v928_v17 = vpop.f32.mrf.mxu2 }
 0x9ed   :  { %v1683_v18 = vpop.eup %1682 }
 0x9ee   :  { %999 = vrot.lane.b32.xlu0 %v1683_v18, %s1799_s29 }
 0x9f6   :  { %1010 = vrot.lane.b32.xlu0 %v1008_v19, %s1803_s23 }
 0xa13   :  { %v947_v21 = vpop.f32.mrf.mxu3 }
 0xa14   :  { %v951_v22 = vadd.f32 %v947_v21, %v932_v20 }
 0xa16   :  { %1684 = vtanh.f32 %v951_v22  ;;  %v971_v35 = vsub.f32 0.0, %v951_v22  ;;  %v1082_v22 = vld [vmem:[#allocation3 + $0x4] sm:$0x3] }
 0xa17   :  { %1686 = vpow2.f32 %v953_v24 }
 0xa18   :  { %v972_v40 = vmul.f32 1.442695, %v971_v35 }
 0xa1b   :  { %v949_v15 = vpop.f32.mrf.mxu3 }
 0xa1c   :  { %v1685_v16 = vpop.eup %1684 }
 0xa1d   :  { %1015 = vrot.lane.b32.xlu1 %v1685_v16, %s1799_s29  ;;  %v1687_v25 = vpop.eup %1686 }
 0xa1e   :  { %v955_v26 = vadd.f32 1.0, %v1687_v25 }
 0xa20   :  { %1688 = vrcp.f32 %v955_v26  ;;  %v967_v32 = vand.u32 2147483648, %v955_v26  ;;  %vm961_vm8 = vweird.f32 %v955_v26  ;;  %v965_v33 = vand.u32 2147483647, %v955_v26 }
 0xa21   :  { %1690 = vpow2.f32 %v972_v40 }
 0xa22   :  { %v968_v36 = vor.u32 1.1754944e-38, %v967_v32  ;;  %vm966_vm10 = vcmp.eq.f32.partialorder %v965_v33, 8.507059e+37 }
 0xa26   :  { %v1689_v27 = vpop.eup %1688 }
 0xa27   :  { %v957_v28 = vmul.f32 %v1689_v27, %v955_v26  ;;  %vm962_vm7 = vweird.f32 %v1689_v27  ;;  %v1691_v41 = vpop.eup %1690 }
 0xa28   :  { %vm963_vm9 = vmor %vm961_vm8, %vm962_vm7  ;;  %v974_v42 = vadd.f32 1.0, %v1691_v41 }
 0xa29   :  { %v958_v29 = vsub.f32 1.0, %v957_v28 }
 0xa2a   :  { %1692 = vrcp.f32 %v974_v42  ;;  %v986_v48 = vand.u32 2147483648, %v974_v42  ;;  %vm980_vm12 = vweird.f32 %v974_v42  ;;  %v984_v49 = vand.u32 2147483647, %v974_v42 }
 0xa2b   :  { %v959_v30 = vmul.f32 %v1689_v27, %v958_v29 }
 0xa2c   :  { %v987_v51 = vor.u32 1.1754944e-38, %v986_v48  ;;  %vm985_vm14 = vcmp.eq.f32.partialorder %v984_v49, 8.507059e+37 }
 0xa2d   :  { %v960_v31 = vadd.f32 %v1689_v27, %v959_v30 }
 0xa2f   :  { %v964_v34 = vsel %vm963_vm9, %v1689_v27, %v960_v31 }
 0xa30   :  { %v969_v38 = vsel %vm966_vm10, %v968_v36, %v964_v34  ;;  %v1693_v43 = vpop.eup %1692 }
 0xa31   :  { %v976_v44 = vmul.f32 %v1693_v43, %v974_v42  ;;  %vm981_vm11 = vweird.f32 %v1693_v43  ;;  %v997_v56 = vmul.f32 %v995_v55, %v969_v38 }
 0xa32   :  { %vm982_vm13 = vmor %vm980_vm12, %vm981_vm11 }
 0xa33   :  { %v977_v45 = vsub.f32 1.0, %v976_v44 }
 0xa35   :  { %v978_v46 = vmul.f32 %v1693_v43, %v977_v45 }
 0xa37   :  { %v979_v47 = vadd.f32 %v1693_v43, %v978_v46 }
 0xa39   :  { %v983_v50 = vsel %vm982_vm13, %v1693_v43, %v979_v47 }
 0xa3a   :  { %v988_v52 = vsel %vm985_vm14, %v987_v51, %v983_v50 }
 0xa60   :  { %v1000_v37 = vpop.permute.xlu0 %999 }
 0xa61   :  { %v1002_v39 = vmul.f32 %v1000_v37, %v969_v38 }
 0xa63   :  { %1004 = vrot.lane.b32.xlu1 %v1002_v39, %s1803_s23 }
 0xa68   :  { %v1011_v60 = vpop.permute.xlu0 %1010 }
 0xa69   :  { %v1013_v61 = vmul.f32 %v1011_v60, %v988_v52 }
 0xa8f   :  { %v1016_v53 = vpop.permute.xlu1 %1015 }
 0xa90   :  { %v1018_v54 = vmul.f32 %v1016_v53, %v988_v52 }
 0xa92   :  { %1020 = vrot.lane.b32.xlu2 %v1018_v54, %s1803_s23 }
 0xad5   :  { %v1005_v57 = vpop.permute.xlu1 %1004 }
 0xad6   :  { %v1007_v58 = vadd.f32 %v1005_v57, %v997_v56 }
 0xad8   :  { %1694 = vtanh.f32 %v1007_v58 }
 0xade   :  { %v1695_v59 = vpop.eup %1694 }
 0xadf   :  { %1026 = vrot.lane.b32.xlu0 %v1695_v59, %s1799_s29 }
 0xaec   :  { %v1021_v62 = vpop.permute.xlu2 %1020 }
 0xaed   :  { %v1023_v63 = vadd.f32 %v1021_v62, %v1013_v61 }
 0xaef   :  { %1696 = vtanh.f32 %v1023_v63 }
 0xaf5   :  { %v1697_v0 = vpop.eup %1696 }
 0xaf6   :  { %1032 = vrot.lane.b32.xlu1 %v1697_v0, %s1799_s29 }
 0xafe   :  { %1037 = vrot.lane.b32.xlu1 %v1007_v58, %s1804_s4 }
 0xb51   :  { %v1027_v2 = vpop.permute.xlu0 %1026 }
 0xb52   :  { %v1029_v3 = vmul.f32 %v1027_v2, %v969_v38 }
 0xb54   :  { %1047 = vrot.lane.b32.xlu2 %v1029_v3, %s1803_s23 }
 0xb5c   :  { %1042 = vrot.lane.b32.xlu2 %v1023_v63, %s1804_s4 }
 0xb68   :  { %v1033_v5 = vpop.permute.xlu1 %1032 }
 0xb69   :  { %v1035_v6 = vmul.f32 %v1033_v5, %v988_v52 }
 0xb6b   :  { %1052 = vrot.lane.b32.xlu0 %v1035_v6, %s1803_s23 }
 0xb70   :  { %v1038_v7 = vpop.permute.xlu1 %1037 }
 0xb71   :  { %1040 = vst.msk [vmem:[#allocation6] sm:$0x3] %vm95_vm0, %v1038_v7 }
 0xb78   :  { %v1142_v8 = vld [vmem:[#allocation6] sm:$0x3] }
 0xb79   :  { %1144 = vrot.lane.b32.xlu2 %v1142_v8, %s1803_s23 }
 0xbae   :  { %v1048_v9 = vpop.permute.xlu2 %1047 }
 0xbaf   :  { %1050 = vst.msk [vmem:[#allocation4] sm:$0x3] %vm95_vm0, %v1048_v9 }
 0xbb0   :  { %1590 = vst.msk [vmem:[%s2163_s5 + $0x8] sm:$0x3] %vm95_vm0, %v1048_v9 }
 0xbb6   :  { %v1043_v10 = vpop.permute.xlu2 %1042  ;;  %v1062_v11 = vld [vmem:[#allocation4] sm:$0x3] }
 0xbb7   :  { %1045 = vst.msk [vmem:[#allocation7] sm:$0x3] %vm95_vm0, %v1043_v10  ;;  %v1063_v12 = vpack.c.bf16 %v1062_v11, %v1062_v11 }
 0xbb9   :  { %1592 = vmatmul.msk.bf16.vlgmr.msrb.gmra.mxu0 %vm301_vm1, %v1063_v12 }
 0xbbe   :  { %v1158_v21 = vld [vmem:[#allocation7] sm:$0x3] }
 0xbd3   :  { %v1145_v57 = vpop.permute.xlu2 %1144 }
 0xbdd   :  { %v1053_v1 = vpop.permute.xlu0 %1052 }
 0xbde   :  { %1055 = vst.msk [vmem:[#allocation5] sm:$0x3] %vm95_vm0, %v1053_v1 }
 0xbdf   :  { %1591 = vst.msk [vmem:[%s2164_s6 + $0x6] sm:$0x3] %vm95_vm0, %v1053_v1 }
 0xbe5   :  { %v1083_v13 = vld [vmem:[#allocation5] sm:$0x3] }
 0xbe6   :  { %v1084_v4 = vpack.c.bf16 %v1083_v13, %v1083_v13 }
 0xbe8   :  { %1593 = vmatmul.msk.bf16.vlgmr.msrb.gmra.mxu1 %vm301_vm1, %v1084_v4 }
 0xc36   :  { %v1076_v17 = vpop.f32.mrf.mxu0 }
 0xc37   :  { %v1080_v18 = vadd.f32 %v1076_v17, %v1061_v14 }
 0xc39   :  { %1698 = vtanh.f32 %v1080_v18  ;;  %v1102_v25 = vsub.f32 0.0, %v1080_v18  ;;  %v1211_v18 = vld [vmem:[#allocation2 + $0xc] sm:$0x3] }
 0xc3b   :  { %v1103_v26 = vmul.f32 1.442695, %v1102_v25 }
 0xc3e   :  { %v1078_v19 = vpop.f32.mrf.mxu0 }
 0xc3f   :  { %v1699_v20 = vpop.eup %1698 }
 0xc40   :  { %1149 = vrot.lane.b32.xlu0 %v1699_v20, %s1799_s29 }
 0xc48   :  { %1160 = vrot.lane.b32.xlu0 %v1158_v21, %s1803_s23 }
 0xc65   :  { %v1097_v15 = vpop.f32.mrf.mxu1 }
 0xc66   :  { %v1101_v16 = vadd.f32 %v1097_v15, %v1082_v22 }
 0xc68   :  { %1700 = vtanh.f32 %v1101_v16  ;;  %v1121_v37 = vsub.f32 0.0, %v1101_v16  ;;  %v1232_v16 = vld [vmem:[#allocation3 + $0x2] sm:$0x3] }
 0xc69   :  { %1702 = vpow2.f32 %v1103_v26 }
 0xc6a   :  { %v1122_v42 = vmul.f32 1.442695, %v1121_v37 }
 0xc6d   :  { %v1099_v23 = vpop.f32.mrf.mxu1 }
 0xc6e   :  { %v1701_v24 = vpop.eup %1700 }
 0xc6f   :  { %1165 = vrot.lane.b32.xlu1 %v1701_v24, %s1799_s29  ;;  %v1703_v27 = vpop.eup %1702 }
 0xc70   :  { %v1105_v28 = vadd.f32 1.0, %v1703_v27 }
 0xc72   :  { %1704 = vrcp.f32 %v1105_v28  ;;  %v1117_v34 = vand.u32 2147483648, %v1105_v28  ;;  %vm1111_vm2 = vweird.f32 %v1105_v28  ;;  %v1115_v35 = vand.u32 2147483647, %v1105_v28 }
 0xc73   :  { %1706 = vpow2.f32 %v1122_v42 }
 0xc74   :  { %v1118_v38 = vor.u32 1.1754944e-38, %v1117_v34  ;;  %vm1116_vm4 = vcmp.eq.f32.partialorder %v1115_v35, 8.507059e+37 }
 0xc78   :  { %v1705_v29 = vpop.eup %1704 }
 0xc79   :  { %v1107_v30 = vmul.f32 %v1705_v29, %v1105_v28  ;;  %vm1112_vm15 = vweird.f32 %v1705_v29  ;;  %v1707_v43 = vpop.eup %1706 }
 0xc7a   :  { %vm1113_vm3 = vmor %vm1111_vm2, %vm1112_vm15  ;;  %v1124_v44 = vadd.f32 1.0, %v1707_v43 }
 0xc7b   :  { %v1108_v31 = vsub.f32 1.0, %v1107_v30 }
 0xc7c   :  { %1708 = vrcp.f32 %v1124_v44  ;;  %v1136_v50 = vand.u32 2147483648, %v1124_v44  ;;  %vm1130_vm6 = vweird.f32 %v1124_v44  ;;  %v1134_v51 = vand.u32 2147483647, %v1124_v44 }
 0xc7d   :  { %v1109_v32 = vmul.f32 %v1705_v29, %v1108_v31 }
 0xc7e   :  { %v1137_v53 = vor.u32 1.1754944e-38, %v1136_v50  ;;  %vm1135_vm8 = vcmp.eq.f32.partialorder %v1134_v51, 8.507059e+37 }
 0xc7f   :  { %v1110_v33 = vadd.f32 %v1705_v29, %v1109_v32 }
 0xc81   :  { %v1114_v36 = vsel %vm1113_vm3, %v1705_v29, %v1110_v33 }
 0xc82   :  { %v1119_v39 = vsel %vm1116_vm4, %v1118_v38, %v1114_v36  ;;  %v1709_v45 = vpop.eup %1708 }
 0xc83   :  { %v1126_v46 = vmul.f32 %v1709_v45, %v1124_v44  ;;  %vm1131_vm5 = vweird.f32 %v1709_v45  ;;  %v1147_v58 = vmul.f32 %v1145_v57, %v1119_v39 }
 0xc84   :  { %vm1132_vm7 = vmor %vm1130_vm6, %vm1131_vm5 }
 0xc85   :  { %v1127_v47 = vsub.f32 1.0, %v1126_v46 }
 0xc87   :  { %v1128_v48 = vmul.f32 %v1709_v45, %v1127_v47 }
 0xc89   :  { %v1129_v49 = vadd.f32 %v1709_v45, %v1128_v48 }
 0xc8b   :  { %v1133_v52 = vsel %vm1132_vm7, %v1709_v45, %v1129_v49 }
 0xc8c   :  { %v1138_v54 = vsel %vm1135_vm8, %v1137_v53, %v1133_v52 }
 0xcb2   :  { %v1150_v40 = vpop.permute.xlu0 %1149 }
 0xcb3   :  { %v1152_v41 = vmul.f32 %v1150_v40, %v1119_v39 }
 0xcb5   :  { %1154 = vrot.lane.b32.xlu1 %v1152_v41, %s1803_s23 }
 0xcba   :  { %v1161_v62 = vpop.permute.xlu0 %1160 }
 0xcbb   :  { %v1163_v63 = vmul.f32 %v1161_v62, %v1138_v54 }
 0xce1   :  { %v1166_v55 = vpop.permute.xlu1 %1165 }
 0xce2   :  { %v1168_v56 = vmul.f32 %v1166_v55, %v1138_v54 }
 0xce4   :  { %1170 = vrot.lane.b32.xlu2 %v1168_v56, %s1803_s23 }
 0xd27   :  { %v1155_v59 = vpop.permute.xlu1 %1154 }
 0xd28   :  { %v1157_v60 = vadd.f32 %v1155_v59, %v1147_v58 }
 0xd2a   :  { %1710 = vtanh.f32 %v1157_v60 }
 0xd30   :  { %v1711_v61 = vpop.eup %1710 }
 0xd31   :  { %1176 = vrot.lane.b32.xlu0 %v1711_v61, %s1799_s29 }
 0xd3e   :  { %v1171_v0 = vpop.permute.xlu2 %1170 }
 0xd3f   :  { %v1173_v2 = vadd.f32 %v1171_v0, %v1163_v63 }
 0xd41   :  { %1712 = vtanh.f32 %v1173_v2 }
 0xd47   :  { %v1713_v3 = vpop.eup %1712 }
 0xd48   :  { %1182 = vrot.lane.b32.xlu1 %v1713_v3, %s1799_s29 }
 0xd50   :  { %1187 = vrot.lane.b32.xlu1 %v1157_v60, %s1804_s4 }
 0xda3   :  { %v1177_v5 = vpop.permute.xlu0 %1176 }
 0xda4   :  { %v1179_v6 = vmul.f32 %v1177_v5, %v1119_v39 }
 0xda6   :  { %1197 = vrot.lane.b32.xlu2 %v1179_v6, %s1803_s23 }
 0xdae   :  { %1192 = vrot.lane.b32.xlu2 %v1173_v2, %s1804_s4 }
 0xdba   :  { %v1183_v7 = vpop.permute.xlu1 %1182 }
 0xdbb   :  { %v1185_v8 = vmul.f32 %v1183_v7, %v1138_v54 }
 0xdbd   :  { %1202 = vrot.lane.b32.xlu0 %v1185_v8, %s1803_s23 }
 0xdc2   :  { %v1188_v9 = vpop.permute.xlu1 %1187 }
 0xdc3   :  { %1190 = vst.msk [vmem:[#allocation6] sm:$0x3] %vm95_vm0, %v1188_v9 }
 0xdca   :  { %v1292_v10 = vld [vmem:[#allocation6] sm:$0x3] }
 0xdcb   :  { %1294 = vrot.lane.b32.xlu2 %v1292_v10, %s1803_s23 }
 0xe00   :  { %v1198_v11 = vpop.permute.xlu2 %1197 }
 0xe01   :  { %1200 = vst.msk [vmem:[#allocation4] sm:$0x3] %vm95_vm0, %v1198_v11 }
 0xe02   :  { %1594 = vst.msk [vmem:[%s2163_s5 + $0xa] sm:$0x3] %vm95_vm0, %v1198_v11 }
 0xe08   :  { %v1193_v12 = vpop.permute.xlu2 %1192  ;;  %v1212_v1 = vld [vmem:[#allocation4] sm:$0x3] }
 0xe09   :  { %1195 = vst.msk [vmem:[#allocation7] sm:$0x3] %vm95_vm0, %v1193_v12  ;;  %v1213_v13 = vpack.c.bf16 %v1212_v1, %v1212_v1 }
 0xe0b   :  { %1596 = vmatmul.msk.bf16.vlgmr.msrb.gmra.mxu2 %vm301_vm1, %v1213_v13 }
 0xe10   :  { %v1308_v15 = vld [vmem:[#allocation7] sm:$0x3] }
 0xe25   :  { %v1295_v59 = vpop.permute.xlu2 %1294 }
 0xe2f   :  { %v1203_v4 = vpop.permute.xlu0 %1202 }
 0xe30   :  { %1205 = vst.msk [vmem:[#allocation5] sm:$0x3] %vm95_vm0, %v1203_v4 }
 0xe31   :  { %1595 = vst.msk [vmem:[%s2164_s6 + $0x4] sm:$0x3] %vm95_vm0, %v1203_v4 }
 0xe37   :  { %v1233_v14 = vld [vmem:[#allocation5] sm:$0x3] }
 0xe38   :  { %v1234_v17 = vpack.c.bf16 %v1233_v14, %v1233_v14 }
 0xe3a   :  { %1597 = vmatmul.msk.bf16.vlgmr.msrb.gmra.mxu3 %vm301_vm1, %v1234_v17 }
 0xe8e   :  { %v1226_v19 = vpop.f32.mrf.mxu2 }
 0xe8f   :  { %v1230_v20 = vadd.f32 %v1226_v19, %v1211_v18 }
 0xe91   :  { %1714 = vtanh.f32 %v1230_v20  ;;  %v1252_v27 = vsub.f32 0.0, %v1230_v20  ;;  %v1361_v20 = vld [vmem:[#allocation2 + $0xe] sm:$0x3] }
 0xe93   :  { %v1253_v28 = vmul.f32 1.442695, %v1252_v27 }
 0xe96   :  { %v1228_v21 = vpop.f32.mrf.mxu2 }
 0xe97   :  { %v1715_v22 = vpop.eup %1714 }
 0xe98   :  { %1299 = vrot.lane.b32.xlu0 %v1715_v22, %s1799_s29 }
 0xea0   :  { %1310 = vrot.lane.b32.xlu0 %v1308_v15, %s1803_s23 }
 0xebd   :  { %v1247_v23 = vpop.f32.mrf.mxu3 }
 0xebe   :  { %v1251_v24 = vadd.f32 %v1247_v23, %v1232_v16 }
 0xec0   :  { %1716 = vtanh.f32 %v1251_v24  ;;  %v1271_v39 = vsub.f32 0.0, %v1251_v24  ;;  %v1381_v24 = vld [vmem:[#allocation3] sm:$0x3] }
 0xec1   :  { %1718 = vpow2.f32 %v1253_v28 }
 0xec2   :  { %v1272_v44 = vmul.f32 1.442695, %v1271_v39 }
 0xec5   :  { %v1249_v25 = vpop.f32.mrf.mxu3 }
 0xec6   :  { %v1717_v26 = vpop.eup %1716 }
 0xec7   :  { %1315 = vrot.lane.b32.xlu1 %v1717_v26, %s1799_s29  ;;  %v1719_v29 = vpop.eup %1718 }
 0xec8   :  { %v1255_v30 = vadd.f32 1.0, %v1719_v29 }
 0xeca   :  { %1720 = vrcp.f32 %v1255_v30  ;;  %v1267_v36 = vand.u32 2147483648, %v1255_v30  ;;  %vm1261_vm10 = vweird.f32 %v1255_v30  ;;  %v1265_v37 = vand.u32 2147483647, %v1255_v30 }
 0xecb   :  { %1722 = vpow2.f32 %v1272_v44 }
 0xecc   :  { %v1268_v40 = vor.u32 1.1754944e-38, %v1267_v36  ;;  %vm1266_vm12 = vcmp.eq.f32.partialorder %v1265_v37, 8.507059e+37 }
 0xed0   :  { %v1721_v31 = vpop.eup %1720 }
 0xed1   :  { %v1257_v32 = vmul.f32 %v1721_v31, %v1255_v30  ;;  %vm1262_vm9 = vweird.f32 %v1721_v31  ;;  %v1723_v45 = vpop.eup %1722 }
 0xed2   :  { %vm1263_vm11 = vmor %vm1261_vm10, %vm1262_vm9  ;;  %v1274_v46 = vadd.f32 1.0, %v1723_v45 }
 0xed3   :  { %v1258_v33 = vsub.f32 1.0, %v1257_v32 }
 0xed4   :  { %1724 = vrcp.f32 %v1274_v46  ;;  %v1286_v52 = vand.u32 2147483648, %v1274_v46  ;;  %vm1280_vm14 = vweird.f32 %v1274_v46  ;;  %v1284_v53 = vand.u32 2147483647, %v1274_v46 }
 0xed5   :  { %v1259_v34 = vmul.f32 %v1721_v31, %v1258_v33 }
 0xed6   :  { %v1287_v55 = vor.u32 1.1754944e-38, %v1286_v52  ;;  %vm1285_vm2 = vcmp.eq.f32.partialorder %v1284_v53, 8.507059e+37 }
 0xed7   :  { %v1260_v35 = vadd.f32 %v1721_v31, %v1259_v34 }
 0xed9   :  { %v1264_v38 = vsel %vm1263_vm11, %v1721_v31, %v1260_v35 }
 0xeda   :  { %v1269_v42 = vsel %vm1266_vm12, %v1268_v40, %v1264_v38  ;;  %v1725_v47 = vpop.eup %1724 }
 0xedb   :  { %v1276_v48 = vmul.f32 %v1725_v47, %v1274_v46  ;;  %vm1281_vm13 = vweird.f32 %v1725_v47  ;;  %v1297_v60 = vmul.f32 %v1295_v59, %v1269_v42 }
 0xedc   :  { %vm1282_vm15 = vmor %vm1280_vm14, %vm1281_vm13 }
 0xedd   :  { %v1277_v49 = vsub.f32 1.0, %v1276_v48 }
 0xedf   :  { %v1278_v50 = vmul.f32 %v1725_v47, %v1277_v49 }
 0xee1   :  { %v1279_v51 = vadd.f32 %v1725_v47, %v1278_v50 }
 0xee3   :  { %v1283_v54 = vsel %vm1282_vm15, %v1725_v47, %v1279_v51 }
 0xee4   :  { %v1288_v56 = vsel %vm1285_vm2, %v1287_v55, %v1283_v54 }
 0xf0a   :  { %v1300_v41 = vpop.permute.xlu0 %1299 }
 0xf0b   :  { %v1302_v43 = vmul.f32 %v1300_v41, %v1269_v42 }
 0xf0d   :  { %1304 = vrot.lane.b32.xlu1 %v1302_v43, %s1803_s23 }
 0xf12   :  { %v1311_v0 = vpop.permute.xlu0 %1310 }
 0xf13   :  { %v1313_v2 = vmul.f32 %v1311_v0, %v1288_v56 }
 0xf39   :  { %v1316_v57 = vpop.permute.xlu1 %1315 }
 0xf3a   :  { %v1318_v58 = vmul.f32 %v1316_v57, %v1288_v56 }
 0xf3c   :  { %1320 = vrot.lane.b32.xlu2 %v1318_v58, %s1803_s23 }
 0xf7f   :  { %v1305_v61 = vpop.permute.xlu1 %1304 }
 0xf80   :  { %v1307_v62 = vadd.f32 %v1305_v61, %v1297_v60 }
 0xf82   :  { %1726 = vtanh.f32 %v1307_v62 }
 0xf88   :  { %v1727_v63 = vpop.eup %1726 }
 0xf89   :  { %1326 = vrot.lane.b32.xlu0 %v1727_v63, %s1799_s29 }
 0xf96   :  { %v1321_v3 = vpop.permute.xlu2 %1320 }
 0xf97   :  { %v1323_v5 = vadd.f32 %v1321_v3, %v1313_v2 }
 0xf99   :  { %1728 = vtanh.f32 %v1323_v5 }
 0xf9f   :  { %v1729_v6 = vpop.eup %1728 }
 0xfa0   :  { %1332 = vrot.lane.b32.xlu1 %v1729_v6, %s1799_s29 }
 0xfa8   :  { %1337 = vrot.lane.b32.xlu1 %v1307_v62, %s1804_s4 }
 0xffb   :  { %v1327_v7 = vpop.permute.xlu0 %1326 }
 0xffc   :  { %v1329_v8 = vmul.f32 %v1327_v7, %v1269_v42 }
 0xffe   :  { %1347 = vrot.lane.b32.xlu2 %v1329_v8, %s1803_s23 }
0x1006   :  { %1342 = vrot.lane.b32.xlu2 %v1323_v5, %s1804_s4 }
0x1012   :  { %v1333_v9 = vpop.permute.xlu1 %1332 }
0x1013   :  { %v1335_v10 = vmul.f32 %v1333_v9, %v1288_v56 }
0x1015   :  { %1352 = vrot.lane.b32.xlu0 %v1335_v10, %s1803_s23 }
0x101a   :  { %v1338_v11 = vpop.permute.xlu1 %1337 }
0x101b   :  { %1340 = vst.msk [vmem:[#allocation6] sm:$0x3] %vm95_vm0, %v1338_v11 }
0x1022   :  { %v1441_v12 = vld [vmem:[#allocation6] sm:$0x3] }
0x1023   :  { %1443 = vrot.lane.b32.xlu2 %v1441_v12, %s1803_s23 }
0x1058   :  { %v1348_v1 = vpop.permute.xlu2 %1347 }
0x1059   :  { %1350 = vst.msk [vmem:[#allocation4] sm:$0x3] %vm95_vm0, %v1348_v1 }
0x105a   :  { %1598 = vst.msk [vmem:[%s2163_s5 + $0xc] sm:$0x3] %vm95_vm0, %v1348_v1 }
0x1060   :  { %v1343_v13 = vpop.permute.xlu2 %1342  ;;  %v1362_v4 = vld [vmem:[#allocation4] sm:$0x3] }
0x1061   :  { %1345 = vst.msk [vmem:[#allocation7] sm:$0x3] %vm95_vm0, %v1343_v13  ;;  %v1363_v14 = vpack.c.bf16 %v1362_v4, %v1362_v4 }
0x1063   :  { %1600 = vmatmul.msk.bf16.vlgmr.msra.gmra.mxu0 %vm301_vm1, %v1363_v14 }
0x1068   :  { %v1457_v23 = vld [vmem:[#allocation7] sm:$0x3] }
0x107d   :  { %v1444_v61 = vpop.permute.xlu2 %1443 }
0x1087   :  { %v1353_v17 = vpop.permute.xlu0 %1352 }
0x1088   :  { %1355 = vst.msk [vmem:[#allocation5] sm:$0x3] %vm95_vm0, %v1353_v17 }
0x1089   :  { %1599 = vst.msk [vmem:[%s2164_s6 + $0x2] sm:$0x3] %vm95_vm0, %v1353_v17 }
0x108f   :  { %v1382_v18 = vld [vmem:[#allocation5] sm:$0x3] }
0x1090   :  { %v1383_v19 = vpack.c.bf16 %v1382_v18, %v1382_v18 }
0x1092   :  { %1601 = vmatmul.msk.bf16.vlgmr.msra.gmra.mxu1 %vm301_vm1, %v1383_v19 }
0x10e0   :  { %v1376_v21 = vpop.f32.mrf.mxu0 }
0x10e1   :  { %v1380_v22 = vadd.f32 %v1376_v21, %v1361_v20 }
0x10e3   :  { %1730 = vtanh.f32 %v1380_v22  ;;  %v1401_v29 = vsub.f32 0.0, %v1380_v22 }
0x10e5   :  { %v1402_v30 = vmul.f32 1.442695, %v1401_v29 }
0x10e8   :  { %v1378_v15 = vpop.f32.mrf.mxu0 }
0x10e9   :  { %v1731_v16 = vpop.eup %1730 }
0x10ea   :  { %1448 = vrot.lane.b32.xlu0 %v1731_v16, %s1799_s29 }
0x10f2   :  { %1459 = vrot.lane.b32.xlu0 %v1457_v23, %s1803_s23 }
0x110f   :  { %v1396_v25 = vpop.f32.mrf.mxu1 }
0x1110   :  { %v1400_v26 = vadd.f32 %v1396_v25, %v1381_v24 }
0x1112   :  { %1732 = vtanh.f32 %v1400_v26  ;;  %v1420_v41 = vsub.f32 0.0, %v1400_v26 }
0x1113   :  { %1734 = vpow2.f32 %v1402_v30 }
0x1114   :  { %v1421_v46 = vmul.f32 1.442695, %v1420_v41 }
0x1117   :  { %v1398_v27 = vpop.f32.mrf.mxu1 }
0x1118   :  { %v1733_v28 = vpop.eup %1732 }
0x1119   :  { %1464 = vrot.lane.b32.xlu1 %v1733_v28, %s1799_s29  ;;  %v1735_v31 = vpop.eup %1734 }
0x111a   :  { %v1404_v32 = vadd.f32 1.0, %v1735_v31 }
0x111c   :  { %1736 = vrcp.f32 %v1404_v32  ;;  %v1416_v38 = vand.u32 2147483648, %v1404_v32  ;;  %vm1410_vm3 = vweird.f32 %v1404_v32  ;;  %v1414_v39 = vand.u32 2147483647, %v1404_v32 }
0x111d   :  { %1738 = vpow2.f32 %v1421_v46 }
0x111e   :  { %v1417_v42 = vor.u32 1.1754944e-38, %v1416_v38  ;;  %vm1415_vm5 = vcmp.eq.f32.partialorder %v1414_v39, 8.507059e+37 }
0x1122   :  { %v1737_v33 = vpop.eup %1736 }
0x1123   :  { %v1406_v34 = vmul.f32 %v1737_v33, %v1404_v32  ;;  %vm1411_vm1 = vweird.f32 %v1737_v33  ;;  %v1739_v47 = vpop.eup %1738 }
0x1124   :  { %vm1412_vm4 = vmor %vm1410_vm3, %vm1411_vm1  ;;  %v1423_v48 = vadd.f32 1.0, %v1739_v47 }
0x1125   :  { %v1407_v35 = vsub.f32 1.0, %v1406_v34 }
0x1126   :  { %1740 = vrcp.f32 %v1423_v48  ;;  %v1435_v54 = vand.u32 2147483648, %v1423_v48  ;;  %vm1429_vm7 = vweird.f32 %v1423_v48  ;;  %v1433_v55 = vand.u32 2147483647, %v1423_v48 }
0x1127   :  { %v1408_v36 = vmul.f32 %v1737_v33, %v1407_v35 }
0x1128   :  { %v1436_v57 = vor.u32 1.1754944e-38, %v1435_v54  ;;  %vm1434_vm9 = vcmp.eq.f32.partialorder %v1433_v55, 8.507059e+37 }
0x1129   :  { %v1409_v37 = vadd.f32 %v1737_v33, %v1408_v36 }
0x112b   :  { %v1413_v40 = vsel %vm1412_vm4, %v1737_v33, %v1409_v37 }
0x112c   :  { %v1418_v43 = vsel %vm1415_vm5, %v1417_v42, %v1413_v40  ;;  %v1741_v49 = vpop.eup %1740 }
0x112d   :  { %v1425_v50 = vmul.f32 %v1741_v49, %v1423_v48  ;;  %vm1430_vm6 = vweird.f32 %v1741_v49  ;;  %v1446_v62 = vmul.f32 %v1444_v61, %v1418_v43 }
0x112e   :  { %vm1431_vm8 = vmor %vm1429_vm7, %vm1430_vm6 }
0x112f   :  { %v1426_v51 = vsub.f32 1.0, %v1425_v50 }
0x1131   :  { %v1427_v52 = vmul.f32 %v1741_v49, %v1426_v51 }
0x1133   :  { %v1428_v53 = vadd.f32 %v1741_v49, %v1427_v52 }
0x1135   :  { %v1432_v56 = vsel %vm1431_vm8, %v1741_v49, %v1428_v53 }
0x1136   :  { %v1437_v58 = vsel %vm1434_vm9, %v1436_v57, %v1432_v56 }
0x115c   :  { %v1449_v44 = vpop.permute.xlu0 %1448 }
0x115d   :  { %v1451_v45 = vmul.f32 %v1449_v44, %v1418_v43 }
0x115f   :  { %1453 = vrot.lane.b32.xlu1 %v1451_v45, %s1803_s23 }
0x1164   :  { %v1460_v3 = vpop.permute.xlu0 %1459 }
0x1165   :  { %v1462_v5 = vmul.f32 %v1460_v3, %v1437_v58 }
0x118b   :  { %v1465_v59 = vpop.permute.xlu1 %1464 }
0x118c   :  { %v1467_v60 = vmul.f32 %v1465_v59, %v1437_v58 }
0x118e   :  { %1469 = vrot.lane.b32.xlu2 %v1467_v60, %s1803_s23 }
0x11d1   :  { %v1454_v63 = vpop.permute.xlu1 %1453 }
0x11d2   :  { %v1456_v0 = vadd.f32 %v1454_v63, %v1446_v62 }
0x11d4   :  { %1742 = vtanh.f32 %v1456_v0  ;;  %1486 = vrot.lane.b32.xlu2 %v1456_v0, %s1804_s4 }
0x11da   :  { %v1743_v2 = vpop.eup %1742 }
0x11db   :  { %1475 = vrot.lane.b32.xlu0 %v1743_v2, %s1799_s29 }
0x11e8   :  { %v1470_v6 = vpop.permute.xlu2 %1469 }
0x11e9   :  { %v1472_v7 = vadd.f32 %v1470_v6, %v1462_v5 }
0x11eb   :  { %1744 = vtanh.f32 %v1472_v7  ;;  %1491 = vrot.lane.b32.xlu0 %v1472_v7, %s1804_s4 }
0x11f1   :  { %v1745_v8 = vpop.eup %1744 }
0x11f2   :  { %1481 = vrot.lane.b32.xlu1 %v1745_v8, %s1799_s29 }
0x122e   :  { %v1487_v9 = vpop.permute.xlu2 %1486 }
0x122f   :  { %1489 = vst.msk [vmem:[#allocation6] sm:$0x3] %vm95_vm0, %v1487_v9 }
0x124d   :  { %v1476_v10 = vpop.permute.xlu0 %1475 }
0x124e   :  { %v1478_v11 = vmul.f32 %v1476_v10, %v1418_v43 }
0x1250   :  { %1496 = vrot.lane.b32.xlu1 %v1478_v11, %s1803_s23 }
0x125d   :  { %v1492_v12 = vpop.permute.xlu0 %1491 }
0x125e   :  { %1494 = vst.msk [vmem:[#allocation7] sm:$0x3] %vm95_vm0, %v1492_v12 }
0x1264   :  { %v1482_v1 = vpop.permute.xlu1 %1481 }
0x1265   :  { %v1484_v13 = vmul.f32 %v1482_v1, %v1437_v58 }
0x1267   :  { %1501 = vrot.lane.b32.xlu2 %v1484_v13, %s1803_s23 }
0x12c1   :  { %v1502_v4 = vpop.permute.xlu2 %1501 }
0x12c2   :  { %1504 = vst.msk [vmem:[#allocation5] sm:$0x3] %vm95_vm0, %v1502_v4  ;;  %v1497_v14 = vpop.permute.xlu1 %1496 }
0x12c3   :  { %1507 = vst.msk [vmem:[%s2164_s6] sm:$0x3] %vm95_vm0, %v1502_v4 }
0x12c4   :  { %1499 = vst.msk [vmem:[#allocation4] sm:$0x3] %vm95_vm0, %v1497_v14 }
0x12c5   :  { %1602 = vst.msk [vmem:[%s2163_s5 + $0xe] sm:$0x3] %vm95_vm0, %v1497_v14 }
0x12c6   :  { %1530 = vsyncpa [#allocation9], 1 }
0x12c7   :  { %1531 = vsyncpa [#allocation11], 1 }

</bundles_post_ra>
